<compile_context>
chip_gen: v7x
topology: tpu7x:2x2x1
jax: 0.10.0
libtpu: 0.0.40
codegen_flags: <defaults>
</compile_context>

<pallas_src>
import functools

import jax
import jax.numpy as jnp
from jax import lax
from jax.experimental import pallas as pl
from jax.experimental.pallas import tpu as pltpu

EPS = 1e-5  # nn.LayerNorm default


# --------------------------------------------------------------------------
# in-kernel helpers
# --------------------------------------------------------------------------
def _layernorm(x, gamma, beta):
    mu = jnp.mean(x, axis=-1, keepdims=True)
    var = jnp.mean((x - mu) ** 2, axis=-1, keepdims=True)
    return (x - mu) * lax.rsqrt(var + EPS) * gamma + beta


def _mha(q, k, v, nhead, cdt):
    """Batched multi-head attention.  q:(S,D), k/v:(Sk,D) f32 -> (S,D) f32."""
    S, D = q.shape
    Sk = k.shape[0]
    hd = D // nhead
    scale = 1.0 / float(hd) ** 0.5
    # heads -> leading batch axis; one batched contraction per matmul
    qh = q.reshape(S, nhead, hd).transpose(1, 0, 2)    # (H, S,  hd)
    kh = k.reshape(Sk, nhead, hd).transpose(1, 0, 2)   # (H, Sk, hd)
    vh = v.reshape(Sk, nhead, hd).transpose(1, 0, 2)   # (H, Sk, hd)
    s = jnp.einsum("hqd,hkd->hqk", qh.astype(cdt), kh.astype(cdt),
                   preferred_element_type=jnp.float32) * scale
    s = s - jnp.max(s, axis=-1, keepdims=True)
    p = jnp.exp(s)
    p = p * pl.reciprocal(jnp.sum(p, axis=-1, keepdims=True), approx=False)
    ctx = jnp.einsum("hqk,hkd->hqd", p.astype(cdt), vh.astype(cdt),
                     preferred_element_type=jnp.float32)     # (H, S, hd)
    return ctx.transpose(1, 0, 2).reshape(S, D)


# --------------------------------------------------------------------------
# single fused kernel: all layers + final LayerNorm, x stays in VMEM
# --------------------------------------------------------------------------
def _fused_forward_kernel(*refs, nhead, num_layers, has_memory, has_qpos,
                          has_mpos, compute_dtype):
    cdt = compute_dtype
    refs = list(refs)
    o_ref = refs.pop()                      # single output ref, no scratch
    cursor = [0]

    def take(n=1):
        out = refs[cursor[0]:cursor[0] + n]
        cursor[0] += n
        return out[0] if n == 1 else out

    x_ref = take()
    qpos_ref = take() if has_qpos else None
    mem_ref = take() if has_memory else None
    mpos_ref = take() if has_mpos else None
    wqk_s, bqk_s, wv_s, bv_s, wo_s, bo_s, g1, be1 = take(8)
    if has_memory:
        wq_c, bq_c, wk_c, bk_c, wv_c, bv_c, wo_c, bo_c, g2, be2 = take(10)
    w1, bf1, w2, bf2, g3, be3 = take(6)
    gn, bn = take(2)

    D = x_ref.shape[-1]
    x = x_ref[0].astype(jnp.float32)                         # (S, D)
    if has_qpos:
        qpos = qpos_ref[0].astype(jnp.float32)
    if has_memory:
        mem = mem_ref[0].astype(jnp.float32)                 # (M, D)
        k_mem = mem + mpos_ref[0].astype(jnp.float32) if has_mpos else mem

    for l in range(num_layers):                              # static unroll
        # ---- self attention: q = k = x (+ query_pos), value = x ----
        q_in = x + qpos if has_qpos else x
        qk = jnp.dot(q_in.astype(cdt), wqk_s[l].astype(cdt),
                     preferred_element_type=jnp.float32) + bqk_s[l]
        q, k = qk[:, :D], qk[:, D:]
        v = jnp.dot(x.astype(cdt), wv_s[l].astype(cdt),
                    preferred_element_type=jnp.float32) + bv_s[l]
        ctx = _mha(q, k, v, nhead, cdt)
        attn = jnp.dot(ctx.astype(cdt), wo_s[l].astype(cdt),
                       preferred_element_type=jnp.float32) + bo_s[l]
        x = _layernorm(x + attn, g1[l], be1[l])

        # ---- cross attention to memory ----
        if has_memory:
            q_in = x + qpos if has_qpos else x
            q = jnp.dot(q_in.astype(cdt), wq_c[l].astype(cdt),
                        preferred_element_type=jnp.float32) + bq_c[l]
            k = jnp.dot(k_mem.astype(cdt), wk_c[l].astype(cdt),
                        preferred_element_type=jnp.float32) + bk_c[l]
            v = jnp.dot(mem.astype(cdt), wv_c[l].astype(cdt),
                        preferred_element_type=jnp.float32) + bv_c[l]
            ctx = _mha(q, k, v, nhead, cdt)
            attn = jnp.dot(ctx.astype(cdt), wo_c[l].astype(cdt),
                           preferred_element_type=jnp.float32) + bo_c[l]
            x = _layernorm(x + attn, g2[l], be2[l])

        # ---- feed-forward: linear1 -> relu -> linear2 + residual + LN ----
        h = jnp.maximum(jnp.dot(x.astype(cdt), w1[l].astype(cdt),
                                preferred_element_type=jnp.float32) + bf1[l], 0.0)
        y = jnp.dot(h.astype(cdt), w2[l].astype(cdt),
                    preferred_element_type=jnp.float32) + bf2[l]
        x = _layernorm(x + y, g3[l], be3[l])

    # module-level final LayerNorm, fused into the same kernel
    o_ref[0] = _layernorm(x, gn[...], bn[...]).astype(o_ref.dtype)
    # TODO(synk): dropout layers are identity (inference semantics); training-mode
    # stochastic dropout is not reproduced.


# --------------------------------------------------------------------------
# wrapper: one pallas_call for the whole forward, grid over batch
# --------------------------------------------------------------------------
def enhanced_memory_attention_forward(params, curr_features, memory_vectors=None,
                                      curr_pos=None, memory_pos=None, *, nhead,
                                      compute_dtype=jnp.float32):
    """curr_features: (B, S, D) [batch_first=True]; memory_vectors: (n_mem, B, D)."""
    x = curr_features
    B, S, D = x.shape
    num_layers = params["self_wqk"].shape[0]

    has_qpos = curr_pos is not None
    has_memory = memory_vectors is not None and memory_vectors.shape[0] > 0
    has_mpos = has_memory and memory_pos is not None

    seq_spec = lambda rows: pl.BlockSpec((1, rows, D), lambda b: (b, 0, 0))

    inputs = [x]
    specs = [seq_spec(S)]
    if has_qpos:
        inputs.append(curr_pos)
        specs.append(seq_spec(S))
    if has_memory:
        mem = jnp.transpose(memory_vectors, (1, 0, 2))        # (B, M, D)
        M = mem.shape[1]
        inputs.append(mem)
        specs.append(seq_spec(M))
        if has_mpos:
            inputs.append(jnp.transpose(memory_pos, (1, 0, 2)))
            specs.append(seq_spec(M))

    def add_weight(name):
        a = params[name]
        inputs.append(a)
        specs.append(pl.BlockSpec(a.shape, lambda b, nd=a.ndim: (0,) * nd))

    for name in ("self_wqk", "self_bqk", "self_wv", "self_bv",
                 "self_wo", "self_bo", "norm1_g", "norm1_b"):
        add_weight(name)
    if has_memory:
        for name in ("cross_wq", "cross_bq", "cross_wk", "cross_bk",
                     "cross_wv", "cross_bv", "cross_wo", "cross_bo",
                     "norm2_g", "norm2_b"):
            add_weight(name)
    for name in ("ffn_w1", "ffn_b1", "ffn_w2", "ffn_b2", "norm3_g", "norm3_b",
                 "norm_g", "norm_b"):
        add_weight(name)

    kernel = functools.partial(
        _fused_forward_kernel, nhead=nhead, num_layers=num_layers,
        has_memory=has_memory, has_qpos=has_qpos, has_mpos=has_mpos,
        compute_dtype=compute_dtype)

    return pl.pallas_call(
        kernel,
        out_shape=jax.ShapeDtypeStruct((B, S, D), x.dtype),
        grid=(B,),
        in_specs=specs,
        out_specs=seq_spec(S),
        compiler_params=pltpu.CompilerParams(
            dimension_semantics=("parallel",)),
    )(*inputs)


# --------------------------------------------------------------------------
# deterministic synthetic parameter init (stacked along the layer axis)
# --------------------------------------------------------------------------
def init_params(key, d_model, dim_feedforward, num_layers):
    def dense(k, shape, scale=0.05):
        return (scale * jax.random.normal(k, shape)).astype(jnp.float32)

    D, F, L = d_model, dim_feedforward, num_layers
    zeros = lambda s: jnp.zeros(s, jnp.float32)
    ones = lambda s: jnp.ones(s, jnp.float32)
    ks = jax.random.split(key, 9)
    return {
        # self-attention: fused Q/K projection (same input), separate V
        "self_wqk": dense(ks[0], (L, D, 2 * D)), "self_bqk": zeros((L, 1, 2 * D)),
        "self_wv": dense(ks[1], (L, D, D)),      "self_bv": zeros((L, 1, D)),
        "self_wo": dense(ks[2], (L, D, D)),      "self_bo": zeros((L, 1, D)),
        "norm1_g": ones((L, 1, D)),              "norm1_b": zeros((L, 1, D)),
        # cross-attention to memory (q/k/v come from 3 different inputs)
        "cross_wq": dense(ks[3], (L, D, D)),     "cross_bq": zeros((L, 1, D)),
        "cross_wk": dense(ks[4], (L, D, D)),     "cross_bk": zeros((L, 1, D)),
        "cross_wv": dense(ks[5], (L, D, D)),     "cross_bv": zeros((L, 1, D)),
        "cross_wo": dense(ks[6], (L, D, D)),     "cross_bo": zeros((L, 1, D)),
        "norm2_g": ones((L, 1, D)),              "norm2_b": zeros((L, 1, D)),
        # feed-forward
        "ffn_w1": dense(ks[7], (L, D, F)),       "ffn_b1": zeros((L, 1, F)),
        "ffn_w2": dense(ks[8], (L, F, D)),       "ffn_b2": zeros((L, 1, D)),
        "norm3_g": ones((L, 1, D)),              "norm3_b": zeros((L, 1, D)),
        # module-level final LayerNorm
        "norm_g": ones((1, D)),                  "norm_b": zeros((1, D)),
    }


# --------------------------------------------------------------------------
# pure-JAX reference (for correctness check)
# --------------------------------------------------------------------------
def _ref_ln(x, g, b):
    mu = x.mean(-1, keepdims=True)
    var = ((x - mu) ** 2).mean(-1, keepdims=True)
    return (x - mu) / jnp.sqrt(var + EPS) * g + b


def _ref_mha(q_in, k_in, v_in, wq, bq, wk, bk, wv, bv, wo, bo, nhead):
    B, S, D = q_in.shape
    Sk = k_in.shape[1]
    hd = D // nhead
    q = (q_in @ wq + bq).reshape(B, S, nhead, hd)
    k = (k_in @ wk + bk).reshape(B, Sk, nhead, hd)
    v = (v_in @ wv + bv).reshape(B, Sk, nhead, hd)
    s = jnp.einsum("bqhd,bkhd->bhqk", q, k) / jnp.sqrt(float(hd))
    p = jax.nn.softmax(s, axis=-1)
    ctx = jnp.einsum("bhqk,bkhd->bqhd", p, v).reshape(B, S, D)
    return ctx @ wo + bo


def _ref_forward(params, curr, mem_sbD, curr_pos, mem_pos, nhead):
    x = curr
    D = x.shape[-1]
    L = params["self_wqk"].shape[0]
    mem = None if mem_sbD is None else jnp.transpose(mem_sbD, (1, 0, 2))
    mpos = None if mem_pos is None else jnp.transpose(mem_pos, (1, 0, 2))
    for l in range(L):
        wqk, bqk = params["self_wqk"][l], params["self_bqk"][l]
        wq, wk, bq, bk = wqk[:, :D], wqk[:, D:], bqk[:, :D], bqk[:, D:]
        q_in = x + curr_pos if curr_pos is not None else x
        x = _ref_ln(x + _ref_mha(q_in, q_in, x, wq, bq, wk, bk,
                                 params["self_wv"][l], params["self_bv"][l],
                                 params["self_wo"][l], params["self_bo"][l], nhead),
                    params["norm1_g"][l], params["norm1_b"][l])
        if mem is not None and mem.shape[1] > 0:
            q_in = x + curr_pos if curr_pos is not None else x
            k_in = mem + mpos if mpos is not None else mem
            x = _ref_ln(x + _ref_mha(q_in, k_in, mem,
                                     params["cross_wq"][l], params["cross_bq"][l],
                                     params["cross_wk"][l], params["cross_bk"][l],
                                     params["cross_wv"][l], params["cross_bv"][l],
                                     params["cross_wo"][l], params["cross_bo"][l],
                                     nhead),
                        params["norm2_g"][l], params["norm2_b"][l])
        h = jnp.maximum(x @ params["ffn_w1"][l] + params["ffn_b1"][l], 0.0)
        y = h @ params["ffn_w2"][l] + params["ffn_b2"][l]
        x = _ref_ln(x + y, params["norm3_g"][l], params["norm3_b"][l])
    return _ref_ln(x, params["norm_g"], params["norm_b"])


# --------------------------------------------------------------------------
if __name__ == "__main__":
    # Small, MHA-consistent shapes: d_model=32, nhead=4, dff=64, 2 layers.
    B, S, D, NHEAD, DFF, NMEM, NLAYERS = 2, 8, 32, 4, 64, 6, 2

    root = jax.random.PRNGKey(0)
    k_par, k_x, k_mem, k_cp, k_mp = jax.random.split(root, 5)

    params = init_params(k_par, D, DFF, NLAYERS)

    curr_features = jax.random.normal(k_x, (B, S, D), jnp.float32)        # batch_first
    memory_vectors = jax.random.normal(k_mem, (NMEM, B, D), jnp.float32)  # (n_mem, B, D)
    curr_pos = 0.1 * jax.random.normal(k_cp, (B, S, D), jnp.float32)
    memory_pos = 0.1 * jax.random.normal(k_mp, (NMEM, B, D), jnp.float32)

    ref = _ref_forward(params, curr_features, memory_vectors, curr_pos, memory_pos, NHEAD)

    # f32 MXU operands: tight tolerance against the pure-JAX reference.
    out = enhanced_memory_attention_forward(
        params, curr_features, memory_vectors, curr_pos, memory_pos,
        nhead=NHEAD, compute_dtype=jnp.float32)
    out = jax.block_until_ready(out)
    assert out.shape == curr_features.shape
    assert jnp.allclose(out, ref, atol=2e-4, rtol=2e-3), float(jnp.max(jnp.abs(out - ref)))

    # bf16 MXU operands / f32 accumulation (v6e/v7x fast path): looser tolerance.
    out_bf16 = enhanced_memory_attention_forward(
        params, curr_features, memory_vectors, curr_pos, memory_pos,
        nhead=NHEAD, compute_dtype=jnp.bfloat16)
    out_bf16 = jax.block_until_ready(out_bf16)
    assert jnp.allclose(out_bf16, ref, atol=1e-1, rtol=1e-1), \
        float(jnp.max(jnp.abs(out_bf16 - ref)))

    print("KERNEL_OK")
</pallas_src>

<mosaic_0001>
module attributes {stable_mosaic.version = 11 : i64} {
  func.func @_fused_forward_kernel(%arg0: i32, %arg1: memref<1x8x32xf32, #tpu.memory_space<vmem>>, %arg2: memref<1x8x32xf32, #tpu.memory_space<vmem>>, %arg3: memref<1x6x32xf32, #tpu.memory_space<vmem>>, %arg4: memref<1x6x32xf32, #tpu.memory_space<vmem>>, %arg5: memref<2x32x64xf32, #tpu.memory_space<vmem>>, %arg6: memref<2x1x64xf32, #tpu.memory_space<vmem>>, %arg7: memref<2x32x32xf32, #tpu.memory_space<vmem>>, %arg8: memref<2x1x32xf32, #tpu.memory_space<vmem>>, %arg9: memref<2x32x32xf32, #tpu.memory_space<vmem>>, %arg10: memref<2x1x32xf32, #tpu.memory_space<vmem>>, %arg11: memref<2x1x32xf32, #tpu.memory_space<vmem>>, %arg12: memref<2x1x32xf32, #tpu.memory_space<vmem>>, %arg13: memref<2x32x32xf32, #tpu.memory_space<vmem>>, %arg14: memref<2x1x32xf32, #tpu.memory_space<vmem>>, %arg15: memref<2x32x32xf32, #tpu.memory_space<vmem>>, %arg16: memref<2x1x32xf32, #tpu.memory_space<vmem>>, %arg17: memref<2x32x32xf32, #tpu.memory_space<vmem>>, %arg18: memref<2x1x32xf32, #tpu.memory_space<vmem>>, %arg19: memref<2x32x32xf32, #tpu.memory_space<vmem>>, %arg20: memref<2x1x32xf32, #tpu.memory_space<vmem>>, %arg21: memref<2x1x32xf32, #tpu.memory_space<vmem>>, %arg22: memref<2x1x32xf32, #tpu.memory_space<vmem>>, %arg23: memref<2x32x64xf32, #tpu.memory_space<vmem>>, %arg24: memref<2x1x64xf32, #tpu.memory_space<vmem>>, %arg25: memref<2x64x32xf32, #tpu.memory_space<vmem>>, %arg26: memref<2x1x32xf32, #tpu.memory_space<vmem>>, %arg27: memref<2x1x32xf32, #tpu.memory_space<vmem>>, %arg28: memref<2x1x32xf32, #tpu.memory_space<vmem>>, %arg29: memref<1x32xf32, #tpu.memory_space<vmem>>, %arg30: memref<1x32xf32, #tpu.memory_space<vmem>>, %arg31: memref<1x8x32xf32, #tpu.memory_space<vmem>>) attributes {dimension_semantics = [#tpu.dimension_semantics<parallel>], iteration_bounds = array<i64: 2>, scalar_prefetch = 0 : i64, scratch_operands = 0 : i64, tpu.core_type = #tpu.core_type<tc>, window_params = [{transform_indices = @transform_0, window_bounds = array<i64: 1, 8, 32>}, {transform_indices = @transform_1, window_bounds = array<i64: 1, 8, 32>}, {transform_indices = @transform_2, window_bounds = array<i64: 1, 6, 32>}, {transform_indices = @transform_3, window_bounds = array<i64: 1, 6, 32>}, {pipeline_mode = #tpu.pipeline_mode<synchronous>, transform_indices = @transform_4, window_bounds = array<i64: 2, 32, 64>}, {pipeline_mode = #tpu.pipeline_mode<synchronous>, transform_indices = @transform_5, window_bounds = array<i64: 2, 1, 64>}, {pipeline_mode = #tpu.pipeline_mode<synchronous>, transform_indices = @transform_6, window_bounds = array<i64: 2, 32, 32>}, {pipeline_mode = #tpu.pipeline_mode<synchronous>, transform_indices = @transform_7, window_bounds = array<i64: 2, 1, 32>}, {pipeline_mode = #tpu.pipeline_mode<synchronous>, transform_indices = @transform_8, window_bounds = array<i64: 2, 32, 32>}, {pipeline_mode = #tpu.pipeline_mode<synchronous>, transform_indices = @transform_9, window_bounds = array<i64: 2, 1, 32>}, {pipeline_mode = #tpu.pipeline_mode<synchronous>, transform_indices = @transform_10, window_bounds = array<i64: 2, 1, 32>}, {pipeline_mode = #tpu.pipeline_mode<synchronous>, transform_indices = @transform_11, window_bounds = array<i64: 2, 1, 32>}, {pipeline_mode = #tpu.pipeline_mode<synchronous>, transform_indices = @transform_12, window_bounds = array<i64: 2, 32, 32>}, {pipeline_mode = #tpu.pipeline_mode<synchronous>, transform_indices = @transform_13, window_bounds = array<i64: 2, 1, 32>}, {pipeline_mode = #tpu.pipeline_mode<synchronous>, transform_indices = @transform_14, window_bounds = array<i64: 2, 32, 32>}, {pipeline_mode = #tpu.pipeline_mode<synchronous>, transform_indices = @transform_15, window_bounds = array<i64: 2, 1, 32>}, {pipeline_mode = #tpu.pipeline_mode<synchronous>, transform_indices = @transform_16, window_bounds = array<i64: 2, 32, 32>}, {pipeline_mode = #tpu.pipeline_mode<synchronous>, transform_indices = @transform_17, window_bounds = array<i64: 2, 1, 32>}, {pipeline_mode = #tpu.pipeline_mode<synchronous>, transform_indices = @transform_18, window_bounds = array<i64: 2, 32, 32>}, {pipeline_mode = #tpu.pipeline_mode<synchronous>, transform_indices = @transform_19, window_bounds = array<i64: 2, 1, 32>}, {pipeline_mode = #tpu.pipeline_mode<synchronous>, transform_indices = @transform_20, window_bounds = array<i64: 2, 1, 32>}, {pipeline_mode = #tpu.pipeline_mode<synchronous>, transform_indices = @transform_21, window_bounds = array<i64: 2, 1, 32>}, {pipeline_mode = #tpu.pipeline_mode<synchronous>, transform_indices = @transform_22, window_bounds = array<i64: 2, 32, 64>}, {pipeline_mode = #tpu.pipeline_mode<synchronous>, transform_indices = @transform_23, window_bounds = array<i64: 2, 1, 64>}, {pipeline_mode = #tpu.pipeline_mode<synchronous>, transform_indices = @transform_24, window_bounds = array<i64: 2, 64, 32>}, {pipeline_mode = #tpu.pipeline_mode<synchronous>, transform_indices = @transform_25, window_bounds = array<i64: 2, 1, 32>}, {pipeline_mode = #tpu.pipeline_mode<synchronous>, transform_indices = @transform_26, window_bounds = array<i64: 2, 1, 32>}, {pipeline_mode = #tpu.pipeline_mode<synchronous>, transform_indices = @transform_27, window_bounds = array<i64: 2, 1, 32>}, {pipeline_mode = #tpu.pipeline_mode<synchronous>, transform_indices = @transform_28, window_bounds = array<i64: 1, 32>}, {pipeline_mode = #tpu.pipeline_mode<synchronous>, transform_indices = @transform_29, window_bounds = array<i64: 1, 32>}, {transform_indices = @transform_30, window_bounds = array<i64: 1, 8, 32>}]} {
    %c0 = arith.constant 0 : index
    %c0_0 = arith.constant 0 : index
    %c0_1 = arith.constant 0 : index
    %0 = vector.load %arg1[%c0, %c0_0, %c0_1] : memref<1x8x32xf32, #tpu.memory_space<vmem>>, vector<1x8x32xf32>
    %1 = vector.shape_cast %0 : vector<1x8x32xf32> to vector<8x32xf32>
    %c0_2 = arith.constant 0 : index
    %c0_3 = arith.constant 0 : index
    %c0_4 = arith.constant 0 : index
    %2 = vector.load %arg2[%c0_2, %c0_3, %c0_4] : memref<1x8x32xf32, #tpu.memory_space<vmem>>, vector<1x8x32xf32>
    %3 = vector.shape_cast %2 : vector<1x8x32xf32> to vector<8x32xf32>
    %c0_5 = arith.constant 0 : index
    %c0_6 = arith.constant 0 : index
    %c0_7 = arith.constant 0 : index
    %4 = vector.load %arg3[%c0_5, %c0_6, %c0_7] : memref<1x6x32xf32, #tpu.memory_space<vmem>>, vector<1x6x32xf32>
    %5 = vector.shape_cast %4 : vector<1x6x32xf32> to vector<6x32xf32>
    %c0_8 = arith.constant 0 : index
    %c0_9 = arith.constant 0 : index
    %c0_10 = arith.constant 0 : index
    %6 = vector.load %arg4[%c0_8, %c0_9, %c0_10] : memref<1x6x32xf32, #tpu.memory_space<vmem>>, vector<1x6x32xf32>
    %7 = vector.shape_cast %6 : vector<1x6x32xf32> to vector<6x32xf32>
    %8 = arith.addf %5, %7 : vector<6x32xf32>
    %9 = arith.addf %1, %3 : vector<8x32xf32>
    %c0_11 = arith.constant 0 : index
    %c0_12 = arith.constant 0 : index
    %c0_13 = arith.constant 0 : index
    %10 = vector.load %arg5[%c0_11, %c0_12, %c0_13] : memref<2x32x64xf32, #tpu.memory_space<vmem>>, vector<1x32x64xf32>
    %11 = vector.shape_cast %10 : vector<1x32x64xf32> to vector<32x64xf32>
    %cst = arith.constant dense<0.000000e+00> : vector<8x64xf32>
    %12 = tpu.matmul %9, %11, %cst {dimension_numbers = #tpu.dot_dimension_numbers<[1], [0], [0], [1], [0, 0, 1, 1], [], []>} : vector<8x32xf32>, vector<32x64xf32>, vector<8x64xf32> -> vector<8x64xf32>
    %c0_14 = arith.constant 0 : index
    %c0_15 = arith.constant 0 : index
    %c0_16 = arith.constant 0 : index
    %13 = vector.load %arg6[%c0_14, %c0_15, %c0_16] : memref<2x1x64xf32, #tpu.memory_space<vmem>>, vector<1x1x64xf32>
    %14 = vector.shape_cast %13 : vector<1x1x64xf32> to vector<1x64xf32>
    %15 = vector.broadcast %14 : vector<1x64xf32> to vector<8x64xf32>
    %16 = arith.addf %12, %15 : vector<8x64xf32>
    %17 = vector.extract_strided_slice %16 {offsets = [0, 0], sizes = [8, 32], strides = [1, 1]} : vector<8x64xf32> to vector<8x32xf32>
    %18 = vector.extract_strided_slice %16 {offsets = [0, 32], sizes = [8, 32], strides = [1, 1]} : vector<8x64xf32> to vector<8x32xf32>
    %c0_17 = arith.constant 0 : index
    %c0_18 = arith.constant 0 : index
    %c0_19 = arith.constant 0 : index
    %19 = vector.load %arg7[%c0_17, %c0_18, %c0_19] : memref<2x32x32xf32, #tpu.memory_space<vmem>>, vector<1x32x32xf32>
    %20 = vector.shape_cast %19 : vector<1x32x32xf32> to vector<32x32xf32>
    %cst_20 = arith.constant dense<0.000000e+00> : vector<8x32xf32>
    %21 = tpu.matmul %1, %20, %cst_20 {dimension_numbers = #tpu.dot_dimension_numbers<[1], [0], [0], [1], [0, 0, 1, 1], [], []>} : vector<8x32xf32>, vector<32x32xf32>, vector<8x32xf32> -> vector<8x32xf32>
    %c0_21 = arith.constant 0 : index
    %c0_22 = arith.constant 0 : index
    %c0_23 = arith.constant 0 : index
    %22 = vector.load %arg8[%c0_21, %c0_22, %c0_23] : memref<2x1x32xf32, #tpu.memory_space<vmem>>, vector<1x1x32xf32>
    %23 = vector.shape_cast %22 : vector<1x1x32xf32> to vector<1x32xf32>
    %24 = vector.broadcast %23 : vector<1x32xf32> to vector<8x32xf32>
    %25 = arith.addf %21, %24 : vector<8x32xf32>
    %26 = vector.shape_cast %17 : vector<8x32xf32> to vector<8x4x8xf32>
    %27 = tpu.transpose %26, [1, 0, 2] : vector<8x4x8xf32> -> vector<4x8x8xf32>
    %28 = vector.shape_cast %18 : vector<8x32xf32> to vector<8x4x8xf32>
    %29 = tpu.transpose %28, [1, 0, 2] : vector<8x4x8xf32> -> vector<4x8x8xf32>
    %30 = vector.shape_cast %25 : vector<8x32xf32> to vector<8x4x8xf32>
    %31 = tpu.transpose %30, [1, 0, 2] : vector<8x4x8xf32> -> vector<4x8x8xf32>
    "tpu.trace_start"() <{level = 10 : i32, message = "hqd,hkd->hqk"}> : () -> ()
    %cst_24 = arith.constant dense<0.000000e+00> : vector<4x8x8xf32>
    %32 = tpu.matmul %27, %29, %cst_24 {dimension_numbers = #tpu.dot_dimension_numbers<[2], [2], [1], [1], [0, 0, 0, 1, 1, 1], [0], [0]>} : vector<4x8x8xf32>, vector<4x8x8xf32>, vector<4x8x8xf32> -> vector<4x8x8xf32>
    "tpu.trace_stop"() : () -> ()
    %cst_25 = arith.constant 0.353553385 : f32
    %33 = vector.broadcast %cst_25 : f32 to vector<4x8x8xf32>
    %34 = arith.mulf %32, %33 : vector<4x8x8xf32>
    %cst_26 = arith.constant dense<0xFF800000> : vector<4x8xf32>
    %35 = vector.multi_reduction <maximumf>, %34, %cst_26 [2] : vector<4x8x8xf32> to vector<4x8xf32>
    %36 = vector.shape_cast %35 : vector<4x8xf32> to vector<4x8x1xf32>
    %37 = vector.broadcast %36 : vector<4x8x1xf32> to vector<4x8x8xf32>
    %38 = arith.subf %34, %37 : vector<4x8x8xf32>
    %39 = math.exp %38 : vector<4x8x8xf32>
    %cst_27 = arith.constant dense<0.000000e+00> : vector<4x8xf32>
    %40 = vector.multi_reduction <add>, %39, %cst_27 [2] : vector<4x8x8xf32> to vector<4x8xf32>
    %41 = vector.shape_cast %40 : vector<4x8xf32> to vector<4x8x1xf32>
    %42 = tpu.reciprocal %41 : vector<4x8x1xf32> -> vector<4x8x1xf32>
    %43 = vector.broadcast %42 : vector<4x8x1xf32> to vector<4x8x8xf32>
    %44 = arith.mulf %39, %43 : vector<4x8x8xf32>
    "tpu.trace_start"() <{level = 10 : i32, message = "hqk,hkd->hqd"}> : () -> ()
    %cst_28 = arith.constant dense<0.000000e+00> : vector<4x8x8xf32>
    %45 = tpu.matmul %44, %31, %cst_28 {dimension_numbers = #tpu.dot_dimension_numbers<[2], [1], [1], [2], [0, 0, 0, 1, 1, 2], [0], [0]>} : vector<4x8x8xf32>, vector<4x8x8xf32>, vector<4x8x8xf32> -> vector<4x8x8xf32>
    "tpu.trace_stop"() : () -> ()
    %46 = tpu.transpose %45, [1, 0, 2] : vector<4x8x8xf32> -> vector<8x4x8xf32>
    %47 = vector.shape_cast %46 : vector<8x4x8xf32> to vector<8x32xf32>
    %c0_29 = arith.constant 0 : index
    %c0_30 = arith.constant 0 : index
    %c0_31 = arith.constant 0 : index
    %48 = vector.load %arg9[%c0_29, %c0_30, %c0_31] : memref<2x32x32xf32, #tpu.memory_space<vmem>>, vector<1x32x32xf32>
    %49 = vector.shape_cast %48 : vector<1x32x32xf32> to vector<32x32xf32>
    %cst_32 = arith.constant dense<0.000000e+00> : vector<8x32xf32>
    %50 = tpu.matmul %47, %49, %cst_32 {dimension_numbers = #tpu.dot_dimension_numbers<[1], [0], [0], [1], [0, 0, 1, 1], [], []>} : vector<8x32xf32>, vector<32x32xf32>, vector<8x32xf32> -> vector<8x32xf32>
    %c0_33 = arith.constant 0 : index
    %c0_34 = arith.constant 0 : index
    %c0_35 = arith.constant 0 : index
    %51 = vector.load %arg10[%c0_33, %c0_34, %c0_35] : memref<2x1x32xf32, #tpu.memory_space<vmem>>, vector<1x1x32xf32>
    %52 = vector.shape_cast %51 : vector<1x1x32xf32> to vector<1x32xf32>
    %53 = vector.broadcast %52 : vector<1x32xf32> to vector<8x32xf32>
    %54 = arith.addf %50, %53 : vector<8x32xf32>
    %55 = arith.addf %1, %54 : vector<8x32xf32>
    %c0_36 = arith.constant 0 : index
    %c0_37 = arith.constant 0 : index
    %c0_38 = arith.constant 0 : index
    %56 = vector.load %arg11[%c0_36, %c0_37, %c0_38] : memref<2x1x32xf32, #tpu.memory_space<vmem>>, vector<1x1x32xf32>
    %57 = vector.shape_cast %56 : vector<1x1x32xf32> to vector<1x32xf32>
    %c0_39 = arith.constant 0 : index
    %c0_40 = arith.constant 0 : index
    %c0_41 = arith.constant 0 : index
    %58 = vector.load %arg12[%c0_39, %c0_40, %c0_41] : memref<2x1x32xf32, #tpu.memory_space<vmem>>, vector<1x1x32xf32>
    %59 = vector.shape_cast %58 : vector<1x1x32xf32> to vector<1x32xf32>
    %cst_42 = arith.constant dense<0.000000e+00> : vector<8xf32>
    %60 = vector.multi_reduction <add>, %55, %cst_42 [1] : vector<8x32xf32> to vector<8xf32>
    %61 = vector.shape_cast %60 : vector<8xf32> to vector<8x1xf32>
    %cst_43 = arith.constant 3.200000e+01 : f32
    %62 = vector.broadcast %cst_43 : f32 to vector<8x1xf32>
    %63 = arith.divf %61, %62 : vector<8x1xf32>
    %64 = vector.broadcast %63 : vector<8x1xf32> to vector<8x32xf32>
    %65 = arith.subf %55, %64 : vector<8x32xf32>
    %66 = arith.mulf %65, %65 : vector<8x32xf32>
    %cst_44 = arith.constant dense<0.000000e+00> : vector<8xf32>
    %67 = vector.multi_reduction <add>, %66, %cst_44 [1] : vector<8x32xf32> to vector<8xf32>
    %68 = vector.shape_cast %67 : vector<8xf32> to vector<8x1xf32>
    %cst_45 = arith.constant 3.200000e+01 : f32
    %69 = vector.broadcast %cst_45 : f32 to vector<8x1xf32>
    %70 = arith.divf %68, %69 : vector<8x1xf32>
    %71 = vector.broadcast %63 : vector<8x1xf32> to vector<8x32xf32>
    %72 = arith.subf %55, %71 : vector<8x32xf32>
    %cst_46 = arith.constant 9.99999974E-6 : f32
    %73 = vector.broadcast %cst_46 : f32 to vector<8x1xf32>
    %74 = arith.addf %70, %73 : vector<8x1xf32>
    %75 = math.rsqrt %74 : vector<8x1xf32>
    %76 = vector.broadcast %75 : vector<8x1xf32> to vector<8x32xf32>
    %77 = arith.mulf %72, %76 : vector<8x32xf32>
    %78 = vector.broadcast %57 : vector<1x32xf32> to vector<8x32xf32>
    %79 = arith.mulf %77, %78 : vector<8x32xf32>
    %80 = vector.broadcast %59 : vector<1x32xf32> to vector<8x32xf32>
    %81 = arith.addf %79, %80 : vector<8x32xf32>
    %82 = arith.addf %81, %3 : vector<8x32xf32>
    %c0_47 = arith.constant 0 : index
    %c0_48 = arith.constant 0 : index
    %c0_49 = arith.constant 0 : index
    %83 = vector.load %arg13[%c0_47, %c0_48, %c0_49] : memref<2x32x32xf32, #tpu.memory_space<vmem>>, vector<1x32x32xf32>
    %84 = vector.shape_cast %83 : vector<1x32x32xf32> to vector<32x32xf32>
    %cst_50 = arith.constant dense<0.000000e+00> : vector<8x32xf32>
    %85 = tpu.matmul %82, %84, %cst_50 {dimension_numbers = #tpu.dot_dimension_numbers<[1], [0], [0], [1], [0, 0, 1, 1], [], []>} : vector<8x32xf32>, vector<32x32xf32>, vector<8x32xf32> -> vector<8x32xf32>
    %c0_51 = arith.constant 0 : index
    %c0_52 = arith.constant 0 : index
    %c0_53 = arith.constant 0 : index
    %86 = vector.load %arg14[%c0_51, %c0_52, %c0_53] : memref<2x1x32xf32, #tpu.memory_space<vmem>>, vector<1x1x32xf32>
    %87 = vector.shape_cast %86 : vector<1x1x32xf32> to vector<1x32xf32>
    %88 = vector.broadcast %87 : vector<1x32xf32> to vector<8x32xf32>
    %89 = arith.addf %85, %88 : vector<8x32xf32>
    %c0_54 = arith.constant 0 : index
    %c0_55 = arith.constant 0 : index
    %c0_56 = arith.constant 0 : index
    %90 = vector.load %arg15[%c0_54, %c0_55, %c0_56] : memref<2x32x32xf32, #tpu.memory_space<vmem>>, vector<1x32x32xf32>
    %91 = vector.shape_cast %90 : vector<1x32x32xf32> to vector<32x32xf32>
    %cst_57 = arith.constant dense<0.000000e+00> : vector<6x32xf32>
    %92 = tpu.matmul %8, %91, %cst_57 {dimension_numbers = #tpu.dot_dimension_numbers<[1], [0], [0], [1], [0, 0, 1, 1], [], []>} : vector<6x32xf32>, vector<32x32xf32>, vector<6x32xf32> -> vector<6x32xf32>
    %c0_58 = arith.constant 0 : index
    %c0_59 = arith.constant 0 : index
    %c0_60 = arith.constant 0 : index
    %93 = vector.load %arg16[%c0_58, %c0_59, %c0_60] : memref<2x1x32xf32, #tpu.memory_space<vmem>>, vector<1x1x32xf32>
    %94 = vector.shape_cast %93 : vector<1x1x32xf32> to vector<1x32xf32>
    %95 = vector.broadcast %94 : vector<1x32xf32> to vector<6x32xf32>
    %96 = arith.addf %92, %95 : vector<6x32xf32>
    %c0_61 = arith.constant 0 : index
    %c0_62 = arith.constant 0 : index
    %c0_63 = arith.constant 0 : index
    %97 = vector.load %arg17[%c0_61, %c0_62, %c0_63] : memref<2x32x32xf32, #tpu.memory_space<vmem>>, vector<1x32x32xf32>
    %98 = vector.shape_cast %97 : vector<1x32x32xf32> to vector<32x32xf32>
    %cst_64 = arith.constant dense<0.000000e+00> : vector<6x32xf32>
    %99 = tpu.matmul %5, %98, %cst_64 {dimension_numbers = #tpu.dot_dimension_numbers<[1], [0], [0], [1], [0, 0, 1, 1], [], []>} : vector<6x32xf32>, vector<32x32xf32>, vector<6x32xf32> -> vector<6x32xf32>
    %c0_65 = arith.constant 0 : index
    %c0_66 = arith.constant 0 : index
    %c0_67 = arith.constant 0 : index
    %100 = vector.load %arg18[%c0_65, %c0_66, %c0_67] : memref<2x1x32xf32, #tpu.memory_space<vmem>>, vector<1x1x32xf32>
    %101 = vector.shape_cast %100 : vector<1x1x32xf32> to vector<1x32xf32>
    %102 = vector.broadcast %101 : vector<1x32xf32> to vector<6x32xf32>
    %103 = arith.addf %99, %102 : vector<6x32xf32>
    %104 = vector.shape_cast %89 : vector<8x32xf32> to vector<8x4x8xf32>
    %105 = tpu.transpose %104, [1, 0, 2] : vector<8x4x8xf32> -> vector<4x8x8xf32>
    %106 = vector.shape_cast %96 : vector<6x32xf32> to vector<6x4x8xf32>
    %107 = tpu.transpose %106, [1, 0, 2] : vector<6x4x8xf32> -> vector<4x6x8xf32>
    %108 = vector.shape_cast %103 : vector<6x32xf32> to vector<6x4x8xf32>
    %109 = tpu.transpose %108, [1, 0, 2] : vector<6x4x8xf32> -> vector<4x6x8xf32>
    "tpu.trace_start"() <{level = 10 : i32, message = "hqd,hkd->hqk"}> : () -> ()
    %cst_68 = arith.constant dense<0.000000e+00> : vector<4x8x6xf32>
    %110 = tpu.matmul %105, %107, %cst_68 {dimension_numbers = #tpu.dot_dimension_numbers<[2], [2], [1], [1], [0, 0, 0, 1, 1, 1], [0], [0]>} : vector<4x8x8xf32>, vector<4x6x8xf32>, vector<4x8x6xf32> -> vector<4x8x6xf32>
    "tpu.trace_stop"() : () -> ()
    %cst_69 = arith.constant 0.353553385 : f32
    %111 = vector.broadcast %cst_69 : f32 to vector<4x8x6xf32>
    %112 = arith.mulf %110, %111 : vector<4x8x6xf32>
    %cst_70 = arith.constant dense<0xFF800000> : vector<4x8xf32>
    %113 = vector.multi_reduction <maximumf>, %112, %cst_70 [2] : vector<4x8x6xf32> to vector<4x8xf32>
    %114 = vector.shape_cast %113 : vector<4x8xf32> to vector<4x8x1xf32>
    %115 = vector.broadcast %114 : vector<4x8x1xf32> to vector<4x8x6xf32>
    %116 = arith.subf %112, %115 : vector<4x8x6xf32>
    %117 = math.exp %116 : vector<4x8x6xf32>
    %cst_71 = arith.constant dense<0.000000e+00> : vector<4x8xf32>
    %118 = vector.multi_reduction <add>, %117, %cst_71 [2] : vector<4x8x6xf32> to vector<4x8xf32>
    %119 = vector.shape_cast %118 : vector<4x8xf32> to vector<4x8x1xf32>
    %120 = tpu.reciprocal %119 : vector<4x8x1xf32> -> vector<4x8x1xf32>
    %121 = vector.broadcast %120 : vector<4x8x1xf32> to vector<4x8x6xf32>
    %122 = arith.mulf %117, %121 : vector<4x8x6xf32>
    "tpu.trace_start"() <{level = 10 : i32, message = "hqk,hkd->hqd"}> : () -> ()
    %cst_72 = arith.constant dense<0.000000e+00> : vector<4x8x8xf32>
    %123 = tpu.matmul %122, %109, %cst_72 {dimension_numbers = #tpu.dot_dimension_numbers<[2], [1], [1], [2], [0, 0, 0, 1, 1, 2], [0], [0]>} : vector<4x8x6xf32>, vector<4x6x8xf32>, vector<4x8x8xf32> -> vector<4x8x8xf32>
    "tpu.trace_stop"() : () -> ()
    %124 = tpu.transpose %123, [1, 0, 2] : vector<4x8x8xf32> -> vector<8x4x8xf32>
    %125 = vector.shape_cast %124 : vector<8x4x8xf32> to vector<8x32xf32>
    %c0_73 = arith.constant 0 : index
    %c0_74 = arith.constant 0 : index
    %c0_75 = arith.constant 0 : index
    %126 = vector.load %arg19[%c0_73, %c0_74, %c0_75] : memref<2x32x32xf32, #tpu.memory_space<vmem>>, vector<1x32x32xf32>
    %127 = vector.shape_cast %126 : vector<1x32x32xf32> to vector<32x32xf32>
    %cst_76 = arith.constant dense<0.000000e+00> : vector<8x32xf32>
    %128 = tpu.matmul %125, %127, %cst_76 {dimension_numbers = #tpu.dot_dimension_numbers<[1], [0], [0], [1], [0, 0, 1, 1], [], []>} : vector<8x32xf32>, vector<32x32xf32>, vector<8x32xf32> -> vector<8x32xf32>
    %c0_77 = arith.constant 0 : index
    %c0_78 = arith.constant 0 : index
    %c0_79 = arith.constant 0 : index
    %129 = vector.load %arg20[%c0_77, %c0_78, %c0_79] : memref<2x1x32xf32, #tpu.memory_space<vmem>>, vector<1x1x32xf32>
    %130 = vector.shape_cast %129 : vector<1x1x32xf32> to vector<1x32xf32>
    %131 = vector.broadcast %130 : vector<1x32xf32> to vector<8x32xf32>
    %132 = arith.addf %128, %131 : vector<8x32xf32>
    %133 = arith.addf %81, %132 : vector<8x32xf32>
    %c0_80 = arith.constant 0 : index
    %c0_81 = arith.constant 0 : index
    %c0_82 = arith.constant 0 : index
    %134 = vector.load %arg21[%c0_80, %c0_81, %c0_82] : memref<2x1x32xf32, #tpu.memory_space<vmem>>, vector<1x1x32xf32>
    %135 = vector.shape_cast %134 : vector<1x1x32xf32> to vector<1x32xf32>
    %c0_83 = arith.constant 0 : index
    %c0_84 = arith.constant 0 : index
    %c0_85 = arith.constant 0 : index
    %136 = vector.load %arg22[%c0_83, %c0_84, %c0_85] : memref<2x1x32xf32, #tpu.memory_space<vmem>>, vector<1x1x32xf32>
    %137 = vector.shape_cast %136 : vector<1x1x32xf32> to vector<1x32xf32>
    %cst_86 = arith.constant dense<0.000000e+00> : vector<8xf32>
    %138 = vector.multi_reduction <add>, %133, %cst_86 [1] : vector<8x32xf32> to vector<8xf32>
    %139 = vector.shape_cast %138 : vector<8xf32> to vector<8x1xf32>
    %cst_87 = arith.constant 3.200000e+01 : f32
    %140 = vector.broadcast %cst_87 : f32 to vector<8x1xf32>
    %141 = arith.divf %139, %140 : vector<8x1xf32>
    %142 = vector.broadcast %141 : vector<8x1xf32> to vector<8x32xf32>
    %143 = arith.subf %133, %142 : vector<8x32xf32>
    %144 = arith.mulf %143, %143 : vector<8x32xf32>
    %cst_88 = arith.constant dense<0.000000e+00> : vector<8xf32>
    %145 = vector.multi_reduction <add>, %144, %cst_88 [1] : vector<8x32xf32> to vector<8xf32>
    %146 = vector.shape_cast %145 : vector<8xf32> to vector<8x1xf32>
    %cst_89 = arith.constant 3.200000e+01 : f32
    %147 = vector.broadcast %cst_89 : f32 to vector<8x1xf32>
    %148 = arith.divf %146, %147 : vector<8x1xf32>
    %149 = vector.broadcast %141 : vector<8x1xf32> to vector<8x32xf32>
    %150 = arith.subf %133, %149 : vector<8x32xf32>
    %cst_90 = arith.constant 9.99999974E-6 : f32
    %151 = vector.broadcast %cst_90 : f32 to vector<8x1xf32>
    %152 = arith.addf %148, %151 : vector<8x1xf32>
    %153 = math.rsqrt %152 : vector<8x1xf32>
    %154 = vector.broadcast %153 : vector<8x1xf32> to vector<8x32xf32>
    %155 = arith.mulf %150, %154 : vector<8x32xf32>
    %156 = vector.broadcast %135 : vector<1x32xf32> to vector<8x32xf32>
    %157 = arith.mulf %155, %156 : vector<8x32xf32>
    %158 = vector.broadcast %137 : vector<1x32xf32> to vector<8x32xf32>
    %159 = arith.addf %157, %158 : vector<8x32xf32>
    %c0_91 = arith.constant 0 : index
    %c0_92 = arith.constant 0 : index
    %c0_93 = arith.constant 0 : index
    %160 = vector.load %arg23[%c0_91, %c0_92, %c0_93] : memref<2x32x64xf32, #tpu.memory_space<vmem>>, vector<1x32x64xf32>
    %161 = vector.shape_cast %160 : vector<1x32x64xf32> to vector<32x64xf32>
    %cst_94 = arith.constant dense<0.000000e+00> : vector<8x64xf32>
    %162 = tpu.matmul %159, %161, %cst_94 {dimension_numbers = #tpu.dot_dimension_numbers<[1], [0], [0], [1], [0, 0, 1, 1], [], []>} : vector<8x32xf32>, vector<32x64xf32>, vector<8x64xf32> -> vector<8x64xf32>
    %c0_95 = arith.constant 0 : index
    %c0_96 = arith.constant 0 : index
    %c0_97 = arith.constant 0 : index
    %163 = vector.load %arg24[%c0_95, %c0_96, %c0_97] : memref<2x1x64xf32, #tpu.memory_space<vmem>>, vector<1x1x64xf32>
    %164 = vector.shape_cast %163 : vector<1x1x64xf32> to vector<1x64xf32>
    %165 = vector.broadcast %164 : vector<1x64xf32> to vector<8x64xf32>
    %166 = arith.addf %162, %165 : vector<8x64xf32>
    %cst_98 = arith.constant 0.000000e+00 : f32
    %167 = vector.broadcast %cst_98 : f32 to vector<8x64xf32>
    %168 = arith.maximumf %166, %167 : vector<8x64xf32>
    %c0_99 = arith.constant 0 : index
    %c0_100 = arith.constant 0 : index
    %c0_101 = arith.constant 0 : index
    %169 = vector.load %arg25[%c0_99, %c0_100, %c0_101] : memref<2x64x32xf32, #tpu.memory_space<vmem>>, vector<1x64x32xf32>
    %170 = vector.shape_cast %169 : vector<1x64x32xf32> to vector<64x32xf32>
    %cst_102 = arith.constant dense<0.000000e+00> : vector<8x32xf32>
    %171 = tpu.matmul %168, %170, %cst_102 {dimension_numbers = #tpu.dot_dimension_numbers<[1], [0], [0], [1], [0, 0, 1, 1], [], []>} : vector<8x64xf32>, vector<64x32xf32>, vector<8x32xf32> -> vector<8x32xf32>
    %c0_103 = arith.constant 0 : index
    %c0_104 = arith.constant 0 : index
    %c0_105 = arith.constant 0 : index
    %172 = vector.load %arg26[%c0_103, %c0_104, %c0_105] : memref<2x1x32xf32, #tpu.memory_space<vmem>>, vector<1x1x32xf32>
    %173 = vector.shape_cast %172 : vector<1x1x32xf32> to vector<1x32xf32>
    %174 = vector.broadcast %173 : vector<1x32xf32> to vector<8x32xf32>
    %175 = arith.addf %171, %174 : vector<8x32xf32>
    %176 = arith.addf %159, %175 : vector<8x32xf32>
    %c0_106 = arith.constant 0 : index
    %c0_107 = arith.constant 0 : index
    %c0_108 = arith.constant 0 : index
    %177 = vector.load %arg27[%c0_106, %c0_107, %c0_108] : memref<2x1x32xf32, #tpu.memory_space<vmem>>, vector<1x1x32xf32>
    %178 = vector.shape_cast %177 : vector<1x1x32xf32> to vector<1x32xf32>
    %c0_109 = arith.constant 0 : index
    %c0_110 = arith.constant 0 : index
    %c0_111 = arith.constant 0 : index
    %179 = vector.load %arg28[%c0_109, %c0_110, %c0_111] : memref<2x1x32xf32, #tpu.memory_space<vmem>>, vector<1x1x32xf32>
    %180 = vector.shape_cast %179 : vector<1x1x32xf32> to vector<1x32xf32>
    %cst_112 = arith.constant dense<0.000000e+00> : vector<8xf32>
    %181 = vector.multi_reduction <add>, %176, %cst_112 [1] : vector<8x32xf32> to vector<8xf32>
    %182 = vector.shape_cast %181 : vector<8xf32> to vector<8x1xf32>
    %cst_113 = arith.constant 3.200000e+01 : f32
    %183 = vector.broadcast %cst_113 : f32 to vector<8x1xf32>
    %184 = arith.divf %182, %183 : vector<8x1xf32>
    %185 = vector.broadcast %184 : vector<8x1xf32> to vector<8x32xf32>
    %186 = arith.subf %176, %185 : vector<8x32xf32>
    %187 = arith.mulf %186, %186 : vector<8x32xf32>
    %cst_114 = arith.constant dense<0.000000e+00> : vector<8xf32>
    %188 = vector.multi_reduction <add>, %187, %cst_114 [1] : vector<8x32xf32> to vector<8xf32>
    %189 = vector.shape_cast %188 : vector<8xf32> to vector<8x1xf32>
    %cst_115 = arith.constant 3.200000e+01 : f32
    %190 = vector.broadcast %cst_115 : f32 to vector<8x1xf32>
    %191 = arith.divf %189, %190 : vector<8x1xf32>
    %192 = vector.broadcast %184 : vector<8x1xf32> to vector<8x32xf32>
    %193 = arith.subf %176, %192 : vector<8x32xf32>
    %cst_116 = arith.constant 9.99999974E-6 : f32
    %194 = vector.broadcast %cst_116 : f32 to vector<8x1xf32>
    %195 = arith.addf %191, %194 : vector<8x1xf32>
    %196 = math.rsqrt %195 : vector<8x1xf32>
    %197 = vector.broadcast %196 : vector<8x1xf32> to vector<8x32xf32>
    %198 = arith.mulf %193, %197 : vector<8x32xf32>
    %199 = vector.broadcast %178 : vector<1x32xf32> to vector<8x32xf32>
    %200 = arith.mulf %198, %199 : vector<8x32xf32>
    %201 = vector.broadcast %180 : vector<1x32xf32> to vector<8x32xf32>
    %202 = arith.addf %200, %201 : vector<8x32xf32>
    %203 = arith.addf %202, %3 : vector<8x32xf32>
    %c1 = arith.constant 1 : index
    %c0_117 = arith.constant 0 : index
    %c0_118 = arith.constant 0 : index
    %204 = vector.load %arg5[%c1, %c0_117, %c0_118] : memref<2x32x64xf32, #tpu.memory_space<vmem>>, vector<1x32x64xf32>
    %205 = vector.shape_cast %204 : vector<1x32x64xf32> to vector<32x64xf32>
    %cst_119 = arith.constant dense<0.000000e+00> : vector<8x64xf32>
    %206 = tpu.matmul %203, %205, %cst_119 {dimension_numbers = #tpu.dot_dimension_numbers<[1], [0], [0], [1], [0, 0, 1, 1], [], []>} : vector<8x32xf32>, vector<32x64xf32>, vector<8x64xf32> -> vector<8x64xf32>
    %c1_120 = arith.constant 1 : index
    %c0_121 = arith.constant 0 : index
    %c0_122 = arith.constant 0 : index
    %207 = vector.load %arg6[%c1_120, %c0_121, %c0_122] : memref<2x1x64xf32, #tpu.memory_space<vmem>>, vector<1x1x64xf32>
    %208 = vector.shape_cast %207 : vector<1x1x64xf32> to vector<1x64xf32>
    %209 = vector.broadcast %208 : vector<1x64xf32> to vector<8x64xf32>
    %210 = arith.addf %206, %209 : vector<8x64xf32>
    %211 = vector.extract_strided_slice %210 {offsets = [0, 0], sizes = [8, 32], strides = [1, 1]} : vector<8x64xf32> to vector<8x32xf32>
    %212 = vector.extract_strided_slice %210 {offsets = [0, 32], sizes = [8, 32], strides = [1, 1]} : vector<8x64xf32> to vector<8x32xf32>
    %c1_123 = arith.constant 1 : index
    %c0_124 = arith.constant 0 : index
    %c0_125 = arith.constant 0 : index
    %213 = vector.load %arg7[%c1_123, %c0_124, %c0_125] : memref<2x32x32xf32, #tpu.memory_space<vmem>>, vector<1x32x32xf32>
    %214 = vector.shape_cast %213 : vector<1x32x32xf32> to vector<32x32xf32>
    %cst_126 = arith.constant dense<0.000000e+00> : vector<8x32xf32>
    %215 = tpu.matmul %202, %214, %cst_126 {dimension_numbers = #tpu.dot_dimension_numbers<[1], [0], [0], [1], [0, 0, 1, 1], [], []>} : vector<8x32xf32>, vector<32x32xf32>, vector<8x32xf32> -> vector<8x32xf32>
    %c1_127 = arith.constant 1 : index
    %c0_128 = arith.constant 0 : index
    %c0_129 = arith.constant 0 : index
    %216 = vector.load %arg8[%c1_127, %c0_128, %c0_129] : memref<2x1x32xf32, #tpu.memory_space<vmem>>, vector<1x1x32xf32>
    %217 = vector.shape_cast %216 : vector<1x1x32xf32> to vector<1x32xf32>
    %218 = vector.broadcast %217 : vector<1x32xf32> to vector<8x32xf32>
    %219 = arith.addf %215, %218 : vector<8x32xf32>
    %220 = vector.shape_cast %211 : vector<8x32xf32> to vector<8x4x8xf32>
    %221 = tpu.transpose %220, [1, 0, 2] : vector<8x4x8xf32> -> vector<4x8x8xf32>
    %222 = vector.shape_cast %212 : vector<8x32xf32> to vector<8x4x8xf32>
    %223 = tpu.transpose %222, [1, 0, 2] : vector<8x4x8xf32> -> vector<4x8x8xf32>
    %224 = vector.shape_cast %219 : vector<8x32xf32> to vector<8x4x8xf32>
    %225 = tpu.transpose %224, [1, 0, 2] : vector<8x4x8xf32> -> vector<4x8x8xf32>
    "tpu.trace_start"() <{level = 10 : i32, message = "hqd,hkd->hqk"}> : () -> ()
    %cst_130 = arith.constant dense<0.000000e+00> : vector<4x8x8xf32>
    %226 = tpu.matmul %221, %223, %cst_130 {dimension_numbers = #tpu.dot_dimension_numbers<[2], [2], [1], [1], [0, 0, 0, 1, 1, 1], [0], [0]>} : vector<4x8x8xf32>, vector<4x8x8xf32>, vector<4x8x8xf32> -> vector<4x8x8xf32>
    "tpu.trace_stop"() : () -> ()
    %cst_131 = arith.constant 0.353553385 : f32
    %227 = vector.broadcast %cst_131 : f32 to vector<4x8x8xf32>
    %228 = arith.mulf %226, %227 : vector<4x8x8xf32>
    %cst_132 = arith.constant dense<0xFF800000> : vector<4x8xf32>
    %229 = vector.multi_reduction <maximumf>, %228, %cst_132 [2] : vector<4x8x8xf32> to vector<4x8xf32>
    %230 = vector.shape_cast %229 : vector<4x8xf32> to vector<4x8x1xf32>
    %231 = vector.broadcast %230 : vector<4x8x1xf32> to vector<4x8x8xf32>
    %232 = arith.subf %228, %231 : vector<4x8x8xf32>
    %233 = math.exp %232 : vector<4x8x8xf32>
    %cst_133 = arith.constant dense<0.000000e+00> : vector<4x8xf32>
    %234 = vector.multi_reduction <add>, %233, %cst_133 [2] : vector<4x8x8xf32> to vector<4x8xf32>
    %235 = vector.shape_cast %234 : vector<4x8xf32> to vector<4x8x1xf32>
    %236 = tpu.reciprocal %235 : vector<4x8x1xf32> -> vector<4x8x1xf32>
    %237 = vector.broadcast %236 : vector<4x8x1xf32> to vector<4x8x8xf32>
    %238 = arith.mulf %233, %237 : vector<4x8x8xf32>
    "tpu.trace_start"() <{level = 10 : i32, message = "hqk,hkd->hqd"}> : () -> ()
    %cst_134 = arith.constant dense<0.000000e+00> : vector<4x8x8xf32>
    %239 = tpu.matmul %238, %225, %cst_134 {dimension_numbers = #tpu.dot_dimension_numbers<[2], [1], [1], [2], [0, 0, 0, 1, 1, 2], [0], [0]>} : vector<4x8x8xf32>, vector<4x8x8xf32>, vector<4x8x8xf32> -> vector<4x8x8xf32>
    "tpu.trace_stop"() : () -> ()
    %240 = tpu.transpose %239, [1, 0, 2] : vector<4x8x8xf32> -> vector<8x4x8xf32>
    %241 = vector.shape_cast %240 : vector<8x4x8xf32> to vector<8x32xf32>
    %c1_135 = arith.constant 1 : index
    %c0_136 = arith.constant 0 : index
    %c0_137 = arith.constant 0 : index
    %242 = vector.load %arg9[%c1_135, %c0_136, %c0_137] : memref<2x32x32xf32, #tpu.memory_space<vmem>>, vector<1x32x32xf32>
    %243 = vector.shape_cast %242 : vector<1x32x32xf32> to vector<32x32xf32>
    %cst_138 = arith.constant dense<0.000000e+00> : vector<8x32xf32>
    %244 = tpu.matmul %241, %243, %cst_138 {dimension_numbers = #tpu.dot_dimension_numbers<[1], [0], [0], [1], [0, 0, 1, 1], [], []>} : vector<8x32xf32>, vector<32x32xf32>, vector<8x32xf32> -> vector<8x32xf32>
    %c1_139 = arith.constant 1 : index
    %c0_140 = arith.constant 0 : index
    %c0_141 = arith.constant 0 : index
    %245 = vector.load %arg10[%c1_139, %c0_140, %c0_141] : memref<2x1x32xf32, #tpu.memory_space<vmem>>, vector<1x1x32xf32>
    %246 = vector.shape_cast %245 : vector<1x1x32xf32> to vector<1x32xf32>
    %247 = vector.broadcast %246 : vector<1x32xf32> to vector<8x32xf32>
    %248 = arith.addf %244, %247 : vector<8x32xf32>
    %249 = arith.addf %202, %248 : vector<8x32xf32>
    %c1_142 = arith.constant 1 : index
    %c0_143 = arith.constant 0 : index
    %c0_144 = arith.constant 0 : index
    %250 = vector.load %arg11[%c1_142, %c0_143, %c0_144] : memref<2x1x32xf32, #tpu.memory_space<vmem>>, vector<1x1x32xf32>
    %251 = vector.shape_cast %250 : vector<1x1x32xf32> to vector<1x32xf32>
    %c1_145 = arith.constant 1 : index
    %c0_146 = arith.constant 0 : index
    %c0_147 = arith.constant 0 : index
    %252 = vector.load %arg12[%c1_145, %c0_146, %c0_147] : memref<2x1x32xf32, #tpu.memory_space<vmem>>, vector<1x1x32xf32>
    %253 = vector.shape_cast %252 : vector<1x1x32xf32> to vector<1x32xf32>
    %cst_148 = arith.constant dense<0.000000e+00> : vector<8xf32>
    %254 = vector.multi_reduction <add>, %249, %cst_148 [1] : vector<8x32xf32> to vector<8xf32>
    %255 = vector.shape_cast %254 : vector<8xf32> to vector<8x1xf32>
    %cst_149 = arith.constant 3.200000e+01 : f32
    %256 = vector.broadcast %cst_149 : f32 to vector<8x1xf32>
    %257 = arith.divf %255, %256 : vector<8x1xf32>
    %258 = vector.broadcast %257 : vector<8x1xf32> to vector<8x32xf32>
    %259 = arith.subf %249, %258 : vector<8x32xf32>
    %260 = arith.mulf %259, %259 : vector<8x32xf32>
    %cst_150 = arith.constant dense<0.000000e+00> : vector<8xf32>
    %261 = vector.multi_reduction <add>, %260, %cst_150 [1] : vector<8x32xf32> to vector<8xf32>
    %262 = vector.shape_cast %261 : vector<8xf32> to vector<8x1xf32>
    %cst_151 = arith.constant 3.200000e+01 : f32
    %263 = vector.broadcast %cst_151 : f32 to vector<8x1xf32>
    %264 = arith.divf %262, %263 : vector<8x1xf32>
    %265 = vector.broadcast %257 : vector<8x1xf32> to vector<8x32xf32>
    %266 = arith.subf %249, %265 : vector<8x32xf32>
    %cst_152 = arith.constant 9.99999974E-6 : f32
    %267 = vector.broadcast %cst_152 : f32 to vector<8x1xf32>
    %268 = arith.addf %264, %267 : vector<8x1xf32>
    %269 = math.rsqrt %268 : vector<8x1xf32>
    %270 = vector.broadcast %269 : vector<8x1xf32> to vector<8x32xf32>
    %271 = arith.mulf %266, %270 : vector<8x32xf32>
    %272 = vector.broadcast %251 : vector<1x32xf32> to vector<8x32xf32>
    %273 = arith.mulf %271, %272 : vector<8x32xf32>
    %274 = vector.broadcast %253 : vector<1x32xf32> to vector<8x32xf32>
    %275 = arith.addf %273, %274 : vector<8x32xf32>
    %276 = arith.addf %275, %3 : vector<8x32xf32>
    %c1_153 = arith.constant 1 : index
    %c0_154 = arith.constant 0 : index
    %c0_155 = arith.constant 0 : index
    %277 = vector.load %arg13[%c1_153, %c0_154, %c0_155] : memref<2x32x32xf32, #tpu.memory_space<vmem>>, vector<1x32x32xf32>
    %278 = vector.shape_cast %277 : vector<1x32x32xf32> to vector<32x32xf32>
    %cst_156 = arith.constant dense<0.000000e+00> : vector<8x32xf32>
    %279 = tpu.matmul %276, %278, %cst_156 {dimension_numbers = #tpu.dot_dimension_numbers<[1], [0], [0], [1], [0, 0, 1, 1], [], []>} : vector<8x32xf32>, vector<32x32xf32>, vector<8x32xf32> -> vector<8x32xf32>
    %c1_157 = arith.constant 1 : index
    %c0_158 = arith.constant 0 : index
    %c0_159 = arith.constant 0 : index
    %280 = vector.load %arg14[%c1_157, %c0_158, %c0_159] : memref<2x1x32xf32, #tpu.memory_space<vmem>>, vector<1x1x32xf32>
    %281 = vector.shape_cast %280 : vector<1x1x32xf32> to vector<1x32xf32>
    %282 = vector.broadcast %281 : vector<1x32xf32> to vector<8x32xf32>
    %283 = arith.addf %279, %282 : vector<8x32xf32>
    %c1_160 = arith.constant 1 : index
    %c0_161 = arith.constant 0 : index
    %c0_162 = arith.constant 0 : index
    %284 = vector.load %arg15[%c1_160, %c0_161, %c0_162] : memref<2x32x32xf32, #tpu.memory_space<vmem>>, vector<1x32x32xf32>
    %285 = vector.shape_cast %284 : vector<1x32x32xf32> to vector<32x32xf32>
    %cst_163 = arith.constant dense<0.000000e+00> : vector<6x32xf32>
    %286 = tpu.matmul %8, %285, %cst_163 {dimension_numbers = #tpu.dot_dimension_numbers<[1], [0], [0], [1], [0, 0, 1, 1], [], []>} : vector<6x32xf32>, vector<32x32xf32>, vector<6x32xf32> -> vector<6x32xf32>
    %c1_164 = arith.constant 1 : index
    %c0_165 = arith.constant 0 : index
    %c0_166 = arith.constant 0 : index
    %287 = vector.load %arg16[%c1_164, %c0_165, %c0_166] : memref<2x1x32xf32, #tpu.memory_space<vmem>>, vector<1x1x32xf32>
    %288 = vector.shape_cast %287 : vector<1x1x32xf32> to vector<1x32xf32>
    %289 = vector.broadcast %288 : vector<1x32xf32> to vector<6x32xf32>
    %290 = arith.addf %286, %289 : vector<6x32xf32>
    %c1_167 = arith.constant 1 : index
    %c0_168 = arith.constant 0 : index
    %c0_169 = arith.constant 0 : index
    %291 = vector.load %arg17[%c1_167, %c0_168, %c0_169] : memref<2x32x32xf32, #tpu.memory_space<vmem>>, vector<1x32x32xf32>
    %292 = vector.shape_cast %291 : vector<1x32x32xf32> to vector<32x32xf32>
    %cst_170 = arith.constant dense<0.000000e+00> : vector<6x32xf32>
    %293 = tpu.matmul %5, %292, %cst_170 {dimension_numbers = #tpu.dot_dimension_numbers<[1], [0], [0], [1], [0, 0, 1, 1], [], []>} : vector<6x32xf32>, vector<32x32xf32>, vector<6x32xf32> -> vector<6x32xf32>
    %c1_171 = arith.constant 1 : index
    %c0_172 = arith.constant 0 : index
    %c0_173 = arith.constant 0 : index
    %294 = vector.load %arg18[%c1_171, %c0_172, %c0_173] : memref<2x1x32xf32, #tpu.memory_space<vmem>>, vector<1x1x32xf32>
    %295 = vector.shape_cast %294 : vector<1x1x32xf32> to vector<1x32xf32>
    %296 = vector.broadcast %295 : vector<1x32xf32> to vector<6x32xf32>
    %297 = arith.addf %293, %296 : vector<6x32xf32>
    %298 = vector.shape_cast %283 : vector<8x32xf32> to vector<8x4x8xf32>
    %299 = tpu.transpose %298, [1, 0, 2] : vector<8x4x8xf32> -> vector<4x8x8xf32>
    %300 = vector.shape_cast %290 : vector<6x32xf32> to vector<6x4x8xf32>
    %301 = tpu.transpose %300, [1, 0, 2] : vector<6x4x8xf32> -> vector<4x6x8xf32>
    %302 = vector.shape_cast %297 : vector<6x32xf32> to vector<6x4x8xf32>
    %303 = tpu.transpose %302, [1, 0, 2] : vector<6x4x8xf32> -> vector<4x6x8xf32>
    "tpu.trace_start"() <{level = 10 : i32, message = "hqd,hkd->hqk"}> : () -> ()
    %cst_174 = arith.constant dense<0.000000e+00> : vector<4x8x6xf32>
    %304 = tpu.matmul %299, %301, %cst_174 {dimension_numbers = #tpu.dot_dimension_numbers<[2], [2], [1], [1], [0, 0, 0, 1, 1, 1], [0], [0]>} : vector<4x8x8xf32>, vector<4x6x8xf32>, vector<4x8x6xf32> -> vector<4x8x6xf32>
    "tpu.trace_stop"() : () -> ()
    %cst_175 = arith.constant 0.353553385 : f32
    %305 = vector.broadcast %cst_175 : f32 to vector<4x8x6xf32>
    %306 = arith.mulf %304, %305 : vector<4x8x6xf32>
    %cst_176 = arith.constant dense<0xFF800000> : vector<4x8xf32>
    %307 = vector.multi_reduction <maximumf>, %306, %cst_176 [2] : vector<4x8x6xf32> to vector<4x8xf32>
    %308 = vector.shape_cast %307 : vector<4x8xf32> to vector<4x8x1xf32>
    %309 = vector.broadcast %308 : vector<4x8x1xf32> to vector<4x8x6xf32>
    %310 = arith.subf %306, %309 : vector<4x8x6xf32>
    %311 = math.exp %310 : vector<4x8x6xf32>
    %cst_177 = arith.constant dense<0.000000e+00> : vector<4x8xf32>
    %312 = vector.multi_reduction <add>, %311, %cst_177 [2] : vector<4x8x6xf32> to vector<4x8xf32>
    %313 = vector.shape_cast %312 : vector<4x8xf32> to vector<4x8x1xf32>
    %314 = tpu.reciprocal %313 : vector<4x8x1xf32> -> vector<4x8x1xf32>
    %315 = vector.broadcast %314 : vector<4x8x1xf32> to vector<4x8x6xf32>
    %316 = arith.mulf %311, %315 : vector<4x8x6xf32>
    "tpu.trace_start"() <{level = 10 : i32, message = "hqk,hkd->hqd"}> : () -> ()
    %cst_178 = arith.constant dense<0.000000e+00> : vector<4x8x8xf32>
    %317 = tpu.matmul %316, %303, %cst_178 {dimension_numbers = #tpu.dot_dimension_numbers<[2], [1], [1], [2], [0, 0, 0, 1, 1, 2], [0], [0]>} : vector<4x8x6xf32>, vector<4x6x8xf32>, vector<4x8x8xf32> -> vector<4x8x8xf32>
    "tpu.trace_stop"() : () -> ()
    %318 = tpu.transpose %317, [1, 0, 2] : vector<4x8x8xf32> -> vector<8x4x8xf32>
    %319 = vector.shape_cast %318 : vector<8x4x8xf32> to vector<8x32xf32>
    %c1_179 = arith.constant 1 : index
    %c0_180 = arith.constant 0 : index
    %c0_181 = arith.constant 0 : index
    %320 = vector.load %arg19[%c1_179, %c0_180, %c0_181] : memref<2x32x32xf32, #tpu.memory_space<vmem>>, vector<1x32x32xf32>
    %321 = vector.shape_cast %320 : vector<1x32x32xf32> to vector<32x32xf32>
    %cst_182 = arith.constant dense<0.000000e+00> : vector<8x32xf32>
    %322 = tpu.matmul %319, %321, %cst_182 {dimension_numbers = #tpu.dot_dimension_numbers<[1], [0], [0], [1], [0, 0, 1, 1], [], []>} : vector<8x32xf32>, vector<32x32xf32>, vector<8x32xf32> -> vector<8x32xf32>
    %c1_183 = arith.constant 1 : index
    %c0_184 = arith.constant 0 : index
    %c0_185 = arith.constant 0 : index
    %323 = vector.load %arg20[%c1_183, %c0_184, %c0_185] : memref<2x1x32xf32, #tpu.memory_space<vmem>>, vector<1x1x32xf32>
    %324 = vector.shape_cast %323 : vector<1x1x32xf32> to vector<1x32xf32>
    %325 = vector.broadcast %324 : vector<1x32xf32> to vector<8x32xf32>
    %326 = arith.addf %322, %325 : vector<8x32xf32>
    %327 = arith.addf %275, %326 : vector<8x32xf32>
    %c1_186 = arith.constant 1 : index
    %c0_187 = arith.constant 0 : index
    %c0_188 = arith.constant 0 : index
    %328 = vector.load %arg21[%c1_186, %c0_187, %c0_188] : memref<2x1x32xf32, #tpu.memory_space<vmem>>, vector<1x1x32xf32>
    %329 = vector.shape_cast %328 : vector<1x1x32xf32> to vector<1x32xf32>
    %c1_189 = arith.constant 1 : index
    %c0_190 = arith.constant 0 : index
    %c0_191 = arith.constant 0 : index
    %330 = vector.load %arg22[%c1_189, %c0_190, %c0_191] : memref<2x1x32xf32, #tpu.memory_space<vmem>>, vector<1x1x32xf32>
    %331 = vector.shape_cast %330 : vector<1x1x32xf32> to vector<1x32xf32>
    %cst_192 = arith.constant dense<0.000000e+00> : vector<8xf32>
    %332 = vector.multi_reduction <add>, %327, %cst_192 [1] : vector<8x32xf32> to vector<8xf32>
    %333 = vector.shape_cast %332 : vector<8xf32> to vector<8x1xf32>
    %cst_193 = arith.constant 3.200000e+01 : f32
    %334 = vector.broadcast %cst_193 : f32 to vector<8x1xf32>
    %335 = arith.divf %333, %334 : vector<8x1xf32>
    %336 = vector.broadcast %335 : vector<8x1xf32> to vector<8x32xf32>
    %337 = arith.subf %327, %336 : vector<8x32xf32>
    %338 = arith.mulf %337, %337 : vector<8x32xf32>
    %cst_194 = arith.constant dense<0.000000e+00> : vector<8xf32>
    %339 = vector.multi_reduction <add>, %338, %cst_194 [1] : vector<8x32xf32> to vector<8xf32>
    %340 = vector.shape_cast %339 : vector<8xf32> to vector<8x1xf32>
    %cst_195 = arith.constant 3.200000e+01 : f32
    %341 = vector.broadcast %cst_195 : f32 to vector<8x1xf32>
    %342 = arith.divf %340, %341 : vector<8x1xf32>
    %343 = vector.broadcast %335 : vector<8x1xf32> to vector<8x32xf32>
    %344 = arith.subf %327, %343 : vector<8x32xf32>
    %cst_196 = arith.constant 9.99999974E-6 : f32
    %345 = vector.broadcast %cst_196 : f32 to vector<8x1xf32>
    %346 = arith.addf %342, %345 : vector<8x1xf32>
    %347 = math.rsqrt %346 : vector<8x1xf32>
    %348 = vector.broadcast %347 : vector<8x1xf32> to vector<8x32xf32>
    %349 = arith.mulf %344, %348 : vector<8x32xf32>
    %350 = vector.broadcast %329 : vector<1x32xf32> to vector<8x32xf32>
    %351 = arith.mulf %349, %350 : vector<8x32xf32>
    %352 = vector.broadcast %331 : vector<1x32xf32> to vector<8x32xf32>
    %353 = arith.addf %351, %352 : vector<8x32xf32>
    %c1_197 = arith.constant 1 : index
    %c0_198 = arith.constant 0 : index
    %c0_199 = arith.constant 0 : index
    %354 = vector.load %arg23[%c1_197, %c0_198, %c0_199] : memref<2x32x64xf32, #tpu.memory_space<vmem>>, vector<1x32x64xf32>
    %355 = vector.shape_cast %354 : vector<1x32x64xf32> to vector<32x64xf32>
    %cst_200 = arith.constant dense<0.000000e+00> : vector<8x64xf32>
    %356 = tpu.matmul %353, %355, %cst_200 {dimension_numbers = #tpu.dot_dimension_numbers<[1], [0], [0], [1], [0, 0, 1, 1], [], []>} : vector<8x32xf32>, vector<32x64xf32>, vector<8x64xf32> -> vector<8x64xf32>
    %c1_201 = arith.constant 1 : index
    %c0_202 = arith.constant 0 : index
    %c0_203 = arith.constant 0 : index
    %357 = vector.load %arg24[%c1_201, %c0_202, %c0_203] : memref<2x1x64xf32, #tpu.memory_space<vmem>>, vector<1x1x64xf32>
    %358 = vector.shape_cast %357 : vector<1x1x64xf32> to vector<1x64xf32>
    %359 = vector.broadcast %358 : vector<1x64xf32> to vector<8x64xf32>
    %360 = arith.addf %356, %359 : vector<8x64xf32>
    %cst_204 = arith.constant 0.000000e+00 : f32
    %361 = vector.broadcast %cst_204 : f32 to vector<8x64xf32>
    %362 = arith.maximumf %360, %361 : vector<8x64xf32>
    %c1_205 = arith.constant 1 : index
    %c0_206 = arith.constant 0 : index
    %c0_207 = arith.constant 0 : index
    %363 = vector.load %arg25[%c1_205, %c0_206, %c0_207] : memref<2x64x32xf32, #tpu.memory_space<vmem>>, vector<1x64x32xf32>
    %364 = vector.shape_cast %363 : vector<1x64x32xf32> to vector<64x32xf32>
    %cst_208 = arith.constant dense<0.000000e+00> : vector<8x32xf32>
    %365 = tpu.matmul %362, %364, %cst_208 {dimension_numbers = #tpu.dot_dimension_numbers<[1], [0], [0], [1], [0, 0, 1, 1], [], []>} : vector<8x64xf32>, vector<64x32xf32>, vector<8x32xf32> -> vector<8x32xf32>
    %c1_209 = arith.constant 1 : index
    %c0_210 = arith.constant 0 : index
    %c0_211 = arith.constant 0 : index
    %366 = vector.load %arg26[%c1_209, %c0_210, %c0_211] : memref<2x1x32xf32, #tpu.memory_space<vmem>>, vector<1x1x32xf32>
    %367 = vector.shape_cast %366 : vector<1x1x32xf32> to vector<1x32xf32>
    %368 = vector.broadcast %367 : vector<1x32xf32> to vector<8x32xf32>
    %369 = arith.addf %365, %368 : vector<8x32xf32>
    %370 = arith.addf %353, %369 : vector<8x32xf32>
    %c1_212 = arith.constant 1 : index
    %c0_213 = arith.constant 0 : index
    %c0_214 = arith.constant 0 : index
    %371 = vector.load %arg27[%c1_212, %c0_213, %c0_214] : memref<2x1x32xf32, #tpu.memory_space<vmem>>, vector<1x1x32xf32>
    %372 = vector.shape_cast %371 : vector<1x1x32xf32> to vector<1x32xf32>
    %c1_215 = arith.constant 1 : index
    %c0_216 = arith.constant 0 : index
    %c0_217 = arith.constant 0 : index
    %373 = vector.load %arg28[%c1_215, %c0_216, %c0_217] : memref<2x1x32xf32, #tpu.memory_space<vmem>>, vector<1x1x32xf32>
    %374 = vector.shape_cast %373 : vector<1x1x32xf32> to vector<1x32xf32>
    %cst_218 = arith.constant dense<0.000000e+00> : vector<8xf32>
    %375 = vector.multi_reduction <add>, %370, %cst_218 [1] : vector<8x32xf32> to vector<8xf32>
    %376 = vector.shape_cast %375 : vector<8xf32> to vector<8x1xf32>
    %cst_219 = arith.constant 3.200000e+01 : f32
    %377 = vector.broadcast %cst_219 : f32 to vector<8x1xf32>
    %378 = arith.divf %376, %377 : vector<8x1xf32>
    %379 = vector.broadcast %378 : vector<8x1xf32> to vector<8x32xf32>
    %380 = arith.subf %370, %379 : vector<8x32xf32>
    %381 = arith.mulf %380, %380 : vector<8x32xf32>
    %cst_220 = arith.constant dense<0.000000e+00> : vector<8xf32>
    %382 = vector.multi_reduction <add>, %381, %cst_220 [1] : vector<8x32xf32> to vector<8xf32>
    %383 = vector.shape_cast %382 : vector<8xf32> to vector<8x1xf32>
    %cst_221 = arith.constant 3.200000e+01 : f32
    %384 = vector.broadcast %cst_221 : f32 to vector<8x1xf32>
    %385 = arith.divf %383, %384 : vector<8x1xf32>
    %386 = vector.broadcast %378 : vector<8x1xf32> to vector<8x32xf32>
    %387 = arith.subf %370, %386 : vector<8x32xf32>
    %cst_222 = arith.constant 9.99999974E-6 : f32
    %388 = vector.broadcast %cst_222 : f32 to vector<8x1xf32>
    %389 = arith.addf %385, %388 : vector<8x1xf32>
    %390 = math.rsqrt %389 : vector<8x1xf32>
    %391 = vector.broadcast %390 : vector<8x1xf32> to vector<8x32xf32>
    %392 = arith.mulf %387, %391 : vector<8x32xf32>
    %393 = vector.broadcast %372 : vector<1x32xf32> to vector<8x32xf32>
    %394 = arith.mulf %392, %393 : vector<8x32xf32>
    %395 = vector.broadcast %374 : vector<1x32xf32> to vector<8x32xf32>
    %396 = arith.addf %394, %395 : vector<8x32xf32>
    %c0_223 = arith.constant 0 : index
    %c0_224 = arith.constant 0 : index
    %397 = vector.load %arg29[%c0_223, %c0_224] : memref<1x32xf32, #tpu.memory_space<vmem>>, vector<1x32xf32>
    %c0_225 = arith.constant 0 : index
    %c0_226 = arith.constant 0 : index
    %398 = vector.load %arg30[%c0_225, %c0_226] : memref<1x32xf32, #tpu.memory_space<vmem>>, vector<1x32xf32>
    %cst_227 = arith.constant dense<0.000000e+00> : vector<8xf32>
    %399 = vector.multi_reduction <add>, %396, %cst_227 [1] : vector<8x32xf32> to vector<8xf32>
    %400 = vector.shape_cast %399 : vector<8xf32> to vector<8x1xf32>
    %cst_228 = arith.constant 3.200000e+01 : f32
    %401 = vector.broadcast %cst_228 : f32 to vector<8x1xf32>
    %402 = arith.divf %400, %401 : vector<8x1xf32>
    %403 = vector.broadcast %402 : vector<8x1xf32> to vector<8x32xf32>
    %404 = arith.subf %396, %403 : vector<8x32xf32>
    %405 = arith.mulf %404, %404 : vector<8x32xf32>
    %cst_229 = arith.constant dense<0.000000e+00> : vector<8xf32>
    %406 = vector.multi_reduction <add>, %405, %cst_229 [1] : vector<8x32xf32> to vector<8xf32>
    %407 = vector.shape_cast %406 : vector<8xf32> to vector<8x1xf32>
    %cst_230 = arith.constant 3.200000e+01 : f32
    %408 = vector.broadcast %cst_230 : f32 to vector<8x1xf32>
    %409 = arith.divf %407, %408 : vector<8x1xf32>
    %410 = vector.broadcast %402 : vector<8x1xf32> to vector<8x32xf32>
    %411 = arith.subf %396, %410 : vector<8x32xf32>
    %cst_231 = arith.constant 9.99999974E-6 : f32
    %412 = vector.broadcast %cst_231 : f32 to vector<8x1xf32>
    %413 = arith.addf %409, %412 : vector<8x1xf32>
    %414 = math.rsqrt %413 : vector<8x1xf32>
    %415 = vector.broadcast %414 : vector<8x1xf32> to vector<8x32xf32>
    %416 = arith.mulf %411, %415 : vector<8x32xf32>
    %417 = vector.broadcast %397 : vector<1x32xf32> to vector<8x32xf32>
    %418 = arith.mulf %416, %417 : vector<8x32xf32>
    %419 = vector.broadcast %398 : vector<1x32xf32> to vector<8x32xf32>
    %420 = arith.addf %418, %419 : vector<8x32xf32>
    %c0_232 = arith.constant 0 : index
    %c0_233 = arith.constant 0 : index
    %c0_234 = arith.constant 0 : index
    %421 = vector.load %arg31[%c0_232, %c0_233, %c0_234] : memref<1x8x32xf32, #tpu.memory_space<vmem>>, vector<1x8x32xf32>
    %422 = vector.shape_cast %421 : vector<1x8x32xf32> to vector<8x32xf32>
    %423 = vector.shape_cast %420 : vector<8x32xf32> to vector<1x8x32xf32>
    tpu.vector_store %arg31[%c0_232, %c0_233, %c0_234], %423 {strides = array<i32>} : memref<1x8x32xf32, #tpu.memory_space<vmem>>, vector<1x8x32xf32>,
    return
  }
  func.func @transform_0(%arg0: i32) -> (i32, i32, i32) {
    %c0_i32 = arith.constant 0 : i32
    %c0_i32_0 = arith.constant 0 : i32
    %c0_i32_1 = arith.constant 0 : i32
    return %arg0, %c0_i32, %c0_i32_0 : i32, i32, i32
  }
  func.func @transform_1(%arg0: i32) -> (i32, i32, i32) {
    %c0_i32 = arith.constant 0 : i32
    %c0_i32_0 = arith.constant 0 : i32
    %c0_i32_1 = arith.constant 0 : i32
    return %arg0, %c0_i32, %c0_i32_0 : i32, i32, i32
  }
  func.func @transform_2(%arg0: i32) -> (i32, i32, i32) {
    %c0_i32 = arith.constant 0 : i32
    %c0_i32_0 = arith.constant 0 : i32
    %c0_i32_1 = arith.constant 0 : i32
    return %arg0, %c0_i32, %c0_i32_0 : i32, i32, i32
  }
  func.func @transform_3(%arg0: i32) -> (i32, i32, i32) {
    %c0_i32 = arith.constant 0 : i32
    %c0_i32_0 = arith.constant 0 : i32
    %c0_i32_1 = arith.constant 0 : i32
    return %arg0, %c0_i32, %c0_i32_0 : i32, i32, i32
  }
  func.func @transform_4(%arg0: i32) -> (i32, i32, i32) {
    %c0_i32 = arith.constant 0 : i32
    %c0_i32_0 = arith.constant 0 : i32
    %c0_i32_1 = arith.constant 0 : i32
    %c0_i32_2 = arith.constant 0 : i32
    return %c0_i32, %c0_i32_0, %c0_i32_1 : i32, i32, i32
  }
  func.func @transform_5(%arg0: i32) -> (i32, i32, i32) {
    %c0_i32 = arith.constant 0 : i32
    %c0_i32_0 = arith.constant 0 : i32
    %c0_i32_1 = arith.constant 0 : i32
    %c0_i32_2 = arith.constant 0 : i32
    return %c0_i32, %c0_i32_0, %c0_i32_1 : i32, i32, i32
  }
  func.func @transform_6(%arg0: i32) -> (i32, i32, i32) {
    %c0_i32 = arith.constant 0 : i32
    %c0_i32_0 = arith.constant 0 : i32
    %c0_i32_1 = arith.constant 0 : i32
    %c0_i32_2 = arith.constant 0 : i32
    return %c0_i32, %c0_i32_0, %c0_i32_1 : i32, i32, i32
  }
  func.func @transform_7(%arg0: i32) -> (i32, i32, i32) {
    %c0_i32 = arith.constant 0 : i32
    %c0_i32_0 = arith.constant 0 : i32
    %c0_i32_1 = arith.constant 0 : i32
    %c0_i32_2 = arith.constant 0 : i32
    return %c0_i32, %c0_i32_0, %c0_i32_1 : i32, i32, i32
  }
  func.func @transform_8(%arg0: i32) -> (i32, i32, i32) {
    %c0_i32 = arith.constant 0 : i32
    %c0_i32_0 = arith.constant 0 : i32
    %c0_i32_1 = arith.constant 0 : i32
    %c0_i32_2 = arith.constant 0 : i32
    return %c0_i32, %c0_i32_0, %c0_i32_1 : i32, i32, i32
  }
  func.func @transform_9(%arg0: i32) -> (i32, i32, i32) {
    %c0_i32 = arith.constant 0 : i32
    %c0_i32_0 = arith.constant 0 : i32
    %c0_i32_1 = arith.constant 0 : i32
    %c0_i32_2 = arith.constant 0 : i32
    return %c0_i32, %c0_i32_0, %c0_i32_1 : i32, i32, i32
  }
  func.func @transform_10(%arg0: i32) -> (i32, i32, i32) {
    %c0_i32 = arith.constant 0 : i32
    %c0_i32_0 = arith.constant 0 : i32
    %c0_i32_1 = arith.constant 0 : i32
    %c0_i32_2 = arith.constant 0 : i32
    return %c0_i32, %c0_i32_0, %c0_i32_1 : i32, i32, i32
  }
  func.func @transform_11(%arg0: i32) -> (i32, i32, i32) {
    %c0_i32 = arith.constant 0 : i32
    %c0_i32_0 = arith.constant 0 : i32
    %c0_i32_1 = arith.constant 0 : i32
    %c0_i32_2 = arith.constant 0 : i32
    return %c0_i32, %c0_i32_0, %c0_i32_1 : i32, i32, i32
  }
  func.func @transform_12(%arg0: i32) -> (i32, i32, i32) {
    %c0_i32 = arith.constant 0 : i32
    %c0_i32_0 = arith.constant 0 : i32
    %c0_i32_1 = arith.constant 0 : i32
    %c0_i32_2 = arith.constant 0 : i32
    return %c0_i32, %c0_i32_0, %c0_i32_1 : i32, i32, i32
  }
  func.func @transform_13(%arg0: i32) -> (i32, i32, i32) {
    %c0_i32 = arith.constant 0 : i32
    %c0_i32_0 = arith.constant 0 : i32
    %c0_i32_1 = arith.constant 0 : i32
    %c0_i32_2 = arith.constant 0 : i32
    return %c0_i32, %c0_i32_0, %c0_i32_1 : i32, i32, i32
  }
  func.func @transform_14(%arg0: i32) -> (i32, i32, i32) {
    %c0_i32 = arith.constant 0 : i32
    %c0_i32_0 = arith.constant 0 : i32
    %c0_i32_1 = arith.constant 0 : i32
    %c0_i32_2 = arith.constant 0 : i32
    return %c0_i32, %c0_i32_0, %c0_i32_1 : i32, i32, i32
  }
  func.func @transform_15(%arg0: i32) -> (i32, i32, i32) {
    %c0_i32 = arith.constant 0 : i32
    %c0_i32_0 = arith.constant 0 : i32
    %c0_i32_1 = arith.constant 0 : i32
    %c0_i32_2 = arith.constant 0 : i32
    return %c0_i32, %c0_i32_0, %c0_i32_1 : i32, i32, i32
  }
  func.func @transform_16(%arg0: i32) -> (i32, i32, i32) {
    %c0_i32 = arith.constant 0 : i32
    %c0_i32_0 = arith.constant 0 : i32
    %c0_i32_1 = arith.constant 0 : i32
    %c0_i32_2 = arith.constant 0 : i32
    return %c0_i32, %c0_i32_0, %c0_i32_1 : i32, i32, i32
  }
  func.func @transform_17(%arg0: i32) -> (i32, i32, i32) {
    %c0_i32 = arith.constant 0 : i32
    %c0_i32_0 = arith.constant 0 : i32
    %c0_i32_1 = arith.constant 0 : i32
    %c0_i32_2 = arith.constant 0 : i32
    return %c0_i32, %c0_i32_0, %c0_i32_1 : i32, i32, i32
  }
  func.func @transform_18(%arg0: i32) -> (i32, i32, i32) {
    %c0_i32 = arith.constant 0 : i32
    %c0_i32_0 = arith.constant 0 : i32
    %c0_i32_1 = arith.constant 0 : i32
    %c0_i32_2 = arith.constant 0 : i32
    return %c0_i32, %c0_i32_0, %c0_i32_1 : i32, i32, i32
  }
  func.func @transform_19(%arg0: i32) -> (i32, i32, i32) {
    %c0_i32 = arith.constant 0 : i32
    %c0_i32_0 = arith.constant 0 : i32
    %c0_i32_1 = arith.constant 0 : i32
    %c0_i32_2 = arith.constant 0 : i32
    return %c0_i32, %c0_i32_0, %c0_i32_1 : i32, i32, i32
  }
  func.func @transform_20(%arg0: i32) -> (i32, i32, i32) {
    %c0_i32 = arith.constant 0 : i32
    %c0_i32_0 = arith.constant 0 : i32
    %c0_i32_1 = arith.constant 0 : i32
    %c0_i32_2 = arith.constant 0 : i32
    return %c0_i32, %c0_i32_0, %c0_i32_1 : i32, i32, i32
  }
  func.func @transform_21(%arg0: i32) -> (i32, i32, i32) {
    %c0_i32 = arith.constant 0 : i32
    %c0_i32_0 = arith.constant 0 : i32
    %c0_i32_1 = arith.constant 0 : i32
    %c0_i32_2 = arith.constant 0 : i32
    return %c0_i32, %c0_i32_0, %c0_i32_1 : i32, i32, i32
  }
  func.func @transform_22(%arg0: i32) -> (i32, i32, i32) {
    %c0_i32 = arith.constant 0 : i32
    %c0_i32_0 = arith.constant 0 : i32
    %c0_i32_1 = arith.constant 0 : i32
    %c0_i32_2 = arith.constant 0 : i32
    return %c0_i32, %c0_i32_0, %c0_i32_1 : i32, i32, i32
  }
  func.func @transform_23(%arg0: i32) -> (i32, i32, i32) {
    %c0_i32 = arith.constant 0 : i32
    %c0_i32_0 = arith.constant 0 : i32
    %c0_i32_1 = arith.constant 0 : i32
    %c0_i32_2 = arith.constant 0 : i32
    return %c0_i32, %c0_i32_0, %c0_i32_1 : i32, i32, i32
  }
  func.func @transform_24(%arg0: i32) -> (i32, i32, i32) {
    %c0_i32 = arith.constant 0 : i32
    %c0_i32_0 = arith.constant 0 : i32
    %c0_i32_1 = arith.constant 0 : i32
    %c0_i32_2 = arith.constant 0 : i32
    return %c0_i32, %c0_i32_0, %c0_i32_1 : i32, i32, i32
  }
  func.func @transform_25(%arg0: i32) -> (i32, i32, i32) {
    %c0_i32 = arith.constant 0 : i32
    %c0_i32_0 = arith.constant 0 : i32
    %c0_i32_1 = arith.constant 0 : i32
    %c0_i32_2 = arith.constant 0 : i32
    return %c0_i32, %c0_i32_0, %c0_i32_1 : i32, i32, i32
  }
  func.func @transform_26(%arg0: i32) -> (i32, i32, i32) {
    %c0_i32 = arith.constant 0 : i32
    %c0_i32_0 = arith.constant 0 : i32
    %c0_i32_1 = arith.constant 0 : i32
    %c0_i32_2 = arith.constant 0 : i32
    return %c0_i32, %c0_i32_0, %c0_i32_1 : i32, i32, i32
  }
  func.func @transform_27(%arg0: i32) -> (i32, i32, i32) {
    %c0_i32 = arith.constant 0 : i32
    %c0_i32_0 = arith.constant 0 : i32
    %c0_i32_1 = arith.constant 0 : i32
    %c0_i32_2 = arith.constant 0 : i32
    return %c0_i32, %c0_i32_0, %c0_i32_1 : i32, i32, i32
  }
  func.func @transform_28(%arg0: i32) -> (i32, i32) {
    %c0_i32 = arith.constant 0 : i32
    %c0_i32_0 = arith.constant 0 : i32
    %c0_i32_1 = arith.constant 0 : i32
    return %c0_i32, %c0_i32_0 : i32, i32
  }
  func.func @transform_29(%arg0: i32) -> (i32, i32) {
    %c0_i32 = arith.constant 0 : i32
    %c0_i32_0 = arith.constant 0 : i32
    %c0_i32_1 = arith.constant 0 : i32
    return %c0_i32, %c0_i32_0 : i32, i32
  }
  func.func @transform_30(%arg0: i32) -> (i32, i32, i32) {
    %c0_i32 = arith.constant 0 : i32
    %c0_i32_0 = arith.constant 0 : i32
    %c0_i32_1 = arith.constant 0 : i32
    return %arg0, %c0_i32, %c0_i32_0 : i32, i32, i32
  }
}

</mosaic_0001>

<bundles_post_ra>
// kernel: tpu_custom_call.1
= control target key start
LH: loop header
LB: loop body
LE: loop exit
PB: predicated region body
PF: predicated region fallthrough
CT: control target
= control target key end

     0   :  { %s9867_s6 = smov 1   ;;  %s9868_s10 = smov 2   ;;  %s11283_s0 = inlined_call_operand.smem [shape: u32[31], index: -1, kind: input, shape index: {}] }
   0x1   :  { %s9937_s5 = sld [smem:[%s11283_s0]]   ;;  %s9869_s14 = smov 3  }
   0x2   :  { %s9942_s9 = sld [smem:[%s11283_s0 + %s9867_s6]]   ;;  %s9870_s18 = smov 4  }
   0x3   :  { %s9947_s13 = sld [smem:[%s11283_s0 + %s9868_s10]]   ;;  %s9871_s22 = smov 5  }
   0x4   :  { %s9952_s17 = sld [smem:[%s11283_s0 + %s9869_s14]]   ;;  %s9872_s26 = smov 6  }
   0x5   :  { %s9957_s21 = sld [smem:[%s11283_s0 + %s9870_s18]]   ;;  %s9873_s30 = smov 7  }
   0x6   :  { %s9962_s25 = sld [smem:[%s11283_s0 + %s9871_s22]]   ;;  %s9874_s4 = smov 8  }
   0x7   :  { %11332 = sst [smem:[#allocation37_spill]] %s9937_s5  ;;  %s9875_s10 = smov 9  }
   0x8   :  { %11333 = sst [smem:[#allocation38_spill]] %s9942_s9  ;;  %s9876_s15 = smov 10  }
   0x9   :  { %11334 = sst [smem:[#allocation39_spill]] %s9947_s13  ;;  %s9877_s20 = smov 11  }
   0xa   :  { %11335 = sst [smem:[#allocation40_spill]] %s9952_s17  ;;  %s9879_s1 = smov 13  }
   0xb   :  { %11336 = sst [smem:[#allocation41_spill]] %s9957_s21  ;;  %s9880_s7 = smov 14  }
   0xc   :  { %11337 = sst [smem:[#allocation42_spill]] %s9962_s25  ;;  %s9882_s22 = smov 16  }
   0xd   :  { %s9967_s29 = sld [smem:[%s11283_s0 + %s9872_s26]]   ;;  %s9878_s26 = smov 12  }
   0xe   :  { %s9972_s3 = sld [smem:[%s11283_s0 + %s9873_s30]]   ;;  %s9883_s28 = smov 17  }
   0xf   :  { %s9977_s8 = sld [smem:[%s11283_s0 + %s9874_s4]]  }
  0x10   :  { %s9982_s14 = sld [smem:[%s11283_s0 + %s9875_s10]]  }
  0x11   :  { %s9987_s19 = sld [smem:[%s11283_s0 + %s9876_s15]]   ;;  %s9881_s15 = smov 15  }
  0x12   :  { %s9992_s24 = sld [smem:[%s11283_s0 + %s9877_s20]]  }
  0x13   :  { %11338 = sst [smem:[#allocation43_spill]] %s9967_s29 }
  0x14   :  { %11339 = sst [smem:[#allocation44_spill]] %s9972_s3 }
  0x15   :  { %11340 = sst [smem:[#allocation45_spill]] %s9977_s8 }
  0x16   :  { %11341 = sst [smem:[#allocation46_spill]] %s9982_s14 }
  0x17   :  { %11342 = sst [smem:[#allocation47_spill]] %s9987_s19 }
  0x18   :  { %11343 = sst [smem:[#allocation48_spill]] %s9992_s24 }
  0x19   :  { %s9997_s30 = sld [smem:[%s11283_s0 + %s9878_s26]]  }
  0x1a   :  { %s10002_s6 = sld [smem:[%s11283_s0 + %s9879_s1]]  }
  0x1b   :  { %s10007_s12 = sld [smem:[%s11283_s0 + %s9880_s7]]   ;;  %s9884_s7 = smov 18  }
  0x1c   :  { %s10012_s20 = sld [smem:[%s11283_s0 + %s9881_s15]]   ;;  %s9885_s15 = smov 19  }
  0x1d   :  { %s10017_s27 = sld [smem:[%s11283_s0 + %s9882_s22]]   ;;  %s9886_s22 = smov 20  }
  0x1e   :  { %s10022_s4 = sld [smem:[%s11283_s0 + %s9883_s28]]   ;;  %s9887_s28 = smov 21  }
  0x1f   :  { %s10027_s17 = sld [smem:[%s11283_s0 + %s9884_s7]]   ;;  %s9888_s7 = smov 22  }
  0x20   :  { %11344 = sst [smem:[#allocation49_spill]] %s10002_s6 }
  0x21   :  { %11345 = sst [smem:[#allocation50_spill]] %s10007_s12 }
  0x22   :  { %11346 = sst [smem:[#allocation51_spill]] %s10012_s20 }
  0x23   :  { %11347 = sst [smem:[#allocation52_spill]] %s10017_s27 }
  0x24   :  { %11348 = sst [smem:[#allocation53_spill]] %s10022_s4 }
  0x25   :  { %11349 = sst [smem:[#allocation54_spill]] %s10027_s17 }
  0x26   :  { %s10032_s13 = sld [smem:[%s11283_s0 + %s9885_s15]]   ;;  %s9889_s15 = smov 23  }
  0x27   :  { %s10037_s8 = sld [smem:[%s11283_s0 + %s9886_s22]]   ;;  %s9890_s22 = smov 24  }
  0x28   :  { %s10042_s29 = sld [smem:[%s11283_s0 + %s9887_s28]]   ;;  %s9891_s28 = smov 25  }
  0x29   :  { %s10047_s25 = sld [smem:[%s11283_s0 + %s9888_s7]]   ;;  %s9892_s7 = smov 26  }
  0x2a   :  { %s10052_s21 = sld [smem:[%s11283_s0 + %s9889_s15]]   ;;  %s9893_s15 = smov 27  }
  0x2b   :  { %s10057_s9 = sld [smem:[%s11283_s0 + %s9890_s22]]   ;;  %s9894_s22 = smov 28  }
  0x2c   :  { %11350 = sst [smem:[#allocation55_spill]] %s10032_s13 }
  0x2d   :  { %11351 = sst [smem:[#allocation56_spill]] %s10037_s8 }
  0x2e   :  { %11352 = sst [smem:[#allocation57_spill]] %s10042_s29 }
  0x2f   :  { %11353 = sst [smem:[#allocation58_spill]] %s10047_s25 }
  0x30   :  { %11354 = sst [smem:[#allocation59_spill]] %s10052_s21 }
  0x31   :  { %11355 = sst [smem:[#allocation60_spill]] %s10057_s9 }
  0x32   :  { %s10062_s29 = sld [smem:[%s11283_s0 + %s9891_s28]]   ;;  %s9895_s28 = smov 29  }
  0x33   :  { %s10067_s25 = sld [smem:[%s11283_s0 + %s9892_s7]]   ;;  %s9896_s7 = smov 30  }
  0x34   :  { %s10072_s21 = sld [smem:[%s11283_s0 + %s9893_s15]]  }
  0x35   :  { %s10077_s9 = sld [smem:[%s11283_s0 + %s9894_s22]]  }
  0x38   :  { %11356 = sst [smem:[#allocation61_spill]] %s10062_s29 }
  0x39   :  { %11357 = sst [smem:[#allocation62_spill]] %s10067_s25 }
  0x3a   :  { %s10082_s29 = sld [smem:[%s11283_s0 + %s9895_s28]]  }
  0x3b   :  { %s10087_s25 = sld [smem:[%s11283_s0 + %s9896_s7]]  }
  0x40   :  { %11358 = sst [smem:[#allocation63_spill]] %s10082_s29 }
  0x41   :  { %11359 = sst [smem:[#allocation64_spill]] %s10087_s25 }
  0x42   :  { %66 = vsyncpa [#allocation3], 0 }
  0x43   :  { %68 = vsyncpa [#allocation3 + $0x1], 0 }
  0x44   :  { %69 = vsyncpa [#allocation6], 0 }
  0x45   :  { %71 = vsyncpa [#allocation6 + $0x1], 0 }
  0x46   :  { %72 = vsyncpa [#allocation9], 0 }
  0x47   :  { %73 = vsyncpa [#allocation12], 0 }
  0x48   :  { %74 = vsyncpa [#allocation15], 0 }
  0x49   :  { %75 = vsyncpa [#allocation18], 0 }
  0x4a   :  { %76 = vsyncpa [#allocation21], 0 }
  0x4b   :  { %77 = vsyncpa [#allocation24], 0 }
  0x4c   :  { %78 = vsyncpa [#allocation4], 0 }
  0x4d   :  { %80 = vsyncpa [#allocation4 + $0x1], 0  ;;  %s10089_s15 = smov 0   ;;  %s10091_s16 = smov 0  }
  0x4e   :  { %s10093_s18 = smov 0   ;;  %s10095_s0 = smov 0  }
  0x4f LB: > { %s11360_s27 = sld [smem:[#allocation52_spill]]  ;;  %s11361_s24 = sld [smem:[#allocation48_spill]]  ;;  %s9853_s15 = sphi %s10089_s15, %s11425_s15   ;;  %s9865_s0 = sphi %s10095_s0, %s11428_s0   ;;  %s9861_s18 = sphi %s10093_s18, %s11427_s18   ;;  %s9857_s16 = sphi %s10091_s16, %s11426_s16  }
  0x50   : > { %s11362_s20 = sld [smem:[#allocation51_spill]]  ;;  %s11363_s19 = sld [smem:[#allocation47_spill]] }
  0x51   : > { %s11364_s5 = sld [smem:[#allocation37_spill]]  ;;  %s11365_s17 = sld [smem:[#allocation54_spill]] }
  0x52   : > { %s11366_s13 = sld [smem:[#allocation55_spill]]  ;;  %s11367_s12 = sld [smem:[#allocation50_spill]] }
  0x53   : > { %s11368_s8 = sld [smem:[#allocation56_spill]]  ;;  %s11369_s6 = sld [smem:[#allocation49_spill]] }
  0x54   : > { %s11370_s4 = sld [smem:[#allocation53_spill]]  ;;  %s11371_s14 = sld [smem:[#allocation46_spill]] }
  0x55   : > { %s11372_s3 = sld [smem:[#allocation44_spill]]  ;;  %s9897_s22 = smov [#allocation7]  }
  0x56   : > { %s788_s23 = sshll.u32 %s9897_s22, 4  ;;  %s10110_s26 = sadd.s32 4294967295, %s9865_s0   ;;  %s10115_s23 = int_to_ptr.vmem [resolvable:$true] %s788_s23 }
  0x57   : > { %p8173_p0 = scmp.ge.s32.totalorder %s9865_s0, 1  ;;  %p11296_p1 = scmp.eq.s32.totalorder %s10110_s26, 0 }
  0x58   : > { %p767_p2 = scmp.lt.s32.totalorder %s9865_s0, 3  ;;  %s9898_s1 = smov [#allocation8]  }
  0x59   : > { %s804_s2 = sshll.u32 %s9898_s1, 4  ;;  %s9899_s10 = smov [#allocation11]   ;;  %s10130_s2 = int_to_ptr.vmem [resolvable:$true] %s804_s2 }
  0x5a   : > { %p10117_p3 = pnand %p8173_p0, %p767_p2  ;;  %s830_s11 = sshll.u32 %s9899_s10, 4  ;;  %s10132_s11 = int_to_ptr.vmem [resolvable:$true] %s830_s11 }
  0x5b   : > { %s9343_s22 = scalar_lea.hbm %s11372_s3, 32 }
  0x5c   : > { %s11373_s28 = scalar_select %p10117_p3, 1, 0 }
  0x5d   : > { %p9093_p5 = pneg %p10117_p3  ;;  %p9344_p7 = scmp.ne.s32.totalorder %s11372_s3, %s9343_s22 }
  0x5e   : > { %p9350_p11 = scmp.lt.u32.totalorder %s9343_s22, %s11372_s3 }
  0x5f   : > { %p10126_p6 = pnand %p9093_p5, %p11296_p1 }
  0x61   : > { %p10138_p8 = pneg %p10126_p6 }
  0x63   : > { %p9346_p9 = pnand %p10138_p8, %p9344_p7 }
  0x65   : > { %p9347_p10 = pneg %p9346_p9 }
  0x67   : > { %p9352_p12 = pnand %p9350_p11, %p9347_p10 }
  0x69   : > { %9355 = shalt.err (!%p9352_p12)
}
  0x6a   : > { %s9356_s1 = scalar_lea.vmem %s10115_s23, 32  ;;  %p9364_p5 = scmp.lt.s32.totalorder %s10115_s23, %s10115_s23 }
  0x6b   : > { %p9357_p13 = scmp.ne.s32.totalorder %s10115_s23, %s9356_s1  ;;  %p9365_p4 = scmp.lt.s32.totalorder %s9356_s1, %s9356_s1 }
  0x6d   : > { %p9359_p0 = pnand %p9357_p13, %p10138_p8  ;;  %p9366_p1 = por %p9365_p4, %p9364_p5 }
  0x6f   : > { %p9360_p2 = pneg %p9359_p0 }
  0x71   : > { %p9367_p3 = pnand %p9366_p1, %p9360_p2 }
  0x73   : > { %9370 = shalt.err (!%p9367_p3)
}
  0x74   : > { %s11300_s10 = smov 16   ;;  %s11301_s22 = smov 1  }
  0x75   : > { %9096 = dma.hbm_to_vmem [thread:$0]  (!%p10126_p6), %s11372_s3, 32, %s10115_s23, [#allocation6], %s11300_s10, %s11300_s10, %s11301_s22  }
  0x76   : > { %s9371_s29 = scalar_lea.hbm %s11371_s14, 32 }
  0x77   : > { %p9372_p7 = scmp.ne.s32.totalorder %s11371_s14, %s9371_s29  ;;  %p9378_p3 = scmp.lt.u32.totalorder %s9371_s29, %s11371_s14 }
  0x79   : > { %p9374_p4 = pnand %p9372_p7, %p10138_p8 }
  0x7b   : > { %p9375_p1 = pneg %p9374_p4 }
  0x7d   : > { %p9380_p9 = pnand %p9378_p3, %p9375_p1 }
  0x7f   : > { %9383 = shalt.err (!%p9380_p9)
}
  0x80   : > { %s9384_s1 = scalar_lea.vmem %s10130_s2, 32  ;;  %p9392_p13 = scmp.lt.s32.totalorder %s10130_s2, %s10130_s2 }
  0x81   : > { %p9385_p10 = scmp.ne.s32.totalorder %s10130_s2, %s9384_s1  ;;  %p9393_p0 = scmp.lt.s32.totalorder %s9384_s1, %s9384_s1 }
  0x83   : > { %p9387_p11 = pnand %p9385_p10, %p10138_p8  ;;  %p9394_p2 = por %p9393_p0, %p9392_p13 }
  0x85   : > { %p9388_p12 = pneg %p9387_p11 }
  0x87   : > { %p9395_p5 = pnand %p9394_p2, %p9388_p12 }
  0x89   : > { %9398 = shalt.err (!%p9395_p5)
}
  0x8a   : > { %9099 = dma.hbm_to_vmem [thread:$0]  (!%p10126_p6), %s11371_s14, 32, %s10130_s2, [#allocation9], %s11300_s10, %s11300_s10, %s11301_s22  }
  0x8b   : > { %s9399_s29 = scalar_lea.hbm %s11361_s24, 32 }
  0x8c   : > { %p9400_p7 = scmp.ne.s32.totalorder %s11361_s24, %s9399_s29  ;;  %p9406_p3 = scmp.lt.u32.totalorder %s9399_s29, %s11361_s24 }
  0x8e   : > { %p9402_p4 = pnand %p9400_p7, %p10138_p8 }
  0x90   : > { %p9403_p1 = pneg %p9402_p4 }
  0x92   : > { %p9408_p9 = pnand %p9406_p3, %p9403_p1 }
  0x94   : > { %9411 = shalt.err (!%p9408_p9)
}
  0x95   : > { %s9412_s23 = scalar_lea.vmem %s10132_s11, 32  ;;  %p9420_p13 = scmp.lt.s32.totalorder %s10132_s11, %s10132_s11 }
  0x96   : > { %p9413_p10 = scmp.ne.s32.totalorder %s10132_s11, %s9412_s23  ;;  %p9421_p0 = scmp.lt.s32.totalorder %s9412_s23, %s9412_s23 }
  0x98   : > { %p9415_p11 = pnand %p9413_p10, %p10138_p8  ;;  %p9422_p2 = por %p9421_p0, %p9420_p13 }
  0x9a   : > { %p9416_p12 = pneg %p9415_p11 }
  0x9c   : > { %p9423_p5 = pnand %p9422_p2, %p9416_p12 }
  0x9e   : > { %9426 = shalt.err (!%p9423_p5)
}
  0x9f   : > { %9105 = dma.hbm_to_vmem [thread:$0]  (!%p10126_p6), %s11361_s24, 32, %s10132_s11, [#allocation12], %s11300_s10, %s11300_s10, %s11301_s22  }
  0xa0   : > { %s9902_s2 = smov [#allocation14]   ;;  %s9903_s29 = smov [#allocation17]  }
  0xa1   : > { %s856_s1 = sshll.u32 %s9902_s2, 4  ;;  %s882_s23 = sshll.u32 %s9903_s29, 4  ;;  %s857_s1 = int_to_ptr.vmem [resolvable:$true] %s856_s1  ;;  %s883_s23 = int_to_ptr.vmem [resolvable:$true] %s882_s23 }
  0xa2   : > { %s9427_s3 = scalar_lea.hbm %s11369_s6, 32 }
  0xa3   : > { %p9428_p7 = scmp.ne.s32.totalorder %s11369_s6, %s9427_s3  ;;  %p9434_p3 = scmp.lt.u32.totalorder %s9427_s3, %s11369_s6 }
  0xa5   : > { %p9430_p4 = pnand %p9428_p7, %p10138_p8 }
  0xa7   : > { %p9431_p1 = pneg %p9430_p4 }
  0xa9   : > { %p9436_p9 = pnand %p9434_p3, %p9431_p1 }
  0xab   : > { %9439 = shalt.err (!%p9436_p9)
}
  0xac   : > { %s9440_s14 = scalar_lea.vmem %s857_s1, 32  ;;  %p9448_p13 = scmp.lt.s32.totalorder %s857_s1, %s857_s1 }
  0xad   : > { %p9441_p10 = scmp.ne.s32.totalorder %s857_s1, %s9440_s14  ;;  %p9449_p0 = scmp.lt.s32.totalorder %s9440_s14, %s9440_s14 }
  0xaf   : > { %p9443_p11 = pnand %p9441_p10, %p10138_p8  ;;  %p9450_p2 = por %p9449_p0, %p9448_p13 }
  0xb1   : > { %p9444_p12 = pneg %p9443_p11 }
  0xb3   : > { %p9451_p5 = pnand %p9450_p2, %p9444_p12 }
  0xb5   : > { %9454 = shalt.err (!%p9451_p5)
}
  0xb6   : > { %9111 = dma.hbm_to_vmem [thread:$0]  (!%p10126_p6), %s11369_s6, 32, %s857_s1, [#allocation15], %s11300_s10, %s11300_s10, %s11301_s22  }
  0xb7   : > { %s9455_s3 = scalar_lea.hbm %s11362_s20, 32 }
  0xb8   : > { %p9456_p7 = scmp.ne.s32.totalorder %s11362_s20, %s9455_s3  ;;  %p9462_p3 = scmp.lt.u32.totalorder %s9455_s3, %s11362_s20 }
  0xba   : > { %p9458_p4 = pnand %p9456_p7, %p10138_p8 }
  0xbc   : > { %p9459_p1 = pneg %p9458_p4 }
  0xbe   : > { %p9464_p9 = pnand %p9462_p3, %p9459_p1 }
  0xc0   : > { %9467 = shalt.err (!%p9464_p9)
}
  0xc1   : > { %s9468_s14 = scalar_lea.vmem %s883_s23, 32  ;;  %p9476_p13 = scmp.lt.s32.totalorder %s883_s23, %s883_s23 }
  0xc2   : > { %p9469_p10 = scmp.ne.s32.totalorder %s883_s23, %s9468_s14  ;;  %p9477_p0 = scmp.lt.s32.totalorder %s9468_s14, %s9468_s14 }
  0xc4   : > { %p9471_p11 = pnand %p9469_p10, %p10138_p8  ;;  %p9478_p2 = por %p9477_p0, %p9476_p13 }
  0xc6   : > { %p9472_p12 = pneg %p9471_p11 }
  0xc8   : > { %p9479_p5 = pnand %p9478_p2, %p9472_p12 }
  0xca   : > { %9482 = shalt.err (!%p9479_p5)
}
  0xcb   : > { %9117 = dma.hbm_to_vmem [thread:$0]  (!%p10126_p6), %s11362_s20, 32, %s883_s23, [#allocation18], %s11300_s10, %s11300_s10, %s11301_s22  }
  0xcc   : > { %s9904_s11 = smov [#allocation20]   ;;  %s9905_s1 = smov [#allocation23]  }
  0xcd   : > { %s908_s2 = sshll.u32 %s9904_s11, 4  ;;  %s934_s29 = sshll.u32 %s9905_s1, 4  ;;  %s909_s2 = int_to_ptr.vmem [resolvable:$true] %s908_s2  ;;  %s935_s29 = int_to_ptr.vmem [resolvable:$true] %s934_s29 }
  0xce   : > { %s9483_s3 = scalar_lea.hbm %s11370_s4, 32 }
  0xcf   : > { %p9484_p7 = scmp.ne.s32.totalorder %s11370_s4, %s9483_s3  ;;  %p9490_p3 = scmp.lt.u32.totalorder %s9483_s3, %s11370_s4 }
  0xd1   : > { %p9486_p4 = pnand %p9484_p7, %p10138_p8 }
  0xd3   : > { %p9487_p1 = pneg %p9486_p4 }
  0xd5   : > { %p9492_p9 = pnand %p9490_p3, %p9487_p1 }
  0xd7   : > { %9495 = shalt.err (!%p9492_p9)
}
  0xd8   : > { %s9496_s14 = scalar_lea.vmem %s909_s2, 32  ;;  %p9504_p13 = scmp.lt.s32.totalorder %s909_s2, %s909_s2 }
  0xd9   : > { %p9497_p10 = scmp.ne.s32.totalorder %s909_s2, %s9496_s14  ;;  %p9505_p0 = scmp.lt.s32.totalorder %s9496_s14, %s9496_s14 }
  0xdb   : > { %p9499_p11 = pnand %p9497_p10, %p10138_p8  ;;  %p9506_p2 = por %p9505_p0, %p9504_p13 }
  0xdd   : > { %p9500_p12 = pneg %p9499_p11 }
  0xdf   : > { %p9507_p5 = pnand %p9506_p2, %p9500_p12 }
  0xe1   : > { %9510 = shalt.err (!%p9507_p5)
}
  0xe2   : > { %9123 = dma.hbm_to_vmem [thread:$0]  (!%p10126_p6), %s11370_s4, 32, %s909_s2, [#allocation21], %s11300_s10, %s11300_s10, %s11301_s22  }
  0xe3   : > { %s9511_s23 = scalar_lea.hbm %s11366_s13, 32 }
  0xe4   : > { %p9512_p7 = scmp.ne.s32.totalorder %s11366_s13, %s9511_s23  ;;  %p9518_p3 = scmp.lt.u32.totalorder %s9511_s23, %s11366_s13 }
  0xe6   : > { %p9514_p4 = pnand %p9512_p7, %p10138_p8 }
  0xe8   : > { %p9515_p1 = pneg %p9514_p4 }
  0xea   : > { %p9520_p9 = pnand %p9518_p3, %p9515_p1 }
  0xec   : > { %9523 = shalt.err (!%p9520_p9)
}
  0xed   : > { %s9524_s11 = scalar_lea.vmem %s935_s29, 32  ;;  %p9532_p13 = scmp.lt.s32.totalorder %s935_s29, %s935_s29 }
  0xee   : > { %p9525_p10 = scmp.ne.s32.totalorder %s935_s29, %s9524_s11  ;;  %p9533_p0 = scmp.lt.s32.totalorder %s9524_s11, %s9524_s11 }
  0xf0   : > { %p9527_p11 = pnand %p9525_p10, %p10138_p8  ;;  %p9534_p2 = por %p9533_p0, %p9532_p13 }
  0xf2   : > { %p9528_p12 = pneg %p9527_p11 }
  0xf4   : > { %p9535_p5 = pnand %p9534_p2, %p9528_p12 }
  0xf6   : > { %9538 = shalt.err (!%p9535_p5)
}
  0xf7   : > { %9129 = dma.hbm_to_vmem [thread:$0]  (!%p10126_p6), %s11366_s13, 32, %s935_s29, [#allocation24], %s11300_s10, %s11300_s10, %s11301_s22  }
  0xf8   : > { %s9906_s2 = smov [#allocation10]   ;;  %s9907_s3 = smov [#allocation13]  }
  0xf9   : > { %s817_s1 = sshll.u32 %s9906_s2, 4  ;;  %s843_s14 = sshll.u32 %s9907_s3, 4  ;;  %s818_s1 = int_to_ptr.vmem [resolvable:$true] %s817_s1  ;;  %s844_s14 = int_to_ptr.vmem [resolvable:$true] %s843_s14 }
  0xfa   : > { %s9539_s23 = scalar_lea.hbm %s11363_s19, 32 }
  0xfb   : > { %p9540_p7 = scmp.ne.s32.totalorder %s11363_s19, %s9539_s23  ;;  %p9546_p3 = scmp.lt.u32.totalorder %s9539_s23, %s11363_s19 }
  0xfd   : > { %p9542_p4 = pnand %p9540_p7, %p10138_p8 }
  0xff   : > { %p9543_p1 = pneg %p9542_p4 }
 0x101   : > { %p9548_p9 = pnand %p9546_p3, %p9543_p1 }
 0x103   : > { %9551 = shalt.err (!%p9548_p9)
}
 0x104   : > { %s9552_s11 = scalar_lea.vmem %s818_s1, 32  ;;  %p9560_p13 = scmp.lt.s32.totalorder %s818_s1, %s818_s1 }
 0x105   : > { %p9553_p10 = scmp.ne.s32.totalorder %s818_s1, %s9552_s11  ;;  %p9561_p0 = scmp.lt.s32.totalorder %s9552_s11, %s9552_s11 }
 0x107   : > { %p9555_p11 = pnand %p9553_p10, %p10138_p8  ;;  %p9562_p2 = por %p9561_p0, %p9560_p13 }
 0x109   : > { %p9556_p12 = pneg %p9555_p11 }
 0x10b   : > { %p9563_p5 = pnand %p9562_p2, %p9556_p12 }
 0x10d   : > { %9566 = shalt.err (!%p9563_p5)
}
 0x10e   : > { %9102 = dma.hbm_to_vmem [thread:$0]  (!%p10126_p6), %s11363_s19, 32, %s818_s1, [#allocation9], %s11300_s10, %s11300_s10, %s11301_s22  }
 0x10f   : > { %s9567_s29 = scalar_lea.hbm %s9997_s30, 1024 }
 0x110   : > { %p9568_p7 = scmp.ne.s32.totalorder %s9997_s30, %s9567_s29  ;;  %p9574_p3 = scmp.lt.u32.totalorder %s9567_s29, %s9997_s30 }
 0x112   : > { %p9570_p4 = pnand %p9568_p7, %p10138_p8 }
 0x114   : > { %p9571_p1 = pneg %p9570_p4 }
 0x116   : > { %p9576_p9 = pnand %p9574_p3, %p9571_p1 }
 0x118   : > { %9579 = shalt.err (!%p9576_p9)
}
 0x119   : > { %s9580_s2 = scalar_lea.vmem %s844_s14, 1024  ;;  %p9588_p13 = scmp.lt.s32.totalorder %s844_s14, %s844_s14 }
 0x11a   : > { %p9581_p10 = scmp.ne.s32.totalorder %s844_s14, %s9580_s2  ;;  %p9589_p0 = scmp.lt.s32.totalorder %s9580_s2, %s9580_s2 }
 0x11c   : > { %p9583_p11 = pnand %p9581_p10, %p10138_p8  ;;  %p9590_p2 = por %p9589_p0, %p9588_p13 }
 0x11e   : > { %p9584_p12 = pneg %p9583_p11 }
 0x120   : > { %p9591_p5 = pnand %p9590_p2, %p9584_p12 }
 0x122   : > { %9594 = shalt.err (!%p9591_p5)
}
 0x123   : > { %s9908_s1 = smov 128   ;;  %s9909_s3 = smov 8  }
 0x124   : > { %9108 = dma.hbm_to_vmem [thread:$0]  (!%p10126_p6), %s9997_s30, 1024, %s844_s14, [#allocation12], %s9908_s1, %s9908_s1, %s9909_s3  }
 0x125   : > { %s9910_s23 = smov [#allocation16]   ;;  %s9911_s29 = smov [#allocation19]  }
 0x126   : > { %s869_s11 = sshll.u32 %s9910_s23, 4  ;;  %s895_s2 = sshll.u32 %s9911_s29, 4  ;;  %s870_s11 = int_to_ptr.vmem [resolvable:$true] %s869_s11  ;;  %s896_s2 = int_to_ptr.vmem [resolvable:$true] %s895_s2 }
 0x127   : > { %s9595_s10 = scalar_lea.hbm %s11367_s12, 1024 }
 0x128   : > { %p9596_p7 = scmp.ne.s32.totalorder %s11367_s12, %s9595_s10  ;;  %p9602_p3 = scmp.lt.u32.totalorder %s9595_s10, %s11367_s12 }
 0x12a   : > { %p9598_p4 = pnand %p9596_p7, %p10138_p8 }
 0x12c   : > { %p9599_p1 = pneg %p9598_p4 }
 0x12e   : > { %p9604_p9 = pnand %p9602_p3, %p9599_p1 }
 0x130   : > { %9607 = shalt.err (!%p9604_p9)
}
 0x131   : > { %s9608_s22 = scalar_lea.vmem %s870_s11, 1024  ;;  %p9616_p13 = scmp.lt.s32.totalorder %s870_s11, %s870_s11 }
 0x132   : > { %p9609_p10 = scmp.ne.s32.totalorder %s870_s11, %s9608_s22  ;;  %p9617_p0 = scmp.lt.s32.totalorder %s9608_s22, %s9608_s22 }
 0x134   : > { %p9611_p11 = pnand %p9609_p10, %p10138_p8  ;;  %p9618_p2 = por %p9617_p0, %p9616_p13 }
 0x136   : > { %p9612_p12 = pneg %p9611_p11 }
 0x138   : > { %p9619_p5 = pnand %p9618_p2, %p9612_p12 }
 0x13a   : > { %9622 = shalt.err (!%p9619_p5)
}
 0x13b   : > { %9114 = dma.hbm_to_vmem [thread:$0]  (!%p10126_p6), %s11367_s12, 1024, %s870_s11, [#allocation15], %s9908_s1, %s9908_s1, %s9909_s3  }
 0x13c   : > { %s9623_s10 = scalar_lea.hbm %s11360_s27, 1024 }
 0x13d   : > { %p9624_p7 = scmp.ne.s32.totalorder %s11360_s27, %s9623_s10  ;;  %p9630_p3 = scmp.lt.u32.totalorder %s9623_s10, %s11360_s27 }
 0x13f   : > { %p9626_p4 = pnand %p9624_p7, %p10138_p8 }
 0x141   : > { %p9627_p1 = pneg %p9626_p4 }
 0x143   : > { %p9632_p9 = pnand %p9630_p3, %p9627_p1 }
 0x145   : > { %9635 = shalt.err (!%p9632_p9)
}
 0x146   : > { %s9636_s22 = scalar_lea.vmem %s896_s2, 1024  ;;  %p9644_p13 = scmp.lt.s32.totalorder %s896_s2, %s896_s2 }
 0x147   : > { %p9637_p10 = scmp.ne.s32.totalorder %s896_s2, %s9636_s22  ;;  %p9645_p0 = scmp.lt.s32.totalorder %s9636_s22, %s9636_s22 }
 0x149   : > { %p9639_p11 = pnand %p9637_p10, %p10138_p8  ;;  %p9646_p2 = por %p9645_p0, %p9644_p13 }
 0x14b   : > { %p9640_p12 = pneg %p9639_p11 }
 0x14d   : > { %p9647_p5 = pnand %p9646_p2, %p9640_p12 }
 0x14f   : > { %9650 = shalt.err (!%p9647_p5)
}
 0x150   : > { %9120 = dma.hbm_to_vmem [thread:$0]  (!%p10126_p6), %s11360_s27, 1024, %s896_s2, [#allocation18], %s9908_s1, %s9908_s1, %s9909_s3  }
 0x151   : > { %s9912_s14 = smov [#allocation22]   ;;  %s9913_s11 = smov [#allocation25]  }
 0x152   : > { %s921_s23 = sshll.u32 %s9912_s14, 4  ;;  %s947_s29 = sshll.u32 %s9913_s11, 4  ;;  %s922_s23 = int_to_ptr.vmem [resolvable:$true] %s921_s23  ;;  %s948_s29 = int_to_ptr.vmem [resolvable:$true] %s947_s29 }
 0x153   : > { %s9651_s10 = scalar_lea.hbm %s11365_s17, 1024 }
 0x154   : > { %p9652_p7 = scmp.ne.s32.totalorder %s11365_s17, %s9651_s10  ;;  %p9658_p3 = scmp.lt.u32.totalorder %s9651_s10, %s11365_s17 }
 0x156   : > { %p9654_p4 = pnand %p9652_p7, %p10138_p8 }
 0x158   : > { %p9655_p1 = pneg %p9654_p4 }
 0x15a   : > { %p9660_p9 = pnand %p9658_p3, %p9655_p1 }
 0x15c   : > { %9663 = shalt.err (!%p9660_p9)
}
 0x15d   : > { %s9664_s22 = scalar_lea.vmem %s922_s23, 1024  ;;  %p9672_p13 = scmp.lt.s32.totalorder %s922_s23, %s922_s23 }
 0x15e   : > { %p9665_p10 = scmp.ne.s32.totalorder %s922_s23, %s9664_s22  ;;  %p9673_p0 = scmp.lt.s32.totalorder %s9664_s22, %s9664_s22 }
 0x160   : > { %p9667_p11 = pnand %p9665_p10, %p10138_p8  ;;  %p9674_p2 = por %p9673_p0, %p9672_p13 }
 0x162   : > { %p9668_p12 = pneg %p9667_p11 }
 0x164   : > { %p9675_p5 = pnand %p9674_p2, %p9668_p12 }
 0x166   : > { %9678 = shalt.err (!%p9675_p5)
}
 0x167   : > { %9126 = dma.hbm_to_vmem [thread:$0]  (!%p10126_p6), %s11365_s17, 1024, %s922_s23, [#allocation21], %s9908_s1, %s9908_s1, %s9909_s3  }
 0x168   : > { %s9679_s2 = scalar_lea.hbm %s11368_s8, 32 }
 0x169   : > { %p9680_p7 = scmp.ne.s32.totalorder %s11368_s8, %s9679_s2  ;;  %p9686_p3 = scmp.lt.u32.totalorder %s9679_s2, %s11368_s8 }
 0x16b   : > { %p9682_p4 = pnand %p9680_p7, %p10138_p8 }
 0x16d   : > { %p9683_p1 = pneg %p9682_p4 }
 0x16f   : > { %p9688_p9 = pnand %p9686_p3, %p9683_p1 }
 0x171   : > { %9691 = shalt.err (!%p9688_p9)
}
 0x172   : > { %s9692_s14 = scalar_lea.vmem %s948_s29, 32  ;;  %p9700_p13 = scmp.lt.s32.totalorder %s948_s29, %s948_s29 }
 0x173   : > { %p9693_p10 = scmp.ne.s32.totalorder %s948_s29, %s9692_s14  ;;  %p9701_p0 = scmp.lt.s32.totalorder %s9692_s14, %s9692_s14 }
 0x175   : > { %p9695_p11 = pnand %p9693_p10, %p10138_p8  ;;  %p9702_p2 = por %p9701_p0, %p9700_p13 }
 0x177   : > { %p9696_p12 = pneg %p9695_p11 }
 0x179   : > { %p9703_p5 = pnand %p9702_p2, %p9696_p12 }
 0x17b   : > { %9706 = shalt.err (!%p9703_p5)
}
 0x17c   : > { %s11376_s1 = smov 1   ;;  %s11377_s3 = smov 16  }
 0x17d   : > { %9132 = dma.hbm_to_vmem [thread:$0]  (!%p10126_p6), %s11368_s8, 32, %s948_s29, [#allocation24], %s11377_s3, %s11377_s3, %s11376_s1  }
 0x17e   : > { %s8172_s25 = sadd.s32 4294967294, %s9865_s0   ;;  %s10326_s7 = sadd.s32 1, %s9865_s0  }
 0x17f   : > { %s93_s23 = sadd.s32 1, %s9861_s18  ;;  %s90_s11 = ssub.s32 %s9865_s0, %s10326_s7 }
 0x180   : > { %p100_p8 = scmp.ne.s32.totalorder %s9861_s18, %s9857_s16  ;;  %p91_p7 = scmp.eq.s32.totalorder %s90_s11, 0 }
 0x181   : > { %p101_p4 = scmp.eq.s32.totalorder %s9865_s0, 0  ;;  %p106_p1 = scmp.ne.s32.totalorder %s9857_s16, %s9853_s15 }
 0x182   : > { %p754_p3 = scmp.eq.s32.totalorder %s10110_s26, 1  ;;  %s11378_s10 = sld [smem:[#allocation38_spill]] }
 0x183   : > { %s10338_s22 = scalar_select %p91_p7, %s9861_s18, %s93_s23  }
 0x184   : > { %p102_p9 = por %p101_p4, %p100_p8  ;;  %p11379_p10 = scmp.eq.s32.totalorder %s10110_s26, 0 }
 0x185   : > { %p10346_p11 = por %p754_p3, %p100_p8  ;;  %p760_p12 = scmp.eq.s32.totalorder %s8172_s25, 1 }
 0x186   : > { %p10342_p6 = por %p11379_p10, %p106_p1  ;;  %p9157_p13 = scmp.lt.s32.totalorder %s9865_s0, 2 }
 0x187   : > { %s11381_s2 = scalar_select %p10346_p11, 1, 0 }
 0x188   : > { %s11380_s29 = scalar_select %p10342_p6, 1, 0 }
 0x189   : > { %s988_s14 = sand.u32 1, %s9861_s18   ;;  %p10352_p0 = por %p760_p12, %p106_p1 }
 0x18a   : > { %s10356_s3 = sshll.u32 %s988_s14, 3  ;;  %s8189_s23 = sshll.u32 %s9865_s0, 7 }
 0x18b   : > { %s11382_s1 = scalar_select %p10352_p0, 1, 0 }
 0x18c   : > { %s10360_s11 = scalar_lea.hbm %s11364_s5, %s8189_s23  ;;  %s992_s4 = scalar_lea.vmem [#allocation2], %s10356_s3 }
 0x18d   : > { %s999_s25 = sshll.u32 %s992_s4, 4  ;;  %p10363_p2 = pnand %p9157_p13, %p102_p9  ;;  %s10367_s25 = int_to_ptr.vmem [resolvable:$true] %s999_s25 }
 0x18e   : > { %s10370_s8 = scalar_lea.hbm %s11378_s10, %s8189_s23  ;;  %s989_s12 = scalar_lea.sflag [#allocation3], %s988_s14 }
 0x18f   : > { %s9707_s13 = scalar_lea.hbm %s10360_s11, 128  ;;  %p9709_p8 = pneg %p10363_p2 }
 0x190   : > { %p9708_p5 = scmp.ne.s32.totalorder %s10360_s11, %s9707_s13  ;;  %s9712_s4 = scalar_lea.hbm %s11364_s5, 256 }
 0x191   : > { %p9713_p1 = scmp.lt.u32.totalorder %s10360_s11, %s11364_s5  ;;  %p9714_p3 = scmp.lt.u32.totalorder %s9712_s4, %s9707_s13 }
 0x192   : > { %p9710_p7 = pnand %p9709_p8, %p9708_p5  ;;  %p9716_p10 = scmp.lt.u32.totalorder %s9707_s13, %s10360_s11 }
 0x193   : > { %p9715_p9 = por %p9714_p3, %p9713_p1 }
 0x194   : > { %p9711_p4 = pneg %p9710_p7 }
 0x195   : > { %p9717_p12 = por %p9716_p10, %p9715_p9 }
 0x197   : > { %p9718_p13 = pnand %p9717_p12, %p9711_p4 }
 0x199   : > { %9721 = shalt.err (!%p9718_p13)
}
 0x19a   : > { %s9722_s14 = scalar_lea.vmem %s10367_s25, 128  ;;  %s9914_s23 = smov [#allocation2]  }
 0x19b   : > { %p9723_p0 = scmp.ne.s32.totalorder %s10367_s25, %s9722_s14  ;;  %s9727_s17 = sshll.u32 %s9914_s23, 4  ;;  %s9728_s17 = int_to_ptr.vmem [resolvable:$false] %s9727_s17 }
 0x19c   : > { %s9729_s5 = scalar_lea.vmem %s9728_s17, 256  ;;  %p9730_p5 = scmp.lt.s32.totalorder %s10367_s25, %s9728_s17 }
 0x19d   : > { %p9725_p11 = pnand %p9723_p0, %p9709_p8  ;;  %p9731_p7 = scmp.lt.s32.totalorder %s9729_s5, %s9722_s14 }
 0x19f   : > { %p9726_p6 = pneg %p9725_p11  ;;  %p9732_p1 = por %p9731_p7, %p9730_p5 }
 0x1a1   : > { %p9733_p3 = pnand %p9732_p1, %p9726_p6 }
 0x1a3   : > { %9736 = shalt.err (!%p9733_p3)
}
 0x1a4   : > { %9136 = dma.hbm_to_vmem [thread:$0]  (!%p10363_p2), %s10360_s11, 128, %s10367_s25, %s989_s12  }
 0x1a5   : > { %s1006_s13 = sand.u32 1, %s9865_s0   ;;  %s1010_s17 = scalar_lea.vmem [#allocation5], %s10356_s3 }
 0x1a6   : > { %s1017_s5 = sshll.u32 %s1010_s17, 4  ;;  %s1007_s4 = scalar_lea.sflag [#allocation6], %s1006_s13  ;;  %s1018_s5 = int_to_ptr.vmem [resolvable:$true] %s1017_s5 }
 0x1a7   : > { %s9737_s14 = scalar_lea.hbm %s10370_s8, 128  ;;  %s9742_s23 = scalar_lea.hbm %s11378_s10, 256 }
 0x1a8   : > { %p9738_p6 = scmp.ne.s32.totalorder %s10370_s8, %s9737_s14  ;;  %p9743_p4 = scmp.lt.u32.totalorder %s10370_s8, %s11378_s10 }
 0x1a9   : > { %p9744_p9 = scmp.lt.u32.totalorder %s9742_s23, %s9737_s14  ;;  %p9746_p12 = scmp.lt.u32.totalorder %s9737_s14, %s10370_s8 }
 0x1aa   : > { %p9740_p11 = pnand %p9738_p6, %p9709_p8 }
 0x1ab   : > { %p9745_p10 = por %p9744_p9, %p9743_p4 }
 0x1ac   : > { %p9741_p0 = pneg %p9740_p11 }
 0x1ad   : > { %p9747_p13 = por %p9746_p12, %p9745_p10 }
 0x1af   : > { %p9748_p5 = pnand %p9747_p13, %p9741_p0 }
 0x1b1   : > { %9751 = shalt.err (!%p9748_p5)
}
 0x1b2   : > { %s9752_s12 = scalar_lea.vmem %s1018_s5, 128  ;;  %s9915_s3 = smov [#allocation5]  }
 0x1b3   : > { %p9753_p7 = scmp.ne.s32.totalorder %s1018_s5, %s9752_s12  ;;  %s9757_s11 = sshll.u32 %s9915_s3, 4  ;;  %s9758_s11 = int_to_ptr.vmem [resolvable:$false] %s9757_s11 }
 0x1b4   : > { %s9759_s25 = scalar_lea.vmem %s9758_s11, 256  ;;  %p9760_p6 = scmp.lt.s32.totalorder %s1018_s5, %s9758_s11 }
 0x1b5   : > { %p9755_p1 = pnand %p9753_p7, %p9709_p8  ;;  %p9761_p11 = scmp.lt.s32.totalorder %s9759_s25, %s9752_s12 }
 0x1b7   : > { %p9756_p3 = pneg %p9755_p1  ;;  %p9762_p4 = por %p9761_p11, %p9760_p6 }
 0x1b9   : > { %p9763_p9 = pnand %p9762_p4, %p9756_p3 }
 0x1bb   : > { %9766 = shalt.err (!%p9763_p9)
}
 0x1bc   : > { %9139 = dma.hbm_to_vmem [thread:$0]  (!%p10363_p2), %s10370_s8, 128, %s1018_s5, %s1007_s4  }
 0x1bd   : > { %p11384_p0 = scmp.ne.s32.totalorder %s11373_s28, 0 }
 0x1be   : > { %s10413_s13 = sand.u32 (!%p11384_p0), 1, %s9857_s16   ;;  %p11385_p8 = scmp.ne.s32.totalorder (!%p11384_p0), %s11380_s29, 0 }
 0x1bf   : > { %1040 = sbr.rel (%p11384_p0) target bundleno = 9766 (0x2626), region = 140  ;;  %s10416_s17 = sshll.u32 (!%p11384_p0), %s10413_s13, 3 }
 0x1c0   : > { %s1043_s14 = scalar_lea.sflag (!%p11384_p0), [#allocation3], %s10413_s13  ;;  %s1046_s23 = scalar_lea.vmem (!%p11384_p0), [#allocation2], %s10416_s17 }
 0x1c6   : > { %9812 = dma.done.wait (%p11385_p8), %s1043_s14, 128  }
 0x1c7   : > { %9814 = vsyncadd (%p11385_p8), %s1043_s14, 4294967168  ;;  %s1051_s8 = sand.u32 1, %s10110_s26   ;;  %s11313_s28 = scalar_lea.vmem [#allocation5], %s10416_s17 }
 0x1c8   : > { %s1052_s6 = scalar_lea.sflag [#allocation6], %s1051_s8 }
 0x1c9   : > { %9816 = dma.done.wait (%p11385_p8), %s1052_s6, 128  }
 0x1ca   : > { %9818 = vsyncadd (%p11385_p8), %s1052_s6, 4294967168  ;;  %p11386_p2 = scmp.eq.s32.totalorder %s10110_s26, 0 }
 0x1cc   : > { %9820 = dma.done.wait (%p11386_p2), [#allocation6], 32   ;;  %p11387_p10 = pmov %p11386_p2 }
 0x1cd   : > { %p11388_p12 = pmov %p11386_p2 }
 0x1ce   : > { %9822 = vsyncadd (%p11387_p10), [#allocation6], 4294967264 }
 0x1cf   : > { %9824 = dma.done.wait (%p11388_p12), [#allocation9], 64   ;;  %p11389_p13 = pmov %p11386_p2 }
 0x1d0   : > { %p11390_p5 = pmov %p11386_p2 }
 0x1d1   : > { %9826 = vsyncadd (%p11389_p13), [#allocation9], 4294967232 }
 0x1d2   : > { %9828 = dma.done.wait (%p11390_p5), [#allocation12], 1056   ;;  %p11391_p7 = pmov %p11386_p2 }
 0x1d3   : > { %p11392_p1 = pmov %p11386_p2 }
 0x1d4   : > { %9830 = vsyncadd (%p11391_p7), [#allocation12], 4294966240 }
 0x1d5   : > { %9832 = dma.done.wait (%p11392_p1), [#allocation15], 1056   ;;  %p11393_p3 = pmov %p11392_p1 }
 0x1d6   : > { %p11394_p6 = pmov %p11392_p1 }
 0x1d7   : > { %9834 = vsyncadd (%p11393_p3), [#allocation15], 4294966240 }
 0x1d8   : > { %9836 = dma.done.wait (%p11394_p6), [#allocation18], 1056   ;;  %p11395_p11 = pmov %p11392_p1 }
 0x1d9   : > { %p11396_p4 = pmov %p11392_p1 }
 0x1da   : > { %9838 = vsyncadd (%p11395_p11), [#allocation18], 4294966240 }
 0x1db   : > { %9840 = dma.done.wait (%p11396_p4), [#allocation21], 1056   ;;  %p11397_p9 = pmov %p11392_p1 }
 0x1dc   : > { %p11398_p0 = pmov %p11392_p1 }
 0x1dd   : > { %9842 = vsyncadd (%p11397_p9), [#allocation21], 4294966240 }
 0x1de   : > { %9844 = dma.done.wait (%p11398_p0), [#allocation24], 64   ;;  %p11399_p8 = pmov %p11398_p0 }
 0x1df   : > { %s11400_s29 = sld [smem:[#allocation41_spill]]  ;;  %v9916_v0 = vmov 0.0|0.0   ;;  %vm9917_vm0 = vmmov 0   ;;  %v9918_v1 = vmov 0.0   ;;  %s11401_s5 = sld [smem:[#allocation42_spill]]  ;;  %v10470_v8 = vld [vmem:[%s1046_s23] sm:$0xff]  ;;  %v1395_v19 = vlaneseq }
 0x1e0   : > { %9846 = vsyncadd (%p11399_p8), [#allocation24], 4294967232  ;;  %8915 = vmatprep.subr.bf16.mxu1 %v9916_v0  ;;  %8549 = vmatprep.mubr.msk.f32.mxu1 %vm9917_vm0, %v9918_v1  ;;  %v10474_v9 = vld [vmem:[%s11313_s28] sm:$0xff]  ;;  %vm1222_vm1 = vcmask 261120   ;;  %s11402_s4 = sld [smem:[#allocation43_spill]]  ;;  %s11320_s12 = smov 104  }
 0x1e1   : > { %8563 = vmatprep.subr.mxu0 %v9918_v1  ;;  %8565 = vmatprep.mubr.msk.f32.mxu0 %vm9917_vm0, %v9918_v1  ;;  %v1210_v10 = vadd.f32 %v10474_v9, %v10470_v8  ;;  %s11322_s3 = smov 120   ;;  %s11311_s11 = smov 96   ;;  %v9923_v17 = vmov 1983009808   ;;  %v9924_v21 = vmov 1934713408  }
 0x1e2   : > { %s11324_s25 = smov 112   ;;  %v1393_v18 = vunpack.c.l.s4 %v9923_v17  ;;  %v1425_v22 = vunpack.c.l.s4 %v9924_v21  ;;  %v1396_v26 = vshrl.u32 %v1395_v19, 7  ;;  %vm1820_vm2 = vcmask 64512   ;;  %s11403_s14 = sld [smem:[#allocation45_spill]] }
 0x1e3   : > { %s11318_s23 = smov 16   ;;  %s11316_s8 = smov 8   ;;  %vm2614_vm3 = vcmask 130048   ;;  %vm2616_vm4 = vcmask 195584   ;;  %vm3710_vm5 = vcmask 48128   ;;  %vm3758_vm6 = vcmask 1045504  }
 0x1e4   : > { %v1394_v25 = vunpack.c.0.s8 %v1393_v18  ;;  %v1426_v32 = vunpack.c.0.s8 %v1425_v22  ;;  %s11314_s6 = smov 24   ;;  %s11405_s28 = sld [smem:[#allocation40_spill]]  ;;  %vm4425_vm7 = vcmask 523264  }
 0x1e5   : > { %v1211_v2 = vld [vmem:[%s11400_s29] sm:$0xff]  ;;  %v1212_v3 = vld [vmem:[%s11400_s29 + $0x8] sm:$0xff]  ;;  %v1213_v4 = vld [vmem:[%s11400_s29 + $0x10] sm:$0xff]  ;;  %p1197_p2 = scmp.lt.s32.totalorder %s10110_s26, 1  ;;  %s11413_s10 = sld [smem:[#allocation59_spill]] }
 0x1e6   : > { %v8916_v5 = vpack.c.bf16 %v1212_v3, %v1211_v2  ;;  %v1214_v6 = vld [vmem:[%s11400_s29 + $0x18] sm:$0xff]  ;;  %v8211_v11 = vld [vmem:[%s11401_s5] ss:$0 sm:$0xff]  ;;  %v1297_v16 = vld [vmem:[%s11402_s4 + $0x8] sm:$0xff]  ;;  %v10495_v33 = vsub.s32 %v1394_v25, %v1396_v26  ;;  %v10501_v37 = vsub.s32 %v1426_v32, %v1396_v26  ;;  %s11414_s19 = sld [smem:[#allocation61_spill]]  ;;  %s11415_s20 = sld [smem:[#allocation62_spill]] }
 0x1e7   : > { %v8919_v7 = vpack.c.bf16 %v1214_v6, %v1213_v4  ;;  %v1296_v15 = vld [vmem:[%s11402_s4] sm:$0xff]  ;;  %v1298_v23 = vld [vmem:[%s11402_s4 + $0x10] sm:$0xff]  ;;  %v1299_v24 = vld [vmem:[%s11402_s4 + $0x18] sm:$0xff]  ;;  %s11416_s24 = scalar_lea.vmem [#allocation5], %s10416_s17  ;;  %s11419_s27 = smov 96  }
 0x1e8   : > { %8917 = vmatpush3.bf16.msra.mxu1 %v8916_v5  ;;  %v8922_v20 = vpack.c.bf16 %v1297_v16, %v1296_v15  ;;  %v8925_v27 = vpack.c.bf16 %v1299_v24, %v1298_v23  ;;  %p11422_p12 = scmp.ne.s32.totalorder %s11381_s2, 0 }
 0x1e9   : > { %8918 = vmatprep.subr.bf16.mxu1 %v9916_v0 }
 0x1ec   : > { %8920 = vmatpush3.bf16.msra.mxu1 %v8919_v7 }
 0x1ed   : > { %8921 = vmatprep.subr.bf16.mxu1 %v9916_v0 }
 0x1ef   : > { %8550 = vmatmul.mubr.msk.f32.vlgmr.msra.gmra.mrb[0].mxu1 %vm1222_vm1, %v1210_v10 }
 0x1f0   : > { %8560 = vmatprep.mubr.msk.f32.mxu1 %vm9917_vm0, %v9918_v1  ;;  %8923 = vmatpush3.bf16.msra.mxu1 %v8922_v20 }
 0x1f1   : > { %8924 = vmatprep.subr.bf16.mxu1 %v9916_v0 }
 0x1f4   : > { %8926 = vmatpush3.bf16.msra.mxu1 %v8925_v27 }
 0x1f5   : > { %8568 = vmatprep.subr.mxu1 %v9918_v1 }
 0x1f7   : > { %8561 = vmatmul.mubr.msk.f32.vlgmr.msra.gmra.mrb[2].mxu1 %vm1222_vm1, %v10470_v8 }
 0x1f8   : > { %8570 = vmatprep.mubr.msk.f32.mxu1 %vm9917_vm0, %v9918_v1 }
 0x2c2   : > { %v1292_v12 = vpop.f32.mrb[0].mxu1 }
 0x2c3   : > { %v1293_v13 = vadd.f32 %v8211_v11, %v1292_v12  ;;  %v8551_v14 = vpop.f32.mrb[1].mxu1 }
 0x2c5   : > { %1387 = vrot.lane.b32.xlu1 %v1293_v13, %s11320_s12  ;;  %1381 = vrot.lane.b32.xlu0 %v1293_v13, %s11322_s3 }
 0x2c9   : > { %1526 = vrot.lane.b32.xlu1 %v1293_v13, %s11311_s11  ;;  %1384 = vrot.lane.b32.xlu0 %v1293_v13, %s11324_s25 }
 0x337   : > { %v1388_v28 = vpop.permute.xlu1 %1387  ;;  %v1382_v29 = vpop.permute.xlu0 %1381 }
 0x338   : > { %v1406_v30 = vcombine.low %v1382_v29, %v1388_v28  ;;  %v1407_v31 = vcombine.high %v1382_v29, %v1388_v28  ;;  %1528 = vrot.lane.b32.xlu0 %v1382_v29, %s11311_s11 }
 0x33a   : > { %v1414_v38 = vrot.slane %v1406_v30, %v10495_v33  ;;  %v1421_v39 = vrot.slane %v1407_v31, %v10495_v33 }
 0x33b   : > { %v1385_v34 = vpop.permute.xlu0 %1384  ;;  %v1527_v10 = vpop.permute.xlu1 %1526 }
 0x33c   : > { %v1390_v35 = vcombine.low %v1293_v13, %v1385_v34  ;;  %v1391_v36 = vcombine.high %v1293_v13, %v1385_v34  ;;  %1532 = vrot.lane.b32.xlu0 %v1388_v28, %s11311_s11  ;;  %1530 = vrot.lane.b32.xlu1 %v1385_v34, %s11311_s11  ;;  %s11404_s11 = sld [smem:[#allocation39_spill]] }
 0x33e   : > { %v1398_v40 = vrot.slane %v1390_v35, %v10495_v33  ;;  %v1405_v41 = vrot.slane %v1391_v36, %v10495_v33 }
 0x340   : > { %v1422_v42 = vcombine.low %v1398_v40, %v1414_v38  ;;  %v1423_v43 = vcombine.high %v1398_v40, %v1414_v38  ;;  %v1438_v44 = vcombine.low %v1405_v41, %v1421_v39  ;;  %v1439_v45 = vcombine.high %v1405_v41, %v1421_v39 }
 0x342   : > { %v1430_v46 = vrot.slane %v1422_v42, %v10501_v37  ;;  %v1437_v47 = vrot.slane %v1423_v43, %v10501_v37  ;;  %v1446_v48 = vrot.slane %v1438_v44, %v10501_v37  ;;  %v1453_v49 = vrot.slane %v1439_v45, %v10501_v37 }
 0x344   : > { %v1458_v50 = vcombine.low %v1430_v46, %v1437_v47  ;;  %v8215_v51 = vcombine.high %v1430_v46, %v1437_v47  ;;  %v1474_v52 = vcombine.low %v1446_v48, %v1453_v49  ;;  %v8216_v53 = vcombine.high %v1446_v48, %v1453_v49 }
 0x346   : > { %v1465_v54 = vrot.slane %v1458_v50, %v10495_v33  ;;  %v1473_v55 = vrot.slane %v8215_v51, %v10495_v33  ;;  %v1481_v56 = vrot.slane %v1474_v52, %v10495_v33  ;;  %v1489_v57 = vrot.slane %v8216_v53, %v10495_v33  ;;  %v1376_v52 = vpop.f32.mrb[2].mxu1 }
 0x347   : > { %v8562_v53 = vpop.f32.mrb[3].mxu1 }
 0x348   : > { %v1490_v58 = vcombine.low %v1465_v54, %v1473_v55  ;;  %v1491_v59 = vcombine.high %v1465_v54, %v1473_v55  ;;  %v1506_v60 = vcombine.low %v1481_v56, %v1489_v57  ;;  %v1507_v61 = vcombine.high %v1481_v56, %v1489_v57 }
 0x34a   : > { %v1498_v62 = vrot.slane %v1490_v58, %v10501_v37  ;;  %v1514_v63 = vrot.slane %v1506_v60, %v10501_v37  ;;  %v1505_v2 = vrot.slane %v1491_v59, %v10501_v37  ;;  %v1521_v3 = vrot.slane %v1507_v61, %v10501_v37 }
 0x34c   : > { %v1522_v4 = vcombine.low %v1498_v62, %v1514_v63  ;;  %v1523_v5 = vcombine.high %v1498_v62, %v1514_v63  ;;  %v1524_v6 = vcombine.low %v1505_v2, %v1521_v3  ;;  %v1525_v7 = vcombine.high %v1505_v2, %v1521_v3 }
 0x3aa   : > { %v1529_v11 = vpop.permute.xlu0 %1528 }
 0x3ae   : > { %v1531_v12 = vpop.permute.xlu1 %1530  ;;  %v1533_v13 = vpop.permute.xlu0 %1532 }
 0x3af   : > { %v1538_v14 = vcombine.low %v1527_v10, %v1531_v12  ;;  %v1539_v15 = vcombine.high %v1527_v10, %v1531_v12  ;;  %v1554_v16 = vcombine.low %v1529_v11, %v1533_v13  ;;  %v1555_v17 = vcombine.high %v1529_v11, %v1533_v13 }
 0x3b1   : > { %v1546_v18 = vrot.slane %v1538_v14, %v10495_v33  ;;  %v1553_v19 = vrot.slane %v1539_v15, %v10495_v33  ;;  %v1562_v20 = vrot.slane %v1554_v16, %v10495_v33  ;;  %v1569_v21 = vrot.slane %v1555_v17, %v10495_v33 }
 0x3b3   : > { %v1570_v22 = vcombine.low %v1546_v18, %v1562_v20  ;;  %v1571_v23 = vcombine.high %v1546_v18, %v1562_v20  ;;  %v1586_v24 = vcombine.low %v1553_v19, %v1569_v21  ;;  %v1587_v25 = vcombine.high %v1553_v19, %v1569_v21 }
 0x3b5   : > { %v1578_v26 = vrot.slane %v1570_v22, %v10501_v37  ;;  %v1585_v27 = vrot.slane %v1571_v23, %v10501_v37  ;;  %v1594_v28 = vrot.slane %v1586_v24, %v10501_v37  ;;  %v1601_v29 = vrot.slane %v1587_v25, %v10501_v37  ;;  %v8213_v25 = vld [vmem:[#allocation7] ss:$0 sm:$0xff] }
 0x3b7   : > { %v1606_v30 = vcombine.low %v1578_v26, %v1585_v27  ;;  %v8217_v31 = vcombine.high %v1578_v26, %v1585_v27  ;;  %v1622_v32 = vcombine.low %v1594_v28, %v1601_v29  ;;  %v8218_v34 = vcombine.high %v1594_v28, %v1601_v29 }
 0x3b8   : > { %v1377_v26 = vadd.f32 %v8213_v25, %v1376_v52 }
 0x3b9   : > { %v1613_v35 = vrot.slane %v1606_v30, %v10495_v33  ;;  %v1621_v36 = vrot.slane %v8217_v31, %v10495_v33  ;;  %v1629_v38 = vrot.slane %v1622_v32, %v10495_v33  ;;  %v1637_v39 = vrot.slane %v8218_v34, %v10495_v33 }
 0x3bb   : > { %v1638_v40 = vcombine.low %v1613_v35, %v1621_v36  ;;  %v1639_v41 = vcombine.high %v1613_v35, %v1621_v36  ;;  %v1654_v42 = vcombine.low %v1629_v38, %v1637_v39  ;;  %v1655_v43 = vcombine.high %v1629_v38, %v1637_v39 }
 0x3bd   : > { %v1646_v44 = vrot.slane %v1638_v40, %v10501_v37  ;;  %v1662_v45 = vrot.slane %v1654_v42, %v10501_v37  ;;  %v1653_v48 = vrot.slane %v1639_v41, %v10501_v37  ;;  %v1669_v49 = vrot.slane %v1655_v43, %v10501_v37 }
 0x3bf   : > { %v1670_v46 = vcombine.low %v1646_v44, %v1662_v45  ;;  %v1671_v47 = vcombine.high %v1646_v44, %v1662_v45  ;;  %v1672_v50 = vcombine.low %v1653_v48, %v1669_v49  ;;  %v1673_v51 = vcombine.high %v1653_v48, %v1669_v49 }
 0x3c1   : > { %8564 = vmatpush3.xpose.msk.msra.mxu0 %vm1820_vm2, %v1670_v46  ;;  %8569 = vmatpush3.xpose.msk.msra.mxu1 %vm1820_vm2, %v1671_v47 }
 0x3c2   : > { %8573 = vmatprep.subr.mxu0 %v9918_v1  ;;  %8578 = vmatprep.subr.mxu1 %v9918_v1 }
 0x3c4   : > { %8566 = vmatmul.mubr.msk.f32.vlgmr.msra.gmra.mrb[0].mxu0 %vm1820_vm2, %v1522_v4  ;;  %8571 = vmatmul.mubr.msk.f32.vlgmr.msra.gmra.mrb[4].mxu1 %vm1820_vm2, %v1523_v5 }
 0x3c5   : > { %8574 = vmatpush3.xpose.msk.msra.mxu0 %vm1820_vm2, %v1672_v50  ;;  %8579 = vmatpush3.xpose.msk.msra.mxu1 %vm1820_vm2, %v1673_v51 }
 0x3c6   : > { %8575 = vmatprep.mubr.msk.f32.mxu0 %vm9917_vm0, %v9918_v1  ;;  %8580 = vmatprep.mubr.msk.f32.mxu1 %vm9917_vm0, %v9918_v1 }
 0x3c7   : > { %8583 = vmatprep.subr.mxu0 %v9918_v1  ;;  %8588 = vmatprep.subr.mxu1 %v9918_v1 }
 0x3c8   : > { %8576 = vmatmul.mubr.msk.f32.vlgmr.msra.gmra.mrb[2].mxu0 %vm1820_vm2, %v1524_v6  ;;  %8581 = vmatmul.mubr.msk.f32.vlgmr.msra.gmra.mrb[6].mxu1 %vm1820_vm2, %v1525_v7 }
 0x3c9   : > { %8585 = vmatprep.mubr.msk.f32.mxu0 %vm9917_vm0, %v9918_v1  ;;  %8590 = vmatprep.mubr.msk.f32.mxu1 %vm9917_vm0, %v9918_v1 }
 0x497   : > { %v1893_v54 = vpop.f32.mrb[0].mxu0  ;;  %v1969_v55 = vpop.f32.mrb[4].mxu1 }
 0x498   : > { %v2125_v56 = vmul.f32 0.35355338, %v1893_v54  ;;  %v2126_v57 = vmul.f32 0.35355338, %v1969_v55  ;;  %v8567_v58 = vpop.f32.mrb[1].mxu0  ;;  %v8572_v59 = vpop.f32.mrb[5].mxu1 }
 0x49a   : > { %v2129_v60 = vsel %vm1820_vm2, %v2125_v56, -inf  ;;  %v2132_v61 = vsel %vm1820_vm2, %v2126_v57, -inf }
 0x49b   : > { %2130 = vmax.xlane.f32.xlu1 %v2129_v60  ;;  %v2045_v62 = vpop.f32.mrb[2].mxu0  ;;  %2133 = vmax.xlane.f32.xlu0 %v2132_v61  ;;  %v2121_v63 = vpop.f32.mrb[6].mxu1 }
 0x49c   : > { %v2127_v2 = vmul.f32 0.35355338, %v2045_v62  ;;  %v2128_v3 = vmul.f32 0.35355338, %v2121_v63  ;;  %v8577_v4 = vpop.f32.mrb[3].mxu0  ;;  %v8582_v5 = vpop.f32.mrb[7].mxu1 }
 0x49e   : > { %v2135_v6 = vsel %vm1820_vm2, %v2127_v2, -inf  ;;  %v2138_v7 = vsel %vm1820_vm2, %v2128_v3, -inf }
 0x49f   : > { %2136 = vmax.xlane.f32.xlu0 %v2135_v6  ;;  %2139 = vmax.xlane.f32.xlu1 %v2138_v7 }
 0x528   : > { %v2131_v10 = vpop.xlane.xlu1 %2130  ;;  %v2134_v11 = vpop.xlane.xlu0 %2133 }
 0x529   : > { %v2141_v12 = vsub.f32 %v2125_v56, %v2131_v10  ;;  %v2142_v13 = vsub.f32 %v2126_v57, %v2134_v11 }
 0x52b   : > { %v2145_v14 = vmul.f32 1.442695, %v2141_v12  ;;  %v2147_v15 = vmul.f32 1.442695, %v2142_v13 }
 0x52c   : > { %v2137_v16 = vpop.xlane.xlu0 %2136  ;;  %v2140_v27 = vpop.xlane.xlu1 %2139 }
 0x52d   : > { %9263 = vpow2.f32 %v2145_v14  ;;  %v2143_v17 = vsub.f32 %v2127_v2, %v2137_v16  ;;  %v2144_v28 = vsub.f32 %v2128_v3, %v2140_v27 }
 0x52e   : > { %9265 = vpow2.f32 %v2147_v15 }
 0x52f   : > { %v2149_v18 = vmul.f32 1.442695, %v2143_v17  ;;  %v2151_v29 = vmul.f32 1.442695, %v2144_v28 }
 0x531   : > { %9267 = vpow2.f32 %v2149_v18 }
 0x532   : > { %9269 = vpow2.f32 %v2151_v29 }
 0x537   : > { %v10561_v19 = vpop.eup %9263 }
 0x538   : > { %v10563_v20 = vpop.eup %9265  ;;  %v2153_v21 = vsel %vm1820_vm2, %v10561_v19, 0.0 }
 0x539   : > { %2154 = vadd.xlane.f32.xlu0 %v2153_v21  ;;  %v2156_v22 = vsel %vm1820_vm2, %v10563_v20, 0.0 }
 0x53a   : > { %2157 = vadd.xlane.f32.xlu1 %v2156_v22 }
 0x53b   : > { %v10569_v23 = vpop.eup %9267 }
 0x53c   : > { %v2159_v24 = vsel %vm1820_vm2, %v10569_v23, 0.0  ;;  %v10575_v30 = vpop.eup %9269 }
 0x53d   : > { %2160 = vadd.xlane.f32.xlu0 %v2159_v24  ;;  %v2162_v31 = vsel %vm1820_vm2, %v10575_v30, 0.0 }
 0x54b   : > { %1678 = vrot.lane.b32.xlu1 %v1377_v26, %s11324_s25 }
 0x553   : > { %1675 = vrot.lane.b32.xlu0 %v1377_v26, %s11322_s3 }
 0x56f   : > { %2163 = vadd.xlane.f32.xlu1 %v2162_v31 }
 0x580   : > { %1681 = vrot.lane.b32.xlu1 %v1377_v26, %s11320_s12 }
 0x5c6   : > { %v2155_v34 = vpop.xlane.xlu0 %2154 }
 0x5c7   : > { %v2158_v32 = vpop.xlane.xlu1 %2157  ;;  %9271 = vrcp.f32 %v2155_v34 }
 0x5c8   : > { %9273 = vrcp.f32 %v2158_v32 }
 0x5ca   : > { %v2161_v36 = vpop.xlane.xlu0 %2160 }
 0x5cb   : > { %v1679_v35 = vpop.permute.xlu1 %1678  ;;  %9275 = vrcp.f32 %v2161_v36 }
 0x5cc   : > { %v1684_v39 = vcombine.low %v1377_v26, %v1679_v35  ;;  %v1685_v40 = vcombine.high %v1377_v26, %v1679_v35 }
 0x5ce   : > { %v1676_v41 = vpop.permute.xlu0 %1675  ;;  %v1692_v45 = vrot.slane %v1684_v39, %v10495_v33  ;;  %v1699_v46 = vrot.slane %v1685_v40, %v10495_v33 }
 0x5d1   : > { %v9272_v3 = vpop.eup %9271 }
 0x5d2   : > { %v9274_v10 = vpop.eup %9273  ;;  %v2169_v21 = vmul.f32 %v9272_v3, %v10561_v19 }
 0x5d3   : > { %v2170_v22 = vmul.f32 %v9274_v10, %v10563_v20  ;;  %v2618_v20 = vld [vmem:[%s11403_s14] sm:$0xff] }
 0x5d5   : > { %v9276_v13 = vpop.eup %9275 }
 0x5d6   : > { %v2171_v26 = vmul.f32 %v9276_v13, %v10569_v23  ;;  %v2619_v23 = vld [vmem:[%s11403_s14 + $0x8] sm:$0xff] }
 0x5d7   : > { %v8928_v27 = vpack.c.bf16 %v2619_v23, %v2618_v20 }
 0x5fc   : > { %v2164_v38 = vpop.xlane.xlu1 %2163 }
 0x5fd   : > { %9277 = vrcp.f32 %v2164_v38 }
 0x600   : > { %v1682_v42 = vpop.permute.xlu1 %1681 }
 0x601   : > { %v1700_v43 = vcombine.low %v1676_v41, %v1682_v42  ;;  %v1701_v44 = vcombine.high %v1676_v41, %v1682_v42 }
 0x603   : > { %v1708_v47 = vrot.slane %v1700_v43, %v10495_v33  ;;  %v1715_v48 = vrot.slane %v1701_v44, %v10495_v33 }
 0x605   : > { %v1716_v49 = vcombine.low %v1692_v45, %v1708_v47  ;;  %v1717_v50 = vcombine.high %v1692_v45, %v1708_v47  ;;  %v1732_v51 = vcombine.low %v1699_v46, %v1715_v48  ;;  %v1733_v52 = vcombine.high %v1699_v46, %v1715_v48 }
 0x607   : > { %v1724_v53 = vrot.slane %v1716_v49, %v10501_v37  ;;  %v1731_v54 = vrot.slane %v1717_v50, %v10501_v37  ;;  %v1740_v55 = vrot.slane %v1732_v51, %v10501_v37  ;;  %v1747_v56 = vrot.slane %v1733_v52, %v10501_v37  ;;  %v9278_v18 = vpop.eup %9277  ;;  %v2620_v50 = vld [vmem:[%s11403_s14 + $0x10] sm:$0xff]  ;;  %v2621_v51 = vld [vmem:[%s11403_s14 + $0x18] sm:$0xff] }
 0x608   : > { %v2172_v19 = vmul.f32 %v9278_v18, %v10575_v30 }
 0x609   : > { %v1752_v57 = vcombine.low %v1724_v53, %v1731_v54  ;;  %v8219_v58 = vcombine.high %v1724_v53, %v1731_v54  ;;  %v1768_v59 = vcombine.low %v1740_v55, %v1747_v56  ;;  %v8220_v60 = vcombine.high %v1740_v55, %v1747_v56 }
 0x60a   : > { %v8931_v56 = vpack.c.bf16 %v2621_v51, %v2620_v50  ;;  %v8241_v50 = vld [vmem:[#allocation17] ss:$0 sm:$0xff] }
 0x60b   : > { %v1759_v61 = vrot.slane %v1752_v57, %v10495_v33  ;;  %v1767_v62 = vrot.slane %v8219_v58, %v10495_v33  ;;  %v1775_v63 = vrot.slane %v1768_v59, %v10495_v33  ;;  %v1783_v2 = vrot.slane %v8220_v60, %v10495_v33 }
 0x60d   : > { %v1784_v4 = vcombine.low %v1759_v61, %v1767_v62  ;;  %v1800_v5 = vcombine.low %v1775_v63, %v1783_v2  ;;  %v1785_v6 = vcombine.high %v1759_v61, %v1767_v62  ;;  %v1801_v7 = vcombine.high %v1775_v63, %v1783_v2 }
 0x60f   : > { %v1792_v11 = vrot.slane %v1784_v4, %v10501_v37  ;;  %v1808_v12 = vrot.slane %v1800_v5, %v10501_v37  ;;  %v1799_v14 = vrot.slane %v1785_v6, %v10501_v37  ;;  %v1815_v15 = vrot.slane %v1801_v7, %v10501_v37 }
 0x611   : > { %v1816_v16 = vcombine.low %v1792_v11, %v1808_v12  ;;  %v1817_v17 = vcombine.high %v1792_v11, %v1808_v12  ;;  %v1818_v24 = vcombine.low %v1799_v14, %v1815_v15  ;;  %v1819_v25 = vcombine.high %v1799_v14, %v1815_v15 }
 0x613   : > { %8584 = vmatpush3.msra.mxu0 %v1816_v16  ;;  %8589 = vmatpush3.msra.mxu1 %v1817_v17 }
 0x614   : > { %8586 = vmatmul.mubr.msk.f32.vlgmr.msra.gmra.mrb[4].mxu0 %vm1820_vm2, %v2169_v21  ;;  %8591 = vmatmul.mubr.msk.f32.vlgmr.msra.gmra.mrb[8].mxu1 %vm1820_vm2, %v2170_v22 }
 0x615   : > { %8593 = vmatprep.subr.mxu0 %v9918_v1  ;;  %8598 = vmatprep.subr.mxu1 %v9918_v1 }
 0x616   : > { %8594 = vmatpush3.msra.mxu0 %v1818_v24  ;;  %8599 = vmatpush3.msra.mxu1 %v1819_v25 }
 0x617   : > { %8595 = vmatprep.mubr.msk.f32.mxu0 %vm9917_vm0, %v9918_v1  ;;  %8600 = vmatprep.mubr.msk.f32.mxu1 %vm9917_vm0, %v9918_v1 }
 0x618   : > { %8596 = vmatmul.mubr.msk.f32.vlgmr.msra.gmra.mrb[6].mxu0 %vm1820_vm2, %v2171_v26  ;;  %8601 = vmatmul.mubr.msk.f32.vlgmr.msra.gmra.mrb[10].mxu1 %vm1820_vm2, %v2172_v19  ;;  %v8235_v26 = vld [vmem:[#allocation8] ss:$0 sm:$0xff] }
 0x619   : > { %8927 = vmatprep.subr.bf16.mxu0 %v9916_v0  ;;  %8611 = vmatprep.mubr.msk.f32.mxu0 %vm9917_vm0, %v9918_v1 }
 0x61a   : > { %8933 = vmatprep.subr.bf16.mxu1 %v9916_v0  ;;  %8622 = vmatprep.mubr.msk.f32.mxu1 %vm9917_vm0, %v9918_v1 }
 0x61b   : > { %8929 = vmatpush3.bf16.msra.mxu0 %v8928_v27 }
 0x61c   : > { %8930 = vmatprep.subr.bf16.mxu0 %v9916_v0 }
 0x61f   : > { %8932 = vmatpush3.bf16.msra.mxu0 %v8931_v56 }
 0x620   : > { %8939 = vmatprep.subr.bf16.mxu0 %v9916_v0 }
 0x6e7   : > { %v2242_v28 = vpop.f32.mrb[4].mxu0  ;;  %v2315_v29 = vpop.f32.mrb[8].mxu1 }
 0x6e8   : > { %v8587_v30 = vpop.f32.mrb[5].mxu0  ;;  %v8592_v31 = vpop.f32.mrb[9].mxu1 }
 0x6e9   : > { %v2819_v30 = vld [vmem:[#allocation16 + $0x8] sm:$0xff]  ;;  %v2820_v31 = vld [vmem:[#allocation16 + $0x10] sm:$0xff] }
 0x6eb   : > { %v2388_v32 = vpop.f32.mrb[6].mxu0  ;;  %v2461_v34 = vpop.f32.mrb[10].mxu1 }
 0x6ec   : > { %v2465_v35 = vcombine.low %v2242_v28, %v2388_v32  ;;  %v2466_v36 = vcombine.high %v2242_v28, %v2388_v32  ;;  %v2481_v38 = vcombine.low %v2315_v29, %v2461_v34  ;;  %v2482_v39 = vcombine.high %v2315_v29, %v2461_v34  ;;  %v8597_v40 = vpop.f32.mrb[7].mxu0  ;;  %v8602_v41 = vpop.f32.mrb[11].mxu1  ;;  %v2818_v29 = vld [vmem:[#allocation16] sm:$0xff]  ;;  %v2821_v34 = vld [vmem:[#allocation16 + $0x18] sm:$0xff] }
 0x6ed   : > { %v8940_v32 = vpack.c.bf16 %v2819_v30, %v2818_v29  ;;  %v2902_v29 = vld [vmem:[#allocation19] sm:$0xff]  ;;  %v2903_v30 = vld [vmem:[#allocation19 + $0x8] sm:$0xff] }
 0x6ee   : > { %v2473_v42 = vrot.slane %v2465_v35, %v10495_v33  ;;  %v2480_v43 = vrot.slane %v2466_v36, %v10495_v33  ;;  %v2489_v44 = vrot.slane %v2481_v38, %v10495_v33  ;;  %v2496_v45 = vrot.slane %v2482_v39, %v10495_v33 }
 0x6ef   : > { %v8943_v35 = vpack.c.bf16 %v2821_v34, %v2820_v31 }
 0x6f0   : > { %v2497_v46 = vcombine.low %v2473_v42, %v2489_v44  ;;  %v2498_v47 = vcombine.high %v2473_v42, %v2489_v44  ;;  %v2513_v48 = vcombine.low %v2480_v43, %v2496_v45  ;;  %v2514_v49 = vcombine.high %v2480_v43, %v2496_v45  ;;  %v2734_v44 = vld [vmem:[#allocation13] sm:$0xff]  ;;  %v2735_v45 = vld [vmem:[#allocation13 + $0x8] sm:$0xff] }
 0x6f2   : > { %v2505_v52 = vrot.slane %v2497_v46, %v10501_v37  ;;  %v2512_v53 = vrot.slane %v2498_v47, %v10501_v37  ;;  %v2521_v54 = vrot.slane %v2513_v48, %v10501_v37  ;;  %v2528_v55 = vrot.slane %v2514_v49, %v10501_v37  ;;  %v2736_v47 = vld [vmem:[#allocation13 + $0x10] sm:$0xff]  ;;  %v2737_v48 = vld [vmem:[#allocation13 + $0x18] sm:$0xff] }
 0x6f3   : > { %v8934_v46 = vpack.c.bf16 %v2735_v45, %v2734_v44  ;;  %v8937_v49 = vpack.c.bf16 %v2737_v48, %v2736_v47  ;;  %v8239_v48 = vld [vmem:[#allocation14] ss:$0 sm:$0xff] }
 0x6f4   : > { %v2533_v57 = vcombine.low %v2505_v52, %v2512_v53  ;;  %v8233_v58 = vcombine.high %v2505_v52, %v2512_v53  ;;  %v2549_v59 = vcombine.low %v2521_v54, %v2528_v55  ;;  %v8234_v60 = vcombine.high %v2521_v54, %v2528_v55 }
 0x6f5   : > { %8935 = vmatpush3.bf16.msra.mxu1 %v8934_v46 }
 0x6f6   : > { %v2540_v61 = vrot.slane %v2533_v57, %v10495_v33  ;;  %v2548_v62 = vrot.slane %v8233_v58, %v10495_v33  ;;  %v2556_v63 = vrot.slane %v2549_v59, %v10495_v33  ;;  %v2564_v2 = vrot.slane %v8234_v60, %v10495_v33  ;;  %8936 = vmatprep.subr.bf16.mxu1 %v9916_v0  ;;  %v8237_v58 = vld [vmem:[#allocation10] ss:$0 sm:$0xff]  ;;  %v8238_v60 = vld [vmem:[#allocation11] ss:$0 sm:$0xff] }
 0x6f8   : > { %v2566_v3 = vcombine.high %v2540_v61, %v2548_v62  ;;  %v2582_v4 = vcombine.high %v2556_v63, %v2564_v2  ;;  %v2565_v5 = vcombine.low %v2540_v61, %v2548_v62  ;;  %v2581_v6 = vcombine.low %v2556_v63, %v2564_v2 }
 0x6f9   : > { %8938 = vmatpush3.bf16.msra.mxu1 %v8937_v49 }
 0x6fa   : > { %v2580_v7 = vrot.slane %v2566_v3, %v10501_v37  ;;  %v2596_v10 = vrot.slane %v2582_v4, %v10501_v37  ;;  %v2573_v11 = vrot.slane %v2565_v5, %v10501_v37  ;;  %v2589_v12 = vrot.slane %v2581_v6, %v10501_v37  ;;  %8945 = vmatprep.subr.bf16.mxu1 %v9916_v0 }
 0x6fc   : > { %v2599_v13 = vcombine.low %v2580_v7, %v2596_v10  ;;  %v2598_v14 = vcombine.high %v2573_v11, %v2589_v12  ;;  %v2600_v15 = vcombine.high %v2580_v7, %v2596_v10  ;;  %v2597_v16 = vcombine.low %v2573_v11, %v2589_v12 }
 0x6fe   : > { %2606 = vrot.lane.b32.xlu1 %v2599_v13, %s11318_s23  ;;  %2602 = vrot.lane.b32.xlu0 %v2598_v14, %s11316_s8 }
 0x702   : > { %2610 = vrot.lane.b32.xlu0 %v2600_v15, %s11314_s6  ;;  %s1198_s6 = scalar_select %p1197_p2, %s10110_s26, 1 }
 0x704   : > { %s8209_s8 = sshll.u32 %s1198_s6, 3  ;;  %s11410_s6 = sld [smem:[#allocation58_spill]] }
 0x705   : > { %s10653_s23 = scalar_lea.vmem %s11404_s11, %s8209_s8  ;;  %s1204_s12 = scalar_lea.vmem %s11405_s28, %s8209_s8 }
 0x706   : > { %v1208_v36 = vld [vmem:[%s1204_s12] sm:$0x3f]  ;;  %s11406_s28 = smov 104   ;;  %s11407_s12 = smov 16  }
 0x707   : > { %s11408_s11 = smov 8   ;;  %s11409_s8 = smov 24  }
 0x770   : > { %v2603_v17 = vpop.permute.xlu0 %2602  ;;  %v2607_v18 = vpop.permute.xlu1 %2606 }
 0x771   : > { %v2613_v21 = vsel %vm1820_vm2, %v2597_v16, %v2603_v17 }
 0x772   : > { %v2615_v24 = vsel %vm2614_vm3, %v2613_v21, %v2607_v18 }
 0x774   : > { %v2611_v22 = vpop.permute.xlu0 %2610 }
 0x775   : > { %v2617_v25 = vsel %vm2616_vm4, %v2615_v24, %v2611_v22 }
 0x776   : > { %8612 = vmatmul.mubr.msk.f32.vlgmr.msra.gmra.mrb[8].mxu0 %vm1222_vm1, %v2617_v25 }
 0x777   : > { %8633 = vmatprep.mubr.msk.f32.mxu0 %vm9917_vm0, %v9918_v1  ;;  %8941 = vmatpush3.bf16.msra.mxu0 %v8940_v32  ;;  %v8946_v32 = vpack.c.bf16 %v2903_v30, %v2902_v29 }
 0x778   : > { %8942 = vmatprep.subr.bf16.mxu0 %v9916_v0 }
 0x77b   : > { %8944 = vmatpush3.bf16.msra.mxu0 %v8943_v35  ;;  %v2904_v35 = vld [vmem:[#allocation19 + $0x10] sm:$0xff] }
 0x77c   : > { %8647 = vmatprep.subr.mxu0 %v9918_v1 }
 0x849   : > { %v2698_v19 = vpop.f32.mrb[8].mxu0 }
 0x84a   : > { %v2699_v20 = vadd.f32 %v8235_v26, %v2698_v19  ;;  %v8613_v23 = vpop.f32.mrb[9].mxu0 }
 0x84c   : > { %v2702_v27 = vadd.f32 %v2699_v20, %v10470_v8  ;;  %v10657_v8 = vld [vmem:[%s10653_s23] sm:$0x3f] }
 0x84d   : > { %v10660_v38 = vadd.f32 %v1208_v36, %v10657_v8  ;;  %v2905_v36 = vld [vmem:[#allocation19 + $0x18] sm:$0xff] }
 0x84e   : > { %v2705_v28 = vsel %vm1222_vm1, %v2702_v27, 0.0 }
 0x84f   : > { %2706 = vadd.xlane.f32.xlu1 %v2705_v28  ;;  %8634 = vmatmul.mubr.msk.f32.vlgmr.msra.gmra.mrb[10].mxu0 %vm1222_vm1, %v10660_v38 }
 0x850   : > { %8649 = vmatprep.mubr.msk.f32.mxu0 %vm9917_vm0, %v9918_v1 }
 0x8dc   : > { %v2707_v39 = vpop.xlane.xlu1 %2706 }
 0x8dd   : > { %v2709_v40 = vmul.f32 0.03125, %v2707_v39  ;;  %v8949_v39 = vpack.c.bf16 %v2905_v36, %v2904_v35 }
 0x8df   : > { %v2710_v41 = vsub.f32 %v2702_v27, %v2709_v40 }
 0x8e1   : > { %v2711_v42 = vmul.f32 %v2710_v41, %v2710_v41 }
 0x8e3   : > { %v2712_v43 = vsel %vm1222_vm1, %v2711_v42, 0.0 }
 0x8e4   : > { %2713 = vadd.xlane.f32.xlu0 %v2712_v43 }
 0x922   : > { %v2898_v51 = vpop.f32.mrb[10].mxu0 }
 0x923   : > { %v2899_v52 = vadd.f32 %v8241_v50, %v2898_v51  ;;  %v8635_v53 = vpop.f32.mrb[11].mxu0 }
 0x925   : > { %3136 = vrot.lane.b32.xlu1 %v2899_v52, %s11324_s25  ;;  %3133 = vrot.lane.b32.xlu0 %v2899_v52, %s11322_s3 }
 0x929   : > { %3139 = vrot.lane.b32.xlu1 %v2899_v52, %s11406_s28 }
 0x971   : > { %v2714_v54 = vpop.xlane.xlu0 %2713 }
 0x972   : > { %v2715_v55 = vmul.f32 0.03125, %v2714_v54 }
 0x974   : > { %v2716_v56 = vadd.f32 1e-05, %v2715_v55 }
 0x976   : > { %9279 = vrsqrt.f32 %v2716_v56 }
 0x980   : > { %v9280_v57 = vpop.eup %9279 }
 0x981   : > { %v2718_v59 = vmul.f32 %v9280_v57, %v2710_v41 }
 0x983   : > { %v2725_v61 = vmul.f32 %v8237_v58, %v2718_v59 }
 0x985   : > { %v10673_v62 = vadd.f32 %v8238_v60, %v2725_v61 }
 0x987   : > { %v2733_v63 = vadd.f32 %v10673_v62, %v10474_v9 }
 0x989   : > { %8623 = vmatmul.mubr.msk.f32.vlgmr.msra.gmra.mrb[12].mxu1 %vm1222_vm1, %v2733_v63 }
 0x98a   : > { %8644 = vmatprep.mubr.msk.f32.mxu1 %vm9917_vm0, %v9918_v1  ;;  %8947 = vmatpush3.bf16.msra.mxu1 %v8946_v32 }
 0x98b   : > { %8948 = vmatprep.subr.bf16.mxu1 %v9916_v0 }
 0x98e   : > { %8950 = vmatpush3.bf16.msra.mxu1 %v8949_v39 }
 0x98f   : > { %8652 = vmatprep.subr.mxu1 %v9918_v1 }
 0x991   : > { %8645 = vmatmul.mubr.msk.f32.vlgmr.msra.gmra.mrb[14].mxu1 %vm1222_vm1, %v10657_v8 }
 0x992   : > { %8654 = vmatprep.mubr.msk.f32.mxu1 %vm9917_vm0, %v9918_v1 }
 0x997   : > { %v3137_v2 = vpop.permute.xlu1 %3136  ;;  %v3134_v5 = vpop.permute.xlu0 %3133 }
 0x998   : > { %v3142_v3 = vcombine.low %v2899_v52, %v3137_v2  ;;  %v3143_v4 = vcombine.high %v2899_v52, %v3137_v2 }
 0x99a   : > { %v3150_v7 = vrot.slane %v3142_v3, %v10495_v33  ;;  %v3157_v10 = vrot.slane %v3143_v4, %v10495_v33 }
 0x99b   : > { %v3140_v6 = vpop.permute.xlu1 %3139 }
 0x99c   : > { %v3158_v11 = vcombine.low %v3134_v5, %v3140_v6  ;;  %v3159_v12 = vcombine.high %v3134_v5, %v3140_v6 }
 0x99e   : > { %v3166_v13 = vrot.slane %v3158_v11, %v10495_v33  ;;  %v3173_v9 = vrot.slane %v3159_v12, %v10495_v33 }
 0x9a0   : > { %v3174_v14 = vcombine.low %v3150_v7, %v3166_v13  ;;  %v3175_v15 = vcombine.high %v3150_v7, %v3166_v13  ;;  %v3190_v16 = vcombine.low %v3157_v10, %v3173_v9 }
 0x9a2   : > { %v3182_v17 = vrot.slane %v3174_v14, %v10501_v37  ;;  %v3189_v18 = vrot.slane %v3175_v15, %v10501_v37  ;;  %v3197_v21 = vrot.slane %v3190_v16, %v10501_v37 }
 0x9a4   : > { %v3200_v22 = vcombine.low %v3182_v17, %v3189_v18  ;;  %v8247_v24 = vcombine.high %v3182_v17, %v3189_v18  ;;  %v3222_v25 = vrot.slane %v3197_v21, %v10495_v33  ;;  %v3223_v26 = vcombine.high %v3197_v21, %v9918_v1 }
 0x9a6   : > { %v3207_v19 = vrot.slane %v3200_v22, %v10495_v33  ;;  %v3215_v20 = vrot.slane %v8247_v24, %v10495_v33  ;;  %v3230_v23 = vrot.slane %v3223_v26, %v10495_v33 }
 0x9a8   : > { %v3232_v27 = vcombine.high %v3207_v19, %v3215_v20  ;;  %v3248_v28 = vcombine.high %v3222_v25, %v3230_v23  ;;  %v3247_v31 = vcombine.low %v3222_v25, %v3230_v23  ;;  %v3231_v34 = vcombine.low %v3207_v19, %v3215_v20 }
 0x9aa   : > { %v3255_v40 = vrot.slane %v3247_v31, %v10501_v37  ;;  %v3239_v41 = vrot.slane %v3231_v34, %v10501_v37  ;;  %v3262_v43 = vrot.slane %v3248_v28, %v10501_v37  ;;  %v3246_v45 = vrot.slane %v3232_v27, %v10501_v37 }
 0x9ac   : > { %v3263_v42 = vcombine.low %v3239_v41, %v3255_v40  ;;  %v3264_v44 = vcombine.high %v3239_v41, %v3255_v40  ;;  %v3265_v46 = vcombine.low %v3246_v45, %v3262_v43  ;;  %v3266_v47 = vcombine.high %v3246_v45, %v3262_v43 }
 0x9ae   : > { %8648 = vmatpush3.xpose.msk.msra.mxu0 %vm1820_vm2, %v3263_v42  ;;  %8653 = vmatpush3.xpose.msk.msra.mxu1 %vm1820_vm2, %v3264_v44 }
 0x9af   : > { %8657 = vmatprep.subr.mxu0 %v9918_v1  ;;  %8662 = vmatprep.subr.mxu1 %v9918_v1 }
 0xa5c   : > { %v2814_v49 = vpop.f32.mrb[12].mxu1 }
 0xa5d   : > { %v2815_v50 = vadd.f32 %v8239_v48, %v2814_v49  ;;  %v8624_v8 = vpop.f32.mrb[13].mxu1 }
 0xa5f   : > { %2990 = vrot.lane.b32.xlu1 %v2815_v50, %s11324_s25  ;;  %2987 = vrot.lane.b32.xlu0 %v2815_v50, %s11322_s3 }
 0xa63   : > { %2993 = vrot.lane.b32.xlu0 %v2815_v50, %s11406_s28 }
 0xa64   : > { %v10709_v51 = vpop.f32.mrb[14].mxu1 }
 0xa65   : > { %v8646_v52 = vpop.f32.mrb[15].mxu1 }
 0xad1   : > { %v2991_v53 = vpop.permute.xlu1 %2990  ;;  %v2988_v54 = vpop.permute.xlu0 %2987 }
 0xad2   : > { %v2996_v55 = vcombine.low %v2815_v50, %v2991_v53  ;;  %v2997_v56 = vcombine.high %v2815_v50, %v2991_v53 }
 0xad4   : > { %v3004_v60 = vrot.slane %v2996_v55, %v10495_v33  ;;  %v3011_v61 = vrot.slane %v2997_v56, %v10495_v33 }
 0xad5   : > { %v2994_v57 = vpop.permute.xlu0 %2993 }
 0xad6   : > { %v3012_v58 = vcombine.low %v2988_v54, %v2994_v57  ;;  %v3013_v59 = vcombine.high %v2988_v54, %v2994_v57 }
 0xad8   : > { %v3020_v63 = vrot.slane %v3012_v58, %v10495_v33  ;;  %v3027_v2 = vrot.slane %v3013_v59, %v10495_v33 }
 0xada   : > { %v3028_v3 = vcombine.low %v3004_v60, %v3020_v63  ;;  %v3029_v4 = vcombine.high %v3004_v60, %v3020_v63  ;;  %v3044_v5 = vcombine.low %v3011_v61, %v3027_v2  ;;  %v3045_v6 = vcombine.high %v3011_v61, %v3027_v2 }
 0xadc   : > { %v3036_v7 = vrot.slane %v3028_v3, %v10501_v37  ;;  %v3043_v10 = vrot.slane %v3029_v4, %v10501_v37  ;;  %v3052_v11 = vrot.slane %v3044_v5, %v10501_v37  ;;  %v3059_v12 = vrot.slane %v3045_v6, %v10501_v37  ;;  %v8243_v5 = vld [vmem:[#allocation20] ss:$0 sm:$0xff] }
 0xadd   : > { %v2983_v6 = vadd.f32 %v8243_v5, %v10709_v51 }
 0xade   : > { %v3064_v13 = vcombine.low %v3036_v7, %v3043_v10  ;;  %v8245_v9 = vcombine.high %v3036_v7, %v3043_v10  ;;  %v3080_v14 = vcombine.low %v3052_v11, %v3059_v12  ;;  %v8246_v15 = vcombine.high %v3052_v11, %v3059_v12 }
 0xae0   : > { %v3071_v16 = vrot.slane %v3064_v13, %v10495_v33  ;;  %v3079_v17 = vrot.slane %v8245_v9, %v10495_v33  ;;  %v3087_v18 = vrot.slane %v3080_v14, %v10495_v33  ;;  %v3095_v21 = vrot.slane %v8246_v15, %v10495_v33 }
 0xae2   : > { %v3096_v22 = vcombine.low %v3071_v16, %v3079_v17  ;;  %v3097_v24 = vcombine.high %v3071_v16, %v3079_v17  ;;  %v3112_v25 = vcombine.low %v3087_v18, %v3095_v21  ;;  %v3113_v26 = vcombine.high %v3087_v18, %v3095_v21 }
 0xae4   : > { %v3104_v19 = vrot.slane %v3096_v22, %v10501_v37  ;;  %v3120_v20 = vrot.slane %v3112_v25, %v10501_v37  ;;  %v3111_v28 = vrot.slane %v3097_v24, %v10501_v37  ;;  %v3127_v29 = vrot.slane %v3113_v26, %v10501_v37 }
 0xae6   : > { %v3128_v23 = vcombine.low %v3104_v19, %v3120_v20  ;;  %v3129_v27 = vcombine.high %v3104_v19, %v3120_v20  ;;  %v3130_v30 = vcombine.low %v3111_v28, %v3127_v29  ;;  %v3131_v31 = vcombine.high %v3111_v28, %v3127_v29 }
 0xae8   : > { %8650 = vmatmul.mubr.msk.f32.vlgmr.msra.gmra.mrb[12].mxu0 %vm1820_vm2, %v3128_v23  ;;  %8655 = vmatmul.mubr.msk.f32.vlgmr.msra.gmra.mrb[16].mxu1 %vm1820_vm2, %v3129_v27 }
 0xae9   : > { %8658 = vmatpush3.xpose.msk.msra.mxu0 %vm1820_vm2, %v3265_v46  ;;  %8663 = vmatpush3.xpose.msk.msra.mxu1 %vm1820_vm2, %v3266_v47 }
 0xaea   : > { %8659 = vmatprep.mubr.msk.f32.mxu0 %vm9917_vm0, %v9918_v1  ;;  %8664 = vmatprep.mubr.msk.f32.mxu1 %vm9917_vm0, %v9918_v1 }
 0xaeb   : > { %8667 = vmatprep.subr.mxu0 %v9918_v1  ;;  %8672 = vmatprep.subr.mxu1 %v9918_v1 }
 0xaec   : > { %8660 = vmatmul.mubr.msk.f32.vlgmr.msra.gmra.mrb[14].mxu0 %vm1820_vm2, %v3130_v30  ;;  %8665 = vmatmul.mubr.msk.f32.vlgmr.msra.gmra.mrb[18].mxu1 %vm1820_vm2, %v3131_v31 }
 0xaed   : > { %8669 = vmatprep.mubr.msk.f32.mxu0 %vm9917_vm0, %v9918_v1  ;;  %8674 = vmatprep.mubr.msk.f32.mxu1 %vm9917_vm0, %v9918_v1 }
 0xbbb   : > { %v3474_v32 = vpop.f32.mrb[12].mxu0  ;;  %v3550_v34 = vpop.f32.mrb[16].mxu1 }
 0xbbc   : > { %v3706_v35 = vmul.f32 0.35355338, %v3474_v32  ;;  %v3707_v36 = vmul.f32 0.35355338, %v3550_v34  ;;  %v8651_v39 = vpop.f32.mrb[13].mxu0  ;;  %v8656_v40 = vpop.f32.mrb[17].mxu1 }
 0xbbe   : > { %v3711_v41 = vsel %vm3710_vm5, %v3706_v35, -inf  ;;  %v3714_v42 = vsel %vm3710_vm5, %v3707_v36, -inf }
 0xbbf   : > { %3712 = vmax.xlane.f32.xlu1 %v3711_v41  ;;  %v3626_v43 = vpop.f32.mrb[14].mxu0  ;;  %3715 = vmax.xlane.f32.xlu0 %v3714_v42  ;;  %v3702_v44 = vpop.f32.mrb[18].mxu1 }
 0xbc0   : > { %v3708_v45 = vmul.f32 0.35355338, %v3626_v43  ;;  %v3709_v46 = vmul.f32 0.35355338, %v3702_v44  ;;  %v8661_v47 = vpop.f32.mrb[15].mxu0  ;;  %v8666_v48 = vpop.f32.mrb[19].mxu1 }
 0xbc2   : > { %v3717_v49 = vsel %vm3710_vm5, %v3708_v45, -inf  ;;  %v3720_v50 = vsel %vm3710_vm5, %v3709_v46, -inf }
 0xbc3   : > { %3718 = vmax.xlane.f32.xlu0 %v3717_v49  ;;  %3721 = vmax.xlane.f32.xlu1 %v3720_v50 }
 0xc4c   : > { %v3713_v8 = vpop.xlane.xlu1 %3712  ;;  %v3716_v52 = vpop.xlane.xlu0 %3715 }
 0xc4d   : > { %v3723_v53 = vsub.f32 %v3706_v35, %v3713_v8  ;;  %v3724_v54 = vsub.f32 %v3707_v36, %v3716_v52 }
 0xc4f   : > { %v3727_v55 = vmul.f32 1.442695, %v3723_v53  ;;  %v3729_v56 = vmul.f32 1.442695, %v3724_v54 }
 0xc50   : > { %v3719_v57 = vpop.xlane.xlu0 %3718  ;;  %v3722_v7 = vpop.xlane.xlu1 %3721 }
 0xc51   : > { %9281 = vpow2.f32 %v3727_v55  ;;  %v3725_v58 = vsub.f32 %v3708_v45, %v3719_v57  ;;  %v3726_v10 = vsub.f32 %v3709_v46, %v3722_v7 }
 0xc52   : > { %9283 = vpow2.f32 %v3729_v56 }
 0xc53   : > { %v3731_v59 = vmul.f32 1.442695, %v3725_v58  ;;  %v3733_v11 = vmul.f32 1.442695, %v3726_v10 }
 0xc55   : > { %9285 = vpow2.f32 %v3731_v59 }
 0xc56   : > { %9287 = vpow2.f32 %v3733_v11 }
 0xc5b   : > { %v10747_v60 = vpop.eup %9281 }
 0xc5c   : > { %v10749_v61 = vpop.eup %9283  ;;  %v3735_v63 = vsel %vm3710_vm5, %v10747_v60, 0.0 }
 0xc5d   : > { %3736 = vadd.xlane.f32.xlu0 %v3735_v63  ;;  %v3738_v2 = vsel %vm3710_vm5, %v10749_v61, 0.0 }
 0xc5e   : > { %3739 = vadd.xlane.f32.xlu1 %v3738_v2 }
 0xc5f   : > { %v10755_v3 = vpop.eup %9285 }
 0xc60   : > { %v3741_v4 = vsel %vm3710_vm5, %v10755_v3, 0.0  ;;  %v9288_v12 = vpop.eup %9287 }
 0xc61   : > { %3742 = vadd.xlane.f32.xlu0 %v3741_v4  ;;  %v3744_v13 = vsel %vm3710_vm5, %v9288_v12, 0.0 }
 0xc6f   : > { %3271 = vrot.lane.b32.xlu1 %v2983_v6, %s11324_s25  ;;  %s11412_s25 = sld [smem:[#allocation57_spill]] }
 0xc77   : > { %3268 = vrot.lane.b32.xlu0 %v2983_v6, %s11322_s3  ;;  %s11411_s3 = sld [smem:[#allocation60_spill]] }
 0xc93   : > { %3745 = vadd.xlane.f32.xlu1 %v3744_v13 }
 0xca4   : > { %3274 = vrot.lane.b32.xlu1 %v2983_v6, %s11406_s28 }
 0xcea   : > { %v3737_v14 = vpop.xlane.xlu0 %3736 }
 0xceb   : > { %v3740_v9 = vpop.xlane.xlu1 %3739  ;;  %9289 = vrcp.f32 %v3737_v14 }
 0xcec   : > { %9291 = vrcp.f32 %v3740_v9 }
 0xcee   : > { %v3743_v16 = vpop.xlane.xlu0 %3742 }
 0xcef   : > { %v3272_v15 = vpop.permute.xlu1 %3271  ;;  %9293 = vrcp.f32 %v3743_v16 }
 0xcf0   : > { %v3277_v51 = vcombine.low %v2983_v6, %v3272_v15  ;;  %v3278_v18 = vcombine.high %v2983_v6, %v3272_v15 }
 0xcf2   : > { %v3269_v21 = vpop.permute.xlu0 %3268  ;;  %v3285_v26 = vrot.slane %v3277_v51, %v10495_v33  ;;  %v3292_v19 = vrot.slane %v3278_v18, %v10495_v33 }
 0xcf5   : > { %v9290_v47 = vpop.eup %9289 }
 0xcf6   : > { %v9292_v48 = vpop.eup %9291  ;;  %v3751_v56 = vmul.f32 %v9290_v47, %v10747_v60 }
 0xcf7   : > { %v3752_v57 = vmul.f32 %v9292_v48, %v10749_v61  ;;  %v4211_v61 = vld [vmem:[#allocation22] sm:$0xff] }
 0xcf9   : > { %v9294_v55 = vpop.eup %9293 }
 0xcfa   : > { %v3753_v2 = vmul.f32 %v9294_v55, %v10755_v3  ;;  %v4212_v3 = vld [vmem:[#allocation22 + $0x8] sm:$0xff] }
 0xcfb   : > { %v8952_v4 = vpack.c.bf16 %v4212_v3, %v4211_v61 }
 0xd20   : > { %v3746_v17 = vpop.xlane.xlu1 %3745 }
 0xd21   : > { %9295 = vrcp.f32 %v3746_v17 }
 0xd24   : > { %v3275_v22 = vpop.permute.xlu1 %3274 }
 0xd25   : > { %v3293_v24 = vcombine.low %v3269_v21, %v3275_v22  ;;  %v3294_v25 = vcombine.high %v3269_v21, %v3275_v22 }
 0xd27   : > { %v3301_v20 = vrot.slane %v3293_v24, %v10495_v33  ;;  %v3308_v23 = vrot.slane %v3294_v25, %v10495_v33 }
 0xd29   : > { %v3309_v27 = vcombine.low %v3285_v26, %v3301_v20  ;;  %v3310_v28 = vcombine.high %v3285_v26, %v3301_v20  ;;  %v3325_v29 = vcombine.low %v3292_v19, %v3308_v23  ;;  %v4213_v20 = vld [vmem:[#allocation22 + $0x10] sm:$0xff]  ;;  %v4214_v23 = vld [vmem:[#allocation22 + $0x18] sm:$0xff] }
 0xd2b   : > { %v3317_v30 = vrot.slane %v3309_v27, %v10501_v37  ;;  %v3324_v31 = vrot.slane %v3310_v28, %v10501_v37  ;;  %v3332_v32 = vrot.slane %v3325_v29, %v10501_v37  ;;  %v9296_v58 = vpop.eup %9295 }
 0xd2c   : > { %v3754_v60 = vmul.f32 %v9296_v58, %v9288_v12 }
 0xd2d   : > { %v3335_v34 = vcombine.low %v3317_v30, %v3324_v31  ;;  %v8248_v35 = vcombine.high %v3317_v30, %v3324_v31  ;;  %v3358_v36 = vcombine.high %v3332_v32, %v9918_v1  ;;  %v3357_v41 = vrot.slane %v3332_v32, %v10495_v33 }
 0xd2e   : > { %v8955_v31 = vpack.c.bf16 %v4214_v23, %v4213_v20 }
 0xd2f   : > { %v3342_v39 = vrot.slane %v3335_v34, %v10495_v33  ;;  %v3350_v40 = vrot.slane %v8248_v35, %v10495_v33  ;;  %v3365_v42 = vrot.slane %v3358_v36, %v10495_v33 }
 0xd31   : > { %v3366_v43 = vcombine.low %v3342_v39, %v3350_v40  ;;  %v3367_v44 = vcombine.high %v3342_v39, %v3350_v40  ;;  %v3382_v45 = vcombine.low %v3357_v41, %v3365_v42  ;;  %v3383_v46 = vcombine.high %v3357_v41, %v3365_v42 }
 0xd33   : > { %v3390_v49 = vrot.slane %v3382_v45, %v10501_v37  ;;  %v3374_v50 = vrot.slane %v3366_v43, %v10501_v37  ;;  %v3397_v8 = vrot.slane %v3383_v46, %v10501_v37  ;;  %v3381_v52 = vrot.slane %v3367_v44, %v10501_v37 }
 0xd35   : > { %v3398_v53 = vcombine.low %v3374_v50, %v3390_v49  ;;  %v3399_v54 = vcombine.high %v3374_v50, %v3390_v49  ;;  %v3400_v59 = vcombine.low %v3381_v52, %v3397_v8  ;;  %v3401_v63 = vcombine.high %v3381_v52, %v3397_v8 }
 0xd37   : > { %8668 = vmatpush3.msk.msra.mxu0 %vm3758_vm6, %v3398_v53  ;;  %8673 = vmatpush3.msk.msra.mxu1 %vm3758_vm6, %v3399_v54 }
 0xd38   : > { %8670 = vmatmul.mubr.msk.f32.vlgmr.msra.gmra.mrb[16].mxu0 %vm3710_vm5, %v3751_v56  ;;  %8675 = vmatmul.mubr.msk.f32.vlgmr.msra.gmra.mrb[20].mxu1 %vm3710_vm5, %v3752_v57 }
 0xd39   : > { %8677 = vmatprep.subr.mxu0 %v9918_v1  ;;  %8682 = vmatprep.subr.mxu1 %v9918_v1 }
 0xd3a   : > { %8678 = vmatpush3.msk.msra.mxu0 %vm3758_vm6, %v3400_v59  ;;  %8683 = vmatpush3.msk.msra.mxu1 %vm3758_vm6, %v3401_v63 }
 0xd3b   : > { %8679 = vmatprep.mubr.msk.f32.mxu0 %vm9917_vm0, %v9918_v1  ;;  %8684 = vmatprep.mubr.msk.f32.mxu1 %vm9917_vm0, %v9918_v1 }
 0xd3c   : > { %8680 = vmatmul.mubr.msk.f32.vlgmr.msra.gmra.mrb[18].mxu0 %vm3710_vm5, %v3753_v2  ;;  %8685 = vmatmul.mubr.msk.f32.vlgmr.msra.gmra.mrb[22].mxu1 %vm3710_vm5, %v3754_v60  ;;  %v8267_v2 = vld [vmem:[#allocation23] ss:$0 sm:$0xff] }
 0xd3d   : > { %8951 = vmatprep.subr.bf16.mxu0 %v9916_v0  ;;  %8695 = vmatprep.mubr.msk.f32.mxu0 %vm9917_vm0, %v9918_v1 }
 0xd3e   : > { %8957 = vmatprep.subr.bf16.mxu1 %v9916_v0  ;;  %8706 = vmatprep.mubr.msk.f32.mxu1 %vm9917_vm0, %v9918_v1 }
 0xd3f   : > { %8953 = vmatpush3.bf16.msra.mxu0 %v8952_v4 }
 0xd40   : > { %8954 = vmatprep.subr.bf16.mxu0 %v9916_v0 }
 0xd43   : > { %8956 = vmatpush3.bf16.msra.mxu0 %v8955_v31  ;;  %v8270_v31 = vld [vmem:[%s11412_s25] ss:$0 sm:$0xff] }
 0xd44   : > { %8963 = vmatprep.subr.bf16.mxu0 %v9916_v0 }
 0xe0b   : > { %v3828_v5 = vpop.f32.mrb[16].mxu0  ;;  %v3904_v6 = vpop.f32.mrb[20].mxu1 }
 0xe0c   : > { %v8671_v7 = vpop.f32.mrb[17].mxu0  ;;  %v8676_v10 = vpop.f32.mrb[21].mxu1 }
 0xe0f   : > { %v3980_v11 = vpop.f32.mrb[18].mxu0  ;;  %v4056_v12 = vpop.f32.mrb[22].mxu1 }
 0xe10   : > { %v4060_v13 = vcombine.low %v3828_v5, %v3980_v11  ;;  %v4061_v9 = vcombine.high %v3828_v5, %v3980_v11  ;;  %v4076_v14 = vcombine.low %v3904_v6, %v4056_v12  ;;  %v4077_v15 = vcombine.high %v3904_v6, %v4056_v12  ;;  %v8681_v16 = vpop.f32.mrb[19].mxu0  ;;  %v8686_v17 = vpop.f32.mrb[23].mxu1 }
 0xe11   : > { %v4410_v17 = vld [vmem:[%s11411_s3] sm:$0xff] }
 0xe12   : > { %v4068_v51 = vrot.slane %v4060_v13, %v10495_v33  ;;  %v4075_v18 = vrot.slane %v4061_v9, %v10495_v33  ;;  %v4084_v21 = vrot.slane %v4076_v14, %v10495_v33  ;;  %v4091_v22 = vrot.slane %v4077_v15, %v10495_v33  ;;  %v4325_v13 = vld [vmem:[%s11410_s6] sm:$0xff]  ;;  %v4326_v9 = vld [vmem:[%s11410_s6 + $0x8] sm:$0xff]  ;;  %v4328_v15 = vld [vmem:[%s11410_s6 + $0x18] sm:$0xff] }
 0xe13   : > { %v8958_v14 = vpack.c.bf16 %v4326_v9, %v4325_v13 }
 0xe14   : > { %v4092_v24 = vcombine.low %v4068_v51, %v4084_v21  ;;  %v4093_v25 = vcombine.high %v4068_v51, %v4084_v21  ;;  %v4108_v26 = vcombine.low %v4075_v18, %v4091_v22  ;;  %v4109_v19 = vcombine.high %v4075_v18, %v4091_v22  ;;  %v4411_v51 = vld [vmem:[%s11411_s3 + $0x8] sm:$0xff]  ;;  %v4412_v18 = vld [vmem:[%s11411_s3 + $0x10] sm:$0xff]  ;;  %v4413_v22 = vld [vmem:[%s11411_s3 + $0x18] sm:$0xff] }
 0xe15   : > { %8959 = vmatpush3.bf16.msra.mxu1 %v8958_v14  ;;  %v8964_v21 = vpack.c.bf16 %v4411_v51, %v4410_v17  ;;  %v10876_v14 = vld [vmem:[%s11416_s24] sm:$0xff]  ;;  %v8282_v51 = vld [vmem:[%s11401_s5 + $0x1] ss:$0 sm:$0xff]  ;;  %s11417_s24 = smov 112  }
 0xe16   : > { %v4100_v27 = vrot.slane %v4092_v24, %v10501_v37  ;;  %v4107_v28 = vrot.slane %v4093_v25, %v10501_v37  ;;  %v4116_v29 = vrot.slane %v4108_v26, %v10501_v37  ;;  %v4123_v30 = vrot.slane %v4109_v19, %v10501_v37  ;;  %8960 = vmatprep.subr.bf16.mxu1 %v9916_v0  ;;  %v4414_v25 = vld [vmem:[%s11411_s3 + $0x20] sm:$0xff]  ;;  %v4415_v26 = vld [vmem:[%s11411_s3 + $0x28] sm:$0xff] }
 0xe17   : > { %v8967_v24 = vpack.c.bf16 %v4413_v22, %v4412_v18  ;;  %v8970_v19 = vpack.c.bf16 %v4415_v26, %v4414_v25 }
 0xe18   : > { %v4128_v32 = vcombine.low %v4100_v27, %v4107_v28  ;;  %v8265_v34 = vcombine.high %v4100_v27, %v4107_v28  ;;  %v4144_v35 = vcombine.low %v4116_v29, %v4123_v30  ;;  %v8266_v36 = vcombine.high %v4116_v29, %v4123_v30  ;;  %v8269_v29 = vld [vmem:[#allocation25] ss:$0 sm:$0xff] }
 0xe1a   : > { %v4135_v39 = vrot.slane %v4128_v32, %v10495_v33  ;;  %v4143_v40 = vrot.slane %v8265_v34, %v10495_v33  ;;  %v4151_v41 = vrot.slane %v4144_v35, %v10495_v33  ;;  %v4159_v42 = vrot.slane %v8266_v36, %v10495_v33  ;;  %v4416_v35 = vld [vmem:[%s11411_s3 + $0x30] sm:$0xff]  ;;  %v4417_v36 = vld [vmem:[%s11411_s3 + $0x38] sm:$0xff] }
 0xe1c   : > { %v4161_v43 = vcombine.high %v4135_v39, %v4143_v40  ;;  %v4177_v44 = vcombine.high %v4151_v41, %v4159_v42  ;;  %v4160_v45 = vcombine.low %v4135_v39, %v4143_v40  ;;  %v4176_v46 = vcombine.low %v4151_v41, %v4159_v42  ;;  %v8271_v40 = vld [vmem:[%s11413_s10] ss:$0 sm:$0xff] }
 0xe1d   : > { %v8973_v39 = vpack.c.bf16 %v4417_v36, %v4416_v35 }
 0xe1e   : > { %v4175_v47 = vrot.slane %v4161_v43, %v10501_v37  ;;  %v4191_v48 = vrot.slane %v4177_v44, %v10501_v37  ;;  %v4168_v49 = vrot.slane %v4160_v45, %v10501_v37  ;;  %v4184_v50 = vrot.slane %v4176_v46, %v10501_v37  ;;  %v8273_v45 = vld [vmem:[%s11414_s19] ss:$0 sm:$0xff] }
 0xe20   : > { %v4194_v8 = vcombine.low %v4175_v47, %v4191_v48  ;;  %v4193_v52 = vcombine.high %v4168_v49, %v4184_v50  ;;  %v4195_v53 = vcombine.high %v4175_v47, %v4191_v48  ;;  %v4192_v54 = vcombine.low %v4168_v49, %v4184_v50 }
 0xe22   : > { %4201 = vrot.lane.b32.xlu1 %v4194_v8, %s11407_s12  ;;  %4197 = vrot.lane.b32.xlu0 %v4193_v52, %s11408_s11 }
 0xe26   : > { %4205 = vrot.lane.b32.xlu0 %v4195_v53, %s11409_s8 }
 0xe94   : > { %v4198_v55 = vpop.permute.xlu0 %4197  ;;  %v4202_v56 = vpop.permute.xlu1 %4201 }
 0xe95   : > { %v4208_v57 = vsel %vm1820_vm2, %v4192_v54, %v4198_v55 }
 0xe96   : > { %v4209_v59 = vsel %vm2614_vm3, %v4208_v57, %v4202_v56  ;;  %v8277_v56 = vld [vmem:[%s11400_s29 + $0x20] sm:$0xff]  ;;  %v8278_v57 = vld [vmem:[%s11400_s29 + $0x28] sm:$0xff] }
 0xe98   : > { %v4206_v58 = vpop.permute.xlu0 %4205 }
 0xe99   : > { %v4210_v63 = vsel %vm2616_vm4, %v4209_v59, %v4206_v58  ;;  %v8976_v58 = vpack.c.bf16 %v8278_v57, %v8277_v56  ;;  %v8279_v59 = vld [vmem:[%s11400_s29 + $0x30] sm:$0xff] }
 0xe9a   : > { %8696 = vmatmul.mubr.msk.f32.vlgmr.msra.gmra.mrb[20].mxu0 %vm1222_vm1, %v4210_v63  ;;  %v8280_v63 = vld [vmem:[%s11400_s29 + $0x38] sm:$0xff] }
 0xe9b   : > { %8725 = vmatprep.mubr.msk.f32.mxu0 %vm9917_vm0, %v9918_v1  ;;  %8965 = vmatpush3.bf16.msra.mxu0 %v8964_v21 }
 0xe9c   : > { %8966 = vmatprep.subr.bf16.mxu0 %v9916_v0 }
 0xe9f   : > { %8968 = vmatpush3.bf16.msra.mxu0 %v8967_v24 }
 0xea0   : > { %8969 = vmatprep.subr.bf16.mxu0 %v9916_v0 }
 0xea3   : > { %8971 = vmatpush3.bf16.msra.mxu0 %v8970_v19 }
 0xea4   : > { %8972 = vmatprep.subr.bf16.mxu0 %v9916_v0 }
 0xea7   : > { %8974 = vmatpush3.bf16.msra.mxu0 %v8973_v39 }
 0xea8   : > { %8750 = vmatprep.subr.mxu0 %v9918_v1 }
 0xf6d   : > { %v4291_v60 = vpop.f32.mrb[20].mxu0 }
 0xf6e   : > { %v4292_v61 = vadd.f32 %v8267_v2, %v4291_v60  ;;  %v8697_v3 = vpop.f32.mrb[21].mxu0  ;;  %v8979_v2 = vpack.c.bf16 %v8280_v63, %v8279_v59 }
 0xf70   : > { %v4295_v4 = vadd.f32 %v4292_v61, %v10673_v62  ;;  %v4327_v62 = vld [vmem:[%s11410_s6 + $0x10] sm:$0xff] }
 0xf71   : > { %v8961_v16 = vpack.c.bf16 %v4328_v15, %v4327_v62  ;;  %v8286_v15 = vld [vmem:[%s11402_s4 + $0x30] sm:$0xff] }
 0xf72   : > { %v4298_v5 = vsel %vm1222_vm1, %v4295_v4, 0.0 }
 0xf73   : > { %4299 = vadd.xlane.f32.xlu1 %v4298_v5  ;;  %8962 = vmatpush3.bf16.msra.mxu1 %v8961_v16  ;;  %v8275_v5 = vld [vmem:[%s11415_s20] ss:$0 sm:$0xff]  ;;  %v8287_v16 = vld [vmem:[%s11402_s4 + $0x38] sm:$0xff] }
 0xf74   : > { %8975 = vmatprep.subr.bf16.mxu1 %v9916_v0  ;;  %v8985_v17 = vpack.c.bf16 %v8287_v16, %v8286_v15 }
0x1000   : > { %v4300_v6 = vpop.xlane.xlu1 %4299 }
0x1001   : > { %v4301_v7 = vmul.f32 0.03125, %v4300_v6 }
0x1003   : > { %v4302_v10 = vsub.f32 %v4295_v4, %v4301_v7  ;;  %v8276_v7 = vld [vmem:[%s10072_s21] ss:$0 sm:$0xff] }
0x1005   : > { %v4303_v11 = vmul.f32 %v4302_v10, %v4302_v10 }
0x1007   : > { %v4304_v12 = vsel %vm1222_vm1, %v4303_v11, 0.0  ;;  %v8284_v11 = vld [vmem:[%s11402_s4 + $0x20] sm:$0xff] }
0x1008   : > { %4305 = vadd.xlane.f32.xlu0 %v4304_v12  ;;  %v8285_v12 = vld [vmem:[%s11402_s4 + $0x28] sm:$0xff]  ;;  %s11418_s4 = smov 120  }
0x1009   : > { %v8982_v9 = vpack.c.bf16 %v8285_v12, %v8284_v11 }
0x1095   : > { %v4306_v20 = vpop.xlane.xlu0 %4305 }
0x1096   : > { %v4307_v23 = vmul.f32 0.03125, %v4306_v20 }
0x1098   : > { %v4308_v27 = vadd.f32 1e-05, %v4307_v23 }
0x109a   : > { %9297 = vrsqrt.f32 %v4308_v27 }
0x10a4   : > { %v9298_v28 = vpop.eup %9297 }
0x10a5   : > { %v4310_v30 = vmul.f32 %v9298_v28, %v4302_v10 }
0x10a7   : > { %v4317_v32 = vmul.f32 %v8269_v29, %v4310_v30 }
0x10a9   : > { %v4324_v34 = vadd.f32 %v8270_v31, %v4317_v32 }
0x10ab   : > { %8707 = vmatmul.mubr.msk.f32.vlgmr.msra.gmra.mrb[24].mxu1 %vm1222_vm1, %v4324_v34 }
0x10ac   : > { %8736 = vmatprep.mubr.msk.f32.mxu1 %vm9917_vm0, %v9918_v1  ;;  %8977 = vmatpush3.bf16.msra.mxu1 %v8976_v58 }
0x10ad   : > { %8978 = vmatprep.subr.bf16.mxu1 %v9916_v0 }
0x10b0   : > { %8980 = vmatpush3.bf16.msra.mxu1 %v8979_v2 }
0x10b1   : > { %8981 = vmatprep.subr.bf16.mxu1 %v9916_v0 }
0x117e   : > { %v4405_v41 = vpop.f32.mrb[24].mxu1 }
0x117f   : > { %v4406_v42 = vadd.f32 %v8271_v40, %v4405_v41  ;;  %v8708_v43 = vpop.f32.mrb[25].mxu1 }
0x1181   : > { %v4409_v44 = vmax.f32 %v4406_v42, 0.0 }
0x1183   : > { %8726 = vmatmul.mubr.msk.f32.vlgmr.msra.gmra.mrb[22].mxu0 %vm4425_vm7, %v4409_v44 }
0x1184   : > { %8752 = vmatprep.mubr.msk.f32.mxu0 %vm9917_vm0, %v9918_v1 }
0x1256   : > { %v4495_v46 = vpop.f32.mrb[22].mxu0 }
0x1257   : > { %v4496_v47 = vadd.f32 %v8273_v45, %v4495_v46  ;;  %v8727_v48 = vpop.f32.mrb[23].mxu0 }
0x1259   : > { %v4499_v49 = vadd.f32 %v4496_v47, %v4324_v34 }
0x125b   : > { %v4502_v50 = vsel %vm1222_vm1, %v4499_v49, 0.0 }
0x125c   : > { %4503 = vadd.xlane.f32.xlu0 %v4502_v50 }
0x12e9   : > { %v4504_v8 = vpop.xlane.xlu0 %4503 }
0x12ea   : > { %v4505_v52 = vmul.f32 0.03125, %v4504_v8 }
0x12ec   : > { %v4506_v53 = vsub.f32 %v4499_v49, %v4505_v52 }
0x12ee   : > { %v4507_v54 = vmul.f32 %v4506_v53, %v4506_v53 }
0x12f0   : > { %v4508_v55 = vsel %vm1222_vm1, %v4507_v54, 0.0 }
0x12f1   : > { %4509 = vadd.xlane.f32.xlu1 %v4508_v55 }
0x137e   : > { %v4510_v60 = vpop.xlane.xlu1 %4509 }
0x137f   : > { %v4511_v61 = vmul.f32 0.03125, %v4510_v60 }
0x1381   : > { %v4512_v3 = vadd.f32 1e-05, %v4511_v61 }
0x1383   : > { %9299 = vrsqrt.f32 %v4512_v3 }
0x138d   : > { %v9300_v4 = vpop.eup %9299 }
0x138e   : > { %v4514_v6 = vmul.f32 %v9300_v4, %v4506_v53 }
0x1390   : > { %v4521_v10 = vmul.f32 %v8275_v5, %v4514_v6 }
0x1392   : > { %v10872_v13 = vadd.f32 %v8276_v7, %v4521_v10 }
0x1394   : > { %v4529_v62 = vadd.f32 %v10876_v14, %v10872_v13 }
0x1396   : > { %8737 = vmatmul.mubr.msk.f32.vlgmr.msra.gmra.mrb[26].mxu1 %vm1222_vm1, %v4529_v62 }
0x1397   : > { %8983 = vmatpush3.bf16.msra.mxu1 %v8982_v9  ;;  %8747 = vmatprep.mubr.msk.f32.mxu1 %vm9917_vm0, %v9918_v1 }
0x1398   : > { %8984 = vmatprep.subr.bf16.mxu1 %v9916_v0 }
0x139b   : > { %8986 = vmatpush3.bf16.msra.mxu1 %v8985_v17 }
0x139c   : > { %8755 = vmatprep.subr.mxu1 %v9918_v1 }
0x139e   : > { %8748 = vmatmul.mubr.msk.f32.vlgmr.msra.gmra.mrb[28].mxu1 %vm1222_vm1, %v10872_v13 }
0x139f   : > { %8757 = vmatprep.mubr.msk.f32.mxu1 %vm9917_vm0, %v9918_v1 }
0x1469   : > { %v4612_v18 = vpop.f32.mrb[26].mxu1 }
0x146a   : > { %v4613_v21 = vadd.f32 %v8282_v51, %v4612_v18  ;;  %v8738_v22 = vpop.f32.mrb[27].mxu1 }
0x146c   : > { %4706 = vrot.lane.b32.xlu1 %v4613_v21, %s11417_s24  ;;  %4703 = vrot.lane.b32.xlu0 %v4613_v21, %s11418_s4 }
0x1470   : > { %4709 = vrot.lane.b32.xlu1 %v4613_v21, %s11406_s28  ;;  %4848 = vrot.lane.b32.xlu0 %v4613_v21, %s11419_s27 }
0x1471   : > { %v10896_v24 = vpop.f32.mrb[28].mxu1 }
0x1472   : > { %v8749_v25 = vpop.f32.mrb[29].mxu1 }
0x14de   : > { %v4707_v26 = vpop.permute.xlu1 %4706  ;;  %v4704_v19 = vpop.permute.xlu0 %4703 }
0x14df   : > { %4852 = vrot.lane.b32.xlu0 %v4707_v26, %s11419_s27  ;;  %4850 = vrot.lane.b32.xlu1 %v4704_v19, %s11419_s27  ;;  %v4712_v20 = vcombine.low %v4613_v21, %v4707_v26  ;;  %v4713_v23 = vcombine.high %v4613_v21, %v4707_v26 }
0x14e1   : > { %v4720_v30 = vrot.slane %v4712_v20, %v10495_v33  ;;  %v4727_v31 = vrot.slane %v4713_v23, %v10495_v33 }
0x14e2   : > { %v4710_v27 = vpop.permute.xlu1 %4709  ;;  %v4849_v4 = vpop.permute.xlu0 %4848 }
0x14e3   : > { %v4728_v28 = vcombine.low %v4704_v19, %v4710_v27  ;;  %v4729_v29 = vcombine.high %v4704_v19, %v4710_v27  ;;  %4854 = vrot.lane.b32.xlu1 %v4710_v27, %s11419_s27  ;;  %s11420_s27 = sld [smem:[#allocation63_spill]] }
0x14e5   : > { %v4736_v32 = vrot.slane %v4728_v28, %v10495_v33  ;;  %v4743_v34 = vrot.slane %v4729_v29, %v10495_v33 }
0x14e7   : > { %v4744_v35 = vcombine.low %v4720_v30, %v4736_v32  ;;  %v4745_v36 = vcombine.high %v4720_v30, %v4736_v32  ;;  %v4760_v39 = vcombine.low %v4727_v31, %v4743_v34  ;;  %v4761_v40 = vcombine.high %v4727_v31, %v4743_v34 }
0x14e9   : > { %v4752_v41 = vrot.slane %v4744_v35, %v10501_v37  ;;  %v4759_v42 = vrot.slane %v4745_v36, %v10501_v37  ;;  %v4768_v43 = vrot.slane %v4760_v39, %v10501_v37  ;;  %v4775_v44 = vrot.slane %v4761_v40, %v10501_v37 }
0x14eb   : > { %v4780_v45 = vcombine.low %v4752_v41, %v4759_v42  ;;  %v8290_v46 = vcombine.high %v4752_v41, %v4759_v42  ;;  %v4796_v47 = vcombine.low %v4768_v43, %v4775_v44  ;;  %v8291_v48 = vcombine.high %v4768_v43, %v4775_v44 }
0x14ed   : > { %v4787_v49 = vrot.slane %v4780_v45, %v10495_v33  ;;  %v4795_v50 = vrot.slane %v8290_v46, %v10495_v33  ;;  %v4803_v8 = vrot.slane %v4796_v47, %v10495_v33  ;;  %v4811_v52 = vrot.slane %v8291_v48, %v10495_v33 }
0x14ef   : > { %v4812_v53 = vcombine.low %v4787_v49, %v4795_v50  ;;  %v4813_v54 = vcombine.high %v4787_v49, %v4795_v50  ;;  %v4828_v55 = vcombine.low %v4803_v8, %v4811_v52  ;;  %v4829_v56 = vcombine.high %v4803_v8, %v4811_v52 }
0x14f1   : > { %v4820_v57 = vrot.slane %v4812_v53, %v10501_v37  ;;  %v4836_v58 = vrot.slane %v4828_v55, %v10501_v37  ;;  %v4827_v59 = vrot.slane %v4813_v54, %v10501_v37  ;;  %v4843_v63 = vrot.slane %v4829_v56, %v10501_v37 }
0x14f3   : > { %v4844_v2 = vcombine.low %v4820_v57, %v4836_v58  ;;  %v4845_v60 = vcombine.high %v4820_v57, %v4836_v58  ;;  %v4846_v61 = vcombine.low %v4827_v59, %v4843_v63  ;;  %v4847_v3 = vcombine.high %v4827_v59, %v4843_v63 }
0x1551   : > { %v4851_v5 = vpop.permute.xlu1 %4850  ;;  %v4853_v6 = vpop.permute.xlu0 %4852 }
0x1552   : > { %v4860_v7 = vcombine.low %v4849_v4, %v4853_v6  ;;  %v4861_v10 = vcombine.high %v4849_v4, %v4853_v6  ;;  %v8288_v4 = vld [vmem:[#allocation7 + $0x1] ss:$0 sm:$0xff] }
0x1554   : > { %v4868_v62 = vrot.slane %v4860_v7, %v10495_v33  ;;  %v4875_v15 = vrot.slane %v4861_v10, %v10495_v33 }
0x1555   : > { %v4855_v11 = vpop.permute.xlu1 %4854 }
0x1556   : > { %v4876_v12 = vcombine.low %v4851_v5, %v4855_v11  ;;  %v4877_v9 = vcombine.high %v4851_v5, %v4855_v11  ;;  %v4699_v5 = vadd.f32 %v8288_v4, %v10896_v24 }
0x1558   : > { %v4884_v16 = vrot.slane %v4876_v12, %v10495_v33  ;;  %v4891_v17 = vrot.slane %v4877_v9, %v10495_v33 }
0x155a   : > { %v4892_v51 = vcombine.low %v4868_v62, %v4884_v16  ;;  %v4893_v18 = vcombine.high %v4868_v62, %v4884_v16  ;;  %v4908_v21 = vcombine.low %v4875_v15, %v4891_v17  ;;  %v4909_v22 = vcombine.high %v4875_v15, %v4891_v17 }
0x155c   : > { %v4900_v25 = vrot.slane %v4892_v51, %v10501_v37  ;;  %v4907_v26 = vrot.slane %v4893_v18, %v10501_v37  ;;  %v4916_v19 = vrot.slane %v4908_v21, %v10501_v37  ;;  %v4923_v20 = vrot.slane %v4909_v22, %v10501_v37 }
0x155e   : > { %v4928_v23 = vcombine.low %v4900_v25, %v4907_v26  ;;  %v8292_v27 = vcombine.high %v4900_v25, %v4907_v26  ;;  %v4944_v28 = vcombine.low %v4916_v19, %v4923_v20  ;;  %v8293_v29 = vcombine.high %v4916_v19, %v4923_v20 }
0x1560   : > { %v4935_v30 = vrot.slane %v4928_v23, %v10495_v33  ;;  %v4943_v31 = vrot.slane %v8292_v27, %v10495_v33  ;;  %v4951_v32 = vrot.slane %v4944_v28, %v10495_v33  ;;  %v4959_v34 = vrot.slane %v8293_v29, %v10495_v33 }
0x1562   : > { %v4960_v35 = vcombine.low %v4935_v30, %v4943_v31  ;;  %v4961_v36 = vcombine.high %v4935_v30, %v4943_v31  ;;  %v4976_v39 = vcombine.low %v4951_v32, %v4959_v34  ;;  %v4977_v40 = vcombine.high %v4951_v32, %v4959_v34 }
0x1564   : > { %v4968_v41 = vrot.slane %v4960_v35, %v10501_v37  ;;  %v4984_v42 = vrot.slane %v4976_v39, %v10501_v37  ;;  %v4975_v45 = vrot.slane %v4961_v36, %v10501_v37  ;;  %v4991_v46 = vrot.slane %v4977_v40, %v10501_v37 }
0x1566   : > { %v4992_v43 = vcombine.low %v4968_v41, %v4984_v42  ;;  %v4993_v44 = vcombine.high %v4968_v41, %v4984_v42  ;;  %v4994_v47 = vcombine.low %v4975_v45, %v4991_v46  ;;  %v4995_v48 = vcombine.high %v4975_v45, %v4991_v46 }
0x1568   : > { %8751 = vmatpush3.xpose.msk.msra.mxu0 %vm1820_vm2, %v4992_v43  ;;  %8756 = vmatpush3.xpose.msk.msra.mxu1 %vm1820_vm2, %v4993_v44 }
0x1569   : > { %8760 = vmatprep.subr.mxu0 %v9918_v1  ;;  %8765 = vmatprep.subr.mxu1 %v9918_v1 }
0x156b   : > { %8753 = vmatmul.mubr.msk.f32.vlgmr.msra.gmra.mrb[24].mxu0 %vm1820_vm2, %v4844_v2  ;;  %8758 = vmatmul.mubr.msk.f32.vlgmr.msra.gmra.mrb[30].mxu1 %vm1820_vm2, %v4845_v60 }
0x156c   : > { %8761 = vmatpush3.xpose.msk.msra.mxu0 %vm1820_vm2, %v4994_v47  ;;  %8766 = vmatpush3.xpose.msk.msra.mxu1 %vm1820_vm2, %v4995_v48 }
0x156d   : > { %8762 = vmatprep.mubr.msk.f32.mxu0 %vm9917_vm0, %v9918_v1  ;;  %8767 = vmatprep.mubr.msk.f32.mxu1 %vm9917_vm0, %v9918_v1 }
0x156e   : > { %8770 = vmatprep.subr.mxu0 %v9918_v1  ;;  %8775 = vmatprep.subr.mxu1 %v9918_v1 }
0x156f   : > { %8763 = vmatmul.mubr.msk.f32.vlgmr.msra.gmra.mrb[26].mxu0 %vm1820_vm2, %v4846_v61  ;;  %8768 = vmatmul.mubr.msk.f32.vlgmr.msra.gmra.mrb[32].mxu1 %vm1820_vm2, %v4847_v3 }
0x1570   : > { %8772 = vmatprep.mubr.msk.f32.mxu0 %vm9917_vm0, %v9918_v1  ;;  %8777 = vmatprep.mubr.msk.f32.mxu1 %vm9917_vm0, %v9918_v1 }
0x163e   : > { %v5214_v49 = vpop.f32.mrb[24].mxu0  ;;  %v5290_v50 = vpop.f32.mrb[30].mxu1 }
0x163f   : > { %v5446_v8 = vmul.f32 0.35355338, %v5214_v49  ;;  %v5447_v52 = vmul.f32 0.35355338, %v5290_v50  ;;  %v8754_v53 = vpop.f32.mrb[25].mxu0  ;;  %v8759_v54 = vpop.f32.mrb[31].mxu1 }
0x1641   : > { %v5450_v55 = vsel %vm1820_vm2, %v5446_v8, -inf  ;;  %v5453_v56 = vsel %vm1820_vm2, %v5447_v52, -inf }
0x1642   : > { %5451 = vmax.xlane.f32.xlu0 %v5450_v55  ;;  %v5366_v57 = vpop.f32.mrb[26].mxu0  ;;  %5454 = vmax.xlane.f32.xlu1 %v5453_v56  ;;  %v5442_v58 = vpop.f32.mrb[32].mxu1 }
0x1643   : > { %v5448_v59 = vmul.f32 0.35355338, %v5366_v57  ;;  %v8764_v63 = vpop.f32.mrb[27].mxu0  ;;  %v8769_v2 = vpop.f32.mrb[33].mxu1  ;;  %v5449_v60 = vmul.f32 0.35355338, %v5442_v58 }
0x1645   : > { %v5456_v61 = vsel %vm1820_vm2, %v5448_v59, -inf  ;;  %v5459_v3 = vsel %vm1820_vm2, %v5449_v60, -inf }
0x1646   : > { %5457 = vmax.xlane.f32.xlu0 %v5456_v61 }
0x164a   : > { %5460 = vmax.xlane.f32.xlu0 %v5459_v3 }
0x1653   : > { %4997 = vrot.lane.b32.xlu1 %v4699_v5, %s11418_s4 }
0x16cf   : > { %v5452_v6 = vpop.xlane.xlu0 %5451  ;;  %v5455_v7 = vpop.xlane.xlu1 %5454 }
0x16d0   : > { %v5462_v10 = vsub.f32 %v5446_v8, %v5452_v6  ;;  %v5463_v11 = vsub.f32 %v5447_v52, %v5455_v7 }
0x16d2   : > { %v5466_v12 = vmul.f32 1.442695, %v5462_v10  ;;  %v5468_v9 = vmul.f32 1.442695, %v5463_v11 }
0x16d3   : > { %v5458_v62 = vpop.xlane.xlu0 %5457  ;;  %v4998_v27 = vpop.permute.xlu1 %4997 }
0x16d4   : > { %9301 = vpow2.f32 %v5466_v12  ;;  %v5464_v15 = vsub.f32 %v5448_v59, %v5458_v62 }
0x16d5   : > { %9303 = vpow2.f32 %v5468_v9 }
0x16d6   : > { %v5470_v16 = vmul.f32 1.442695, %v5464_v15 }
0x16d7   : > { %v5461_v17 = vpop.xlane.xlu0 %5460 }
0x16d8   : > { %9305 = vpow2.f32 %v5470_v16  ;;  %v5465_v51 = vsub.f32 %v5449_v60, %v5461_v17 }
0x16da   : > { %v5472_v18 = vmul.f32 1.442695, %v5465_v51 }
0x16dc   : > { %9307 = vpow2.f32 %v5472_v18 }
0x16de   : > { %v10959_v21 = vpop.eup %9301 }
0x16df   : > { %v10961_v24 = vpop.eup %9303  ;;  %v5474_v22 = vsel %vm1820_vm2, %v10959_v21, 0.0 }
0x16e0   : > { %5475 = vadd.xlane.f32.xlu1 %v5474_v22  ;;  %v5477_v25 = vsel %vm1820_vm2, %v10961_v24, 0.0 }
0x16e1   : > { %5478 = vadd.xlane.f32.xlu0 %v5477_v25  ;;  %v8311_v25 = vld [vmem:[%s11403_s14 + $0x28] sm:$0xff] }
0x16e2   : > { %v10967_v26 = vpop.eup %9305 }
0x16e3   : > { %v5480_v19 = vsel %vm1820_vm2, %v10967_v26, 0.0 }
0x16e4   : > { %5481 = vadd.xlane.f32.xlu1 %v5480_v19 }
0x16e6   : > { %v10971_v20 = vpop.eup %9307 }
0x16e7   : > { %v5483_v23 = vsel %vm1820_vm2, %v10971_v20, 0.0 }
0x16e8   : > { %5484 = vadd.xlane.f32.xlu0 %v5483_v23 }
0x16f5   : > { %5003 = vrot.lane.b32.xlu1 %v4699_v5, %s11406_s28 }
0x16fe   : > { %5000 = vrot.lane.b32.xlu0 %v4699_v5, %s11417_s24 }
0x176d   : > { %v5476_v28 = vpop.xlane.xlu1 %5475 }
0x176e   : > { %v5479_v29 = vpop.xlane.xlu0 %5478  ;;  %9309 = vrcp.f32 %v5476_v28 }
0x176f   : > { %9311 = vrcp.f32 %v5479_v29 }
0x1771   : > { %v5482_v30 = vpop.xlane.xlu1 %5481 }
0x1772   : > { %9313 = vrcp.f32 %v5482_v30 }
0x1775   : > { %v5004_v31 = vpop.permute.xlu1 %5003  ;;  %v5485_v32 = vpop.xlane.xlu0 %5484 }
0x1776   : > { %v5022_v34 = vcombine.low %v4998_v27, %v5004_v31  ;;  %v5023_v35 = vcombine.high %v4998_v27, %v5004_v31  ;;  %9315 = vrcp.f32 %v5485_v32 }
0x1778   : > { %v5030_v41 = vrot.slane %v5022_v34, %v10495_v33  ;;  %v5037_v42 = vrot.slane %v5023_v35, %v10495_v33  ;;  %v9310_v2 = vpop.eup %9309 }
0x1779   : > { %v5001_v36 = vpop.permute.xlu0 %5000  ;;  %v5490_v16 = vmul.f32 %v9310_v2, %v10959_v21 }
0x177a   : > { %v5006_v39 = vcombine.low %v4699_v5, %v5001_v36  ;;  %v5007_v40 = vcombine.high %v4699_v5, %v5001_v36  ;;  %v9312_v5 = vpop.eup %9311 }
0x177b   : > { %v5491_v17 = vmul.f32 %v9312_v5, %v10961_v24  ;;  %v8310_v24 = vld [vmem:[%s11403_s14 + $0x20] sm:$0xff] }
0x177c   : > { %v5014_v43 = vrot.slane %v5006_v39, %v10495_v33  ;;  %v5021_v44 = vrot.slane %v5007_v40, %v10495_v33  ;;  %v9314_v10 = vpop.eup %9313 }
0x177d   : > { %v5492_v22 = vmul.f32 %v9314_v10, %v10967_v26  ;;  %v8988_v26 = vpack.c.bf16 %v8311_v25, %v8310_v24 }
0x177e   : > { %v5038_v45 = vcombine.low %v5014_v43, %v5030_v41  ;;  %v5039_v46 = vcombine.high %v5014_v43, %v5030_v41  ;;  %v5054_v47 = vcombine.low %v5021_v44, %v5037_v42  ;;  %v5055_v48 = vcombine.high %v5021_v44, %v5037_v42 }
0x1780   : > { %v5046_v49 = vrot.slane %v5038_v45, %v10501_v37  ;;  %v5053_v50 = vrot.slane %v5039_v46, %v10501_v37  ;;  %v5062_v8 = vrot.slane %v5054_v47, %v10501_v37  ;;  %v5069_v52 = vrot.slane %v5055_v48, %v10501_v37  ;;  %v9316_v15 = vpop.eup %9315  ;;  %v8312_v47 = vld [vmem:[%s11403_s14 + $0x30] sm:$0xff]  ;;  %v8313_v48 = vld [vmem:[%s11403_s14 + $0x38] sm:$0xff] }
0x1781   : > { %v5493_v21 = vmul.f32 %v9316_v15, %v10971_v20 }
0x1782   : > { %v5074_v53 = vcombine.low %v5046_v49, %v5053_v50  ;;  %v8294_v54 = vcombine.high %v5046_v49, %v5053_v50  ;;  %v5090_v55 = vcombine.low %v5062_v8, %v5069_v52  ;;  %v8295_v56 = vcombine.high %v5062_v8, %v5069_v52 }
0x1784   : > { %v5081_v57 = vrot.slane %v5074_v53, %v10495_v33  ;;  %v5089_v58 = vrot.slane %v8294_v54, %v10495_v33  ;;  %v5097_v59 = vrot.slane %v5090_v55, %v10495_v33  ;;  %v5105_v63 = vrot.slane %v8295_v56, %v10495_v33 }
0x1785   : > { %v8991_v53 = vpack.c.bf16 %v8313_v48, %v8312_v47 }
0x1786   : > { %v5106_v60 = vcombine.low %v5081_v57, %v5089_v58  ;;  %v5122_v61 = vcombine.low %v5097_v59, %v5105_v63  ;;  %v5107_v3 = vcombine.high %v5081_v57, %v5089_v58  ;;  %v5123_v4 = vcombine.high %v5097_v59, %v5105_v63 }
0x1788   : > { %v5114_v6 = vrot.slane %v5106_v60, %v10501_v37  ;;  %v5130_v7 = vrot.slane %v5122_v61, %v10501_v37  ;;  %v5121_v11 = vrot.slane %v5107_v3, %v10501_v37  ;;  %v5137_v12 = vrot.slane %v5123_v4, %v10501_v37 }
0x178a   : > { %v5138_v9 = vcombine.low %v5114_v6, %v5130_v7  ;;  %v5139_v62 = vcombine.high %v5114_v6, %v5130_v7  ;;  %v5140_v51 = vcombine.low %v5121_v11, %v5137_v12  ;;  %v5141_v18 = vcombine.high %v5121_v11, %v5137_v12 }
0x178c   : > { %8771 = vmatpush3.msra.mxu0 %v5138_v9  ;;  %8776 = vmatpush3.msra.mxu1 %v5139_v62 }
0x178d   : > { %8773 = vmatmul.mubr.msk.f32.vlgmr.msra.gmra.mrb[28].mxu0 %vm1820_vm2, %v5490_v16  ;;  %8778 = vmatmul.mubr.msk.f32.vlgmr.msra.gmra.mrb[34].mxu1 %vm1820_vm2, %v5491_v17 }
0x178e   : > { %8780 = vmatprep.subr.mxu0 %v9918_v1  ;;  %8785 = vmatprep.subr.mxu1 %v9918_v1 }
0x178f   : > { %8781 = vmatpush3.msra.mxu0 %v5140_v51  ;;  %8786 = vmatpush3.msra.mxu1 %v5141_v18 }
0x1790   : > { %8782 = vmatprep.mubr.msk.f32.mxu0 %vm9917_vm0, %v9918_v1  ;;  %8787 = vmatprep.mubr.msk.f32.mxu1 %vm9917_vm0, %v9918_v1 }
0x1791   : > { %8783 = vmatmul.mubr.msk.f32.vlgmr.msra.gmra.mrb[30].mxu0 %vm1820_vm2, %v5492_v22  ;;  %8788 = vmatmul.mubr.msk.f32.vlgmr.msra.gmra.mrb[36].mxu1 %vm1820_vm2, %v5493_v21  ;;  %v8314_v21 = vld [vmem:[#allocation8 + $0x1] ss:$0 sm:$0xff] }
0x1792   : > { %8987 = vmatprep.subr.bf16.mxu0 %v9916_v0  ;;  %8798 = vmatprep.mubr.msk.f32.mxu0 %vm9917_vm0, %v9918_v1 }
0x1793   : > { %8993 = vmatprep.subr.bf16.mxu1 %v9916_v0  ;;  %8809 = vmatprep.mubr.msk.f32.mxu1 %vm9917_vm0, %v9918_v1 }
0x1794   : > { %8989 = vmatpush3.bf16.msra.mxu0 %v8988_v26 }
0x1795   : > { %8990 = vmatprep.subr.bf16.mxu0 %v9916_v0 }
0x1798   : > { %8992 = vmatpush3.bf16.msra.mxu0 %v8991_v53 }
0x1799   : > { %8999 = vmatprep.subr.bf16.mxu0 %v9916_v0 }
0x1860   : > { %v5563_v19 = vpop.f32.mrb[28].mxu0  ;;  %v5636_v20 = vpop.f32.mrb[34].mxu1 }
0x1861   : > { %v8774_v23 = vpop.f32.mrb[29].mxu0  ;;  %v8779_v27 = vpop.f32.mrb[35].mxu1 }
0x1862   : > { %v6143_v23 = vld [vmem:[#allocation16 + $0x20] sm:$0xff]  ;;  %v6144_v27 = vld [vmem:[#allocation16 + $0x28] sm:$0xff] }
0x1864   : > { %v5709_v28 = vpop.f32.mrb[30].mxu0  ;;  %v5782_v29 = vpop.f32.mrb[36].mxu1 }
0x1865   : > { %v5786_v30 = vcombine.low %v5563_v19, %v5709_v28  ;;  %v5787_v31 = vcombine.high %v5563_v19, %v5709_v28  ;;  %v5802_v32 = vcombine.low %v5636_v20, %v5782_v29  ;;  %v5803_v34 = vcombine.high %v5636_v20, %v5782_v29  ;;  %v8784_v35 = vpop.f32.mrb[31].mxu0  ;;  %v8789_v36 = vpop.f32.mrb[37].mxu1  ;;  %v6145_v28 = vld [vmem:[#allocation16 + $0x30] sm:$0xff] }
0x1866   : > { %v9000_v29 = vpack.c.bf16 %v6144_v27, %v6143_v23 }
0x1867   : > { %v5794_v39 = vrot.slane %v5786_v30, %v10495_v33  ;;  %v5801_v40 = vrot.slane %v5787_v31, %v10495_v33  ;;  %v5810_v41 = vrot.slane %v5802_v32, %v10495_v33  ;;  %v5817_v42 = vrot.slane %v5803_v34, %v10495_v33  ;;  %v6146_v30 = vld [vmem:[#allocation16 + $0x38] sm:$0xff] }
0x1868   : > { %v9003_v31 = vpack.c.bf16 %v6146_v30, %v6145_v28  ;;  %v6228_v28 = vld [vmem:[#allocation19 + $0x30] sm:$0xff] }
0x1869   : > { %v5818_v43 = vcombine.low %v5794_v39, %v5810_v41  ;;  %v5819_v44 = vcombine.high %v5794_v39, %v5810_v41  ;;  %v5834_v45 = vcombine.low %v5801_v40, %v5817_v42  ;;  %v5835_v46 = vcombine.high %v5801_v40, %v5817_v42  ;;  %v6057_v39 = vld [vmem:[#allocation13 + $0x20] sm:$0xff]  ;;  %v6058_v40 = vld [vmem:[#allocation13 + $0x28] sm:$0xff]  ;;  %v6059_v42 = vld [vmem:[#allocation13 + $0x30] sm:$0xff] }
0x186a   : > { %v8994_v41 = vpack.c.bf16 %v6058_v40, %v6057_v39 }
0x186b   : > { %v5826_v49 = vrot.slane %v5818_v43, %v10501_v37  ;;  %v5833_v50 = vrot.slane %v5819_v44, %v10501_v37  ;;  %v5842_v8 = vrot.slane %v5834_v45, %v10501_v37  ;;  %v5849_v52 = vrot.slane %v5835_v46, %v10501_v37  ;;  %v6060_v43 = vld [vmem:[#allocation13 + $0x38] sm:$0xff] }
0x186c   : > { %8995 = vmatpush3.bf16.msra.mxu1 %v8994_v41  ;;  %v8997_v44 = vpack.c.bf16 %v6060_v43, %v6059_v42  ;;  %v8318_v42 = vld [vmem:[#allocation14 + $0x1] ss:$0 sm:$0xff] }
0x186d   : > { %v5854_v54 = vcombine.low %v5826_v49, %v5833_v50  ;;  %v8308_v55 = vcombine.high %v5826_v49, %v5833_v50  ;;  %v5870_v56 = vcombine.low %v5842_v8, %v5849_v52  ;;  %v8309_v57 = vcombine.high %v5842_v8, %v5849_v52  ;;  %8996 = vmatprep.subr.bf16.mxu1 %v9916_v0  ;;  %v8316_v52 = vld [vmem:[#allocation10 + $0x1] ss:$0 sm:$0xff] }
0x186f   : > { %v5861_v58 = vrot.slane %v5854_v54, %v10495_v33  ;;  %v5869_v59 = vrot.slane %v8308_v55, %v10495_v33  ;;  %v5877_v63 = vrot.slane %v5870_v56, %v10495_v33  ;;  %v5885_v2 = vrot.slane %v8309_v57, %v10495_v33  ;;  %v8317_v54 = vld [vmem:[#allocation11 + $0x1] ss:$0 sm:$0xff] }
0x1870   : > { %8998 = vmatpush3.bf16.msra.mxu1 %v8997_v44 }
0x1871   : > { %v5887_v60 = vcombine.high %v5861_v58, %v5869_v59  ;;  %v5903_v61 = vcombine.high %v5877_v63, %v5885_v2  ;;  %v5886_v3 = vcombine.low %v5861_v58, %v5869_v59  ;;  %v5902_v4 = vcombine.low %v5877_v63, %v5885_v2  ;;  %9005 = vmatprep.subr.bf16.mxu1 %v9916_v0 }
0x1873   : > { %v5901_v5 = vrot.slane %v5887_v60, %v10501_v37  ;;  %v5917_v6 = vrot.slane %v5903_v61, %v10501_v37  ;;  %v5894_v7 = vrot.slane %v5886_v3, %v10501_v37  ;;  %v5910_v10 = vrot.slane %v5902_v4, %v10501_v37 }
0x1875   : > { %v5920_v11 = vcombine.low %v5901_v5, %v5917_v6  ;;  %v5919_v12 = vcombine.high %v5894_v7, %v5910_v10  ;;  %v5921_v9 = vcombine.high %v5901_v5, %v5917_v6  ;;  %v5918_v62 = vcombine.low %v5894_v7, %v5910_v10 }
0x1877   : > { %5927 = vrot.lane.b32.xlu0 %v5920_v11, %s11407_s12  ;;  %5923 = vrot.lane.b32.xlu1 %v5919_v12, %s11408_s11 }
0x187b   : > { %5931 = vrot.lane.b32.xlu1 %v5921_v9, %s11409_s8 }
0x18e9   : > { %v5924_v15 = vpop.permute.xlu1 %5923  ;;  %v5928_v16 = vpop.permute.xlu0 %5927 }
0x18ea   : > { %v5934_v17 = vsel %vm1820_vm2, %v5918_v62, %v5924_v15 }
0x18eb   : > { %v5935_v18 = vsel %vm2614_vm3, %v5934_v17, %v5928_v16 }
0x18ed   : > { %v5932_v51 = vpop.permute.xlu1 %5931 }
0x18ee   : > { %v5936_v22 = vsel %vm2616_vm4, %v5935_v18, %v5932_v51 }
0x18ef   : > { %8799 = vmatmul.mubr.msk.f32.vlgmr.msra.gmra.mrb[32].mxu0 %vm1222_vm1, %v5936_v22 }
0x18f0   : > { %8820 = vmatprep.mubr.msk.f32.mxu0 %vm9917_vm0, %v9918_v1  ;;  %9001 = vmatpush3.bf16.msra.mxu0 %v9000_v29  ;;  %v6229_v29 = vld [vmem:[#allocation19 + $0x38] sm:$0xff] }
0x18f1   : > { %9002 = vmatprep.subr.bf16.mxu0 %v9916_v0  ;;  %v9009_v30 = vpack.c.bf16 %v6229_v29, %v6228_v28 }
0x18f4   : > { %9004 = vmatpush3.bf16.msra.mxu0 %v9003_v31 }
0x18f5   : > { %8834 = vmatprep.subr.mxu0 %v9918_v1 }
0x18f7   : > { %8821 = vmatmul.mubr.msk.f32.vlgmr.msra.gmra.mrb[34].mxu0 %vm1222_vm1, %v10660_v38  ;;  %v8320_v38 = vld [vmem:[#allocation17 + $0x1] ss:$0 sm:$0xff] }
0x18f8   : > { %8836 = vmatprep.mubr.msk.f32.mxu0 %vm9917_vm0, %v9918_v1 }
0x19c2   : > { %v6019_v24 = vpop.f32.mrb[32].mxu0 }
0x19c3   : > { %v6020_v25 = vadd.f32 %v8314_v21, %v6019_v24  ;;  %v8800_v26 = vpop.f32.mrb[33].mxu0 }
0x19c4   : > { %v6226_v26 = vld [vmem:[#allocation19 + $0x20] sm:$0xff] }
0x19c5   : > { %v6023_v19 = vadd.f32 %v6020_v25, %v10872_v13 }
0x19c7   : > { %v6028_v20 = vsel %vm1222_vm1, %v6023_v19, 0.0 }
0x19c8   : > { %6029 = vadd.xlane.f32.xlu0 %v6028_v20 }
0x19ca   : > { %v6221_v45 = vpop.f32.mrb[34].mxu0 }
0x19cb   : > { %v6222_v46 = vadd.f32 %v8320_v38, %v6221_v45  ;;  %v8822_v47 = vpop.f32.mrb[35].mxu0 }
0x19de   : > { %6455 = vrot.lane.b32.xlu0 %v6222_v46, %s11418_s4 }
0x19e2   : > { %6461 = vrot.lane.b32.xlu0 %v6222_v46, %s11406_s28 }
0x1a55   : > { %v6030_v13 = vpop.xlane.xlu0 %6029 }
0x1a56   : > { %v6031_v32 = vmul.f32 0.03125, %v6030_v13 }
0x1a58   : > { %v6032_v34 = vsub.f32 %v6023_v19, %v6031_v32  ;;  %v6227_v19 = vld [vmem:[#allocation19 + $0x28] sm:$0xff] }
0x1a59   : > { %v6456_v58 = vpop.permute.xlu0 %6455  ;;  %v9006_v23 = vpack.c.bf16 %v6227_v19, %v6226_v26 }
0x1a5a   : > { %v6033_v35 = vmul.f32 %v6032_v34, %v6032_v34 }
0x1a5c   : > { %v6034_v36 = vsel %vm1222_vm1, %v6033_v35, 0.0  ;;  %v9342_v35 = vld [vmem:[%s10653_s23] sm:$0x3f]  ;;  %s8376_s23 = sshll.u32 %s10110_s26, 7  ;;  %s9928_s26 = smov [#allocation26]  }
0x1a5d   : > { %6035 = vadd.xlane.f32.xlu1 %v6034_v36  ;;  %v6462_v60 = vpop.permute.xlu0 %6461 }
0x1a5e   : > { %v6480_v4 = vcombine.low %v6456_v58, %v6462_v60  ;;  %v6481_v5 = vcombine.high %v6456_v58, %v6462_v60 }
0x1a60   : > { %v6488_v6 = vrot.slane %v6480_v4, %v10495_v33 }
0x1a6e   : > { %6458 = vrot.lane.b32.xlu1 %v6222_v46, %s11417_s24 }
0x1aea   : > { %v6036_v48 = vpop.xlane.xlu1 %6035 }
0x1aeb   : > { %v6037_v49 = vmul.f32 0.03125, %v6036_v48 }
0x1aed   : > { %v6038_v50 = vadd.f32 1e-05, %v6037_v49 }
0x1aee   : > { %v6459_v59 = vpop.permute.xlu1 %6458 }
0x1aef   : > { %9317 = vrsqrt.f32 %v6038_v50  ;;  %v6464_v63 = vcombine.low %v6222_v46, %v6459_v59  ;;  %v6465_v2 = vcombine.high %v6222_v46, %v6459_v59 }
0x1af1   : > { %v6472_v61 = vrot.slane %v6464_v63, %v10495_v33  ;;  %v6479_v3 = vrot.slane %v6465_v2, %v10495_v33 }
0x1af3   : > { %v6496_v7 = vcombine.low %v6472_v61, %v6488_v6  ;;  %v6497_v10 = vcombine.high %v6472_v61, %v6488_v6 }
0x1af5   : > { %v6504_v12 = vrot.slane %v6496_v7, %v10501_v37  ;;  %v6511_v9 = vrot.slane %v6497_v10, %v10501_v37 }
0x1af7   : > { %v6522_v15 = vcombine.low %v6504_v12, %v6511_v9  ;;  %v8326_v16 = vcombine.high %v6504_v12, %v6511_v9 }
0x1af9   : > { %v9318_v8 = vpop.eup %9317  ;;  %v6529_v18 = vrot.slane %v6522_v15, %v10495_v33  ;;  %v6537_v22 = vrot.slane %v8326_v16, %v10495_v33 }
0x1afa   : > { %v6040_v53 = vmul.f32 %v9318_v8, %v6032_v34 }
0x1afb   : > { %v6554_v24 = vcombine.high %v6529_v18, %v6537_v22  ;;  %v6553_v27 = vcombine.low %v6529_v18, %v6537_v22 }
0x1afc   : > { %v6047_v55 = vmul.f32 %v8316_v52, %v6040_v53 }
0x1afd   : > { %v6561_v13 = vrot.slane %v6553_v27, %v10501_v37  ;;  %v6568_v39 = vrot.slane %v6554_v24, %v10501_v37 }
0x1afe   : > { %v11058_v56 = vadd.f32 %v8317_v54, %v6047_v55 }
0x1b00   : > { %v6055_v57 = vadd.f32 %v10876_v14, %v11058_v56  ;;  %v6495_v14 = vrot.slane %v6481_v5, %v10495_v33 }
0x1b02   : > { %8810 = vmatmul.mubr.msk.f32.vlgmr.msra.gmra.mrb[38].mxu1 %vm1222_vm1, %v6055_v57  ;;  %v6512_v11 = vcombine.low %v6479_v3, %v6495_v14 }
0x1b03   : > { %8831 = vmatprep.mubr.msk.f32.mxu1 %vm9917_vm0, %v9918_v1  ;;  %9007 = vmatpush3.bf16.msra.mxu1 %v9006_v23 }
0x1b04   : > { %v6519_v62 = vrot.slane %v6512_v11, %v10501_v37  ;;  %9008 = vmatprep.subr.bf16.mxu1 %v9916_v0 }
0x1b06   : > { %v6544_v17 = vrot.slane %v6519_v62, %v10495_v33  ;;  %v6545_v51 = vcombine.high %v6519_v62, %v9918_v1 }
0x1b07   : > { %9010 = vmatpush3.bf16.msra.mxu1 %v9009_v30 }
0x1b08   : > { %v6552_v21 = vrot.slane %v6545_v51, %v10495_v33  ;;  %8839 = vmatprep.subr.mxu1 %v9918_v1 }
0x1b0a   : > { %v6570_v25 = vcombine.high %v6544_v17, %v6552_v21  ;;  %v6569_v20 = vcombine.low %v6544_v17, %v6552_v21  ;;  %8832 = vmatmul.mubr.msk.f32.vlgmr.msra.gmra.mrb[40].mxu1 %vm1222_vm1, %v9342_v35 }
0x1b0b   : > { %8841 = vmatprep.mubr.msk.f32.mxu1 %vm9917_vm0, %v9918_v1 }
0x1b0c   : > { %v6577_v31 = vrot.slane %v6569_v20, %v10501_v37  ;;  %v6584_v34 = vrot.slane %v6570_v25, %v10501_v37 }
0x1b0e   : > { %v6585_v32 = vcombine.low %v6561_v13, %v6577_v31  ;;  %v6586_v36 = vcombine.high %v6561_v13, %v6577_v31  ;;  %v6587_v40 = vcombine.low %v6568_v39, %v6584_v34  ;;  %v6588_v41 = vcombine.high %v6568_v39, %v6584_v34 }
0x1b10   : > { %8835 = vmatpush3.xpose.msk.msra.mxu0 %vm1820_vm2, %v6585_v32  ;;  %8840 = vmatpush3.xpose.msk.msra.mxu1 %vm1820_vm2, %v6586_v36 }
0x1b11   : > { %8844 = vmatprep.subr.mxu0 %v9918_v1  ;;  %8849 = vmatprep.subr.mxu1 %v9918_v1 }
0x1bd5   : > { %v6138_v43 = vpop.f32.mrb[38].mxu1 }
0x1bd6   : > { %v6139_v44 = vadd.f32 %v8318_v42, %v6138_v43  ;;  %v8811_v38 = vpop.f32.mrb[39].mxu1 }
0x1bd8   : > { %6312 = vrot.lane.b32.xlu0 %v6139_v44, %s11417_s24  ;;  %6309 = vrot.lane.b32.xlu1 %v6139_v44, %s11418_s4 }
0x1bdc   : > { %6315 = vrot.lane.b32.xlu1 %v6139_v44, %s11406_s28 }
0x1bdd   : > { %v11094_v45 = vpop.f32.mrb[40].mxu1 }
0x1bde   : > { %v8833_v46 = vpop.f32.mrb[41].mxu1 }
0x1c4a   : > { %v6313_v47 = vpop.permute.xlu0 %6312  ;;  %v6310_v48 = vpop.permute.xlu1 %6309 }
0x1c4b   : > { %v6318_v49 = vcombine.low %v6139_v44, %v6313_v47  ;;  %v6319_v50 = vcombine.high %v6139_v44, %v6313_v47  ;;  %v8322_v44 = vld [vmem:[#allocation20 + $0x1] ss:$0 sm:$0xff] }
0x1c4c   : > { %v6305_v38 = vadd.f32 %v8322_v44, %v11094_v45 }
0x1c4d   : > { %v6326_v54 = vrot.slane %v6318_v49, %v10495_v33  ;;  %v6333_v55 = vrot.slane %v6319_v50, %v10495_v33 }
0x1c4e   : > { %v6316_v8 = vpop.permute.xlu1 %6315 }
0x1c4f   : > { %v6334_v52 = vcombine.low %v6310_v48, %v6316_v8  ;;  %v6335_v53 = vcombine.high %v6310_v48, %v6316_v8 }
0x1c51   : > { %v6342_v57 = vrot.slane %v6334_v52, %v10495_v33  ;;  %v6349_v58 = vrot.slane %v6335_v53, %v10495_v33 }
0x1c53   : > { %v6350_v59 = vcombine.low %v6326_v54, %v6342_v57  ;;  %v6351_v63 = vcombine.high %v6326_v54, %v6342_v57  ;;  %v6366_v2 = vcombine.low %v6333_v55, %v6349_v58  ;;  %v6367_v60 = vcombine.high %v6333_v55, %v6349_v58 }
0x1c55   : > { %v6358_v61 = vrot.slane %v6350_v59, %v10501_v37  ;;  %v6365_v3 = vrot.slane %v6351_v63, %v10501_v37  ;;  %v6374_v4 = vrot.slane %v6366_v2, %v10501_v37  ;;  %v6381_v5 = vrot.slane %v6367_v60, %v10501_v37 }
0x1c57   : > { %v6386_v6 = vcombine.low %v6358_v61, %v6365_v3  ;;  %v8324_v14 = vcombine.high %v6358_v61, %v6365_v3  ;;  %v6402_v7 = vcombine.low %v6374_v4, %v6381_v5  ;;  %v8325_v10 = vcombine.high %v6374_v4, %v6381_v5 }
0x1c59   : > { %v6393_v11 = vrot.slane %v6386_v6, %v10495_v33  ;;  %v6401_v12 = vrot.slane %v8324_v14, %v10495_v33  ;;  %v6409_v9 = vrot.slane %v6402_v7, %v10495_v33  ;;  %v6417_v62 = vrot.slane %v8325_v10, %v10495_v33 }
0x1c5b   : > { %v6418_v15 = vcombine.low %v6393_v11, %v6401_v12  ;;  %v6419_v16 = vcombine.high %v6393_v11, %v6401_v12  ;;  %v6434_v17 = vcombine.low %v6409_v9, %v6417_v62  ;;  %v6435_v51 = vcombine.high %v6409_v9, %v6417_v62 }
0x1c5d   : > { %v6426_v18 = vrot.slane %v6418_v15, %v10501_v37  ;;  %v6442_v22 = vrot.slane %v6434_v17, %v10501_v37  ;;  %v6433_v25 = vrot.slane %v6419_v16, %v10501_v37  ;;  %v6449_v26 = vrot.slane %v6435_v51, %v10501_v37 }
0x1c5f   : > { %v6450_v21 = vcombine.low %v6426_v18, %v6442_v22  ;;  %v6451_v24 = vcombine.high %v6426_v18, %v6442_v22  ;;  %v6452_v19 = vcombine.low %v6433_v25, %v6449_v26  ;;  %v6453_v20 = vcombine.high %v6433_v25, %v6449_v26 }
0x1c61   : > { %8837 = vmatmul.mubr.msk.f32.vlgmr.msra.gmra.mrb[36].mxu0 %vm1820_vm2, %v6450_v21  ;;  %8842 = vmatmul.mubr.msk.f32.vlgmr.msra.gmra.mrb[42].mxu1 %vm1820_vm2, %v6451_v24 }
0x1c62   : > { %8845 = vmatpush3.xpose.msk.msra.mxu0 %vm1820_vm2, %v6587_v40  ;;  %8850 = vmatpush3.xpose.msk.msra.mxu1 %vm1820_vm2, %v6588_v41 }
0x1c63   : > { %8846 = vmatprep.mubr.msk.f32.mxu0 %vm9917_vm0, %v9918_v1  ;;  %8851 = vmatprep.mubr.msk.f32.mxu1 %vm9917_vm0, %v9918_v1 }
0x1c64   : > { %8854 = vmatprep.subr.mxu0 %v9918_v1  ;;  %8859 = vmatprep.subr.mxu1 %v9918_v1 }
0x1c65   : > { %8847 = vmatmul.mubr.msk.f32.vlgmr.msra.gmra.mrb[38].mxu0 %vm1820_vm2, %v6452_v19  ;;  %8852 = vmatmul.mubr.msk.f32.vlgmr.msra.gmra.mrb[44].mxu1 %vm1820_vm2, %v6453_v20 }
0x1c66   : > { %8856 = vmatprep.mubr.msk.f32.mxu0 %vm9917_vm0, %v9918_v1  ;;  %8861 = vmatprep.mubr.msk.f32.mxu1 %vm9917_vm0, %v9918_v1 }
0x1d34   : > { %v6796_v23 = vpop.f32.mrb[36].mxu0  ;;  %v6872_v27 = vpop.f32.mrb[42].mxu1 }
0x1d35   : > { %v7028_v28 = vmul.f32 0.35355338, %v6796_v23  ;;  %v7029_v29 = vmul.f32 0.35355338, %v6872_v27  ;;  %v8838_v30 = vpop.f32.mrb[37].mxu0  ;;  %v8843_v31 = vpop.f32.mrb[43].mxu1 }
0x1d37   : > { %v7032_v13 = vsel %vm3710_vm5, %v7028_v28, -inf  ;;  %v7035_v32 = vsel %vm3710_vm5, %v7029_v29, -inf }
0x1d38   : > { %7033 = vmax.xlane.f32.xlu0 %v7032_v13  ;;  %v6948_v34 = vpop.f32.mrb[38].mxu0  ;;  %7036 = vmax.xlane.f32.xlu1 %v7035_v32  ;;  %v7024_v35 = vpop.f32.mrb[44].mxu1 }
0x1d39   : > { %v7030_v36 = vmul.f32 0.35355338, %v6948_v34  ;;  %v8848_v39 = vpop.f32.mrb[39].mxu0  ;;  %v8853_v40 = vpop.f32.mrb[45].mxu1  ;;  %v7031_v41 = vmul.f32 0.35355338, %v7024_v35 }
0x1d3b   : > { %v7038_v42 = vsel %vm3710_vm5, %v7030_v36, -inf  ;;  %v7041_v43 = vsel %vm3710_vm5, %v7031_v41, -inf }
0x1d3c   : > { %7039 = vmax.xlane.f32.xlu0 %v7038_v42 }
0x1d40   : > { %7042 = vmax.xlane.f32.xlu0 %v7041_v43 }
0x1d49   : > { %6590 = vrot.lane.b32.xlu1 %v6305_v38, %s11418_s4  ;;  %s11421_s4 = sld [smem:[#allocation64_spill]] }
0x1dc5   : > { %v7034_v46 = vpop.xlane.xlu0 %7033  ;;  %v7037_v47 = vpop.xlane.xlu1 %7036 }
0x1dc6   : > { %v7044_v48 = vsub.f32 %v7028_v28, %v7034_v46  ;;  %v7045_v49 = vsub.f32 %v7029_v29, %v7037_v47 }
0x1dc8   : > { %v7048_v50 = vmul.f32 1.442695, %v7044_v48  ;;  %v7050_v8 = vmul.f32 1.442695, %v7045_v49 }
0x1dc9   : > { %v7040_v52 = vpop.xlane.xlu0 %7039  ;;  %v6591_v5 = vpop.permute.xlu1 %6590 }
0x1dca   : > { %9319 = vpow2.f32 %v7048_v50  ;;  %v7046_v53 = vsub.f32 %v7030_v36, %v7040_v52 }
0x1dcb   : > { %9321 = vpow2.f32 %v7050_v8 }
0x1dcc   : > { %v7052_v54 = vmul.f32 1.442695, %v7046_v53 }
0x1dcd   : > { %v7043_v55 = vpop.xlane.xlu0 %7042 }
0x1dce   : > { %9323 = vpow2.f32 %v7052_v54  ;;  %v7047_v57 = vsub.f32 %v7031_v41, %v7043_v55  ;;  %v7532_v55 = vld [vmem:[#allocation22 + $0x20] sm:$0xff] }
0x1dd0   : > { %v7054_v58 = vmul.f32 1.442695, %v7047_v57  ;;  %v7533_v57 = vld [vmem:[#allocation22 + $0x28] sm:$0xff] }
0x1dd2   : > { %9325 = vpow2.f32 %v7054_v58  ;;  %v9012_v58 = vpack.c.bf16 %v7533_v57, %v7532_v55 }
0x1dd4   : > { %v9320_v59 = vpop.eup %9319 }
0x1dd5   : > { %v9322_v45 = vpop.eup %9321  ;;  %v7056_v63 = vsel %vm3710_vm5, %v9320_v59, 0.0 }
0x1dd6   : > { %7057 = vadd.xlane.f32.xlu1 %v7056_v63  ;;  %v7059_v2 = vsel %vm3710_vm5, %v9322_v45, 0.0 }
0x1dd7   : > { %7060 = vadd.xlane.f32.xlu0 %v7059_v2 }
0x1dd8   : > { %v11136_v60 = vpop.eup %9323 }
0x1dd9   : > { %v7062_v61 = vsel %vm3710_vm5, %v11136_v60, 0.0 }
0x1dda   : > { %7063 = vadd.xlane.f32.xlu1 %v7062_v61 }
0x1ddc   : > { %v9326_v3 = vpop.eup %9325 }
0x1ddd   : > { %v7065_v4 = vsel %vm3710_vm5, %v9326_v3, 0.0 }
0x1dde   : > { %7066 = vadd.xlane.f32.xlu0 %v7065_v4 }
0x1deb   : > { %6596 = vrot.lane.b32.xlu1 %v6305_v38, %s11406_s28  ;;  %s1196_s28 = scalar_lea.vmem [#allocation26], %s10416_s17  ;;  %s9771_s17 = sshll.u32 %s9928_s26, 4  ;;  %s9772_s17 = int_to_ptr.vmem [resolvable:$false] %s9771_s17 }
0x1df4   : > { %6593 = vrot.lane.b32.xlu0 %v6305_v38, %s11417_s24 }
0x1e63   : > { %v7058_v6 = vpop.xlane.xlu1 %7057 }
0x1e64   : > { %v7061_v14 = vpop.xlane.xlu0 %7060  ;;  %9327 = vrcp.f32 %v7058_v6 }
0x1e65   : > { %9329 = vrcp.f32 %v7061_v14 }
0x1e67   : > { %v7064_v7 = vpop.xlane.xlu1 %7063 }
0x1e68   : > { %9331 = vrcp.f32 %v7064_v7 }
0x1e6b   : > { %v6597_v10 = vpop.permute.xlu1 %6596  ;;  %v7067_v11 = vpop.xlane.xlu0 %7066 }
0x1e6c   : > { %v6615_v12 = vcombine.low %v6591_v5, %v6597_v10  ;;  %v6616_v9 = vcombine.high %v6591_v5, %v6597_v10  ;;  %9333 = vrcp.f32 %v7067_v11 }
0x1e6e   : > { %v6623_v17 = vrot.slane %v6615_v12, %v10495_v33  ;;  %v6630_v51 = vrot.slane %v6616_v9, %v10495_v33  ;;  %v9328_v39 = vpop.eup %9327 }
0x1e6f   : > { %v6594_v62 = vpop.permute.xlu0 %6593  ;;  %v9330_v40 = vpop.eup %9329  ;;  %v7072_v48 = vmul.f32 %v9328_v39, %v9320_v59 }
0x1e70   : > { %v6599_v15 = vcombine.low %v6305_v38, %v6594_v62  ;;  %v6600_v16 = vcombine.high %v6305_v38, %v6594_v62  ;;  %v7073_v49 = vmul.f32 %v9330_v40, %v9322_v45 }
0x1e72   : > { %v6607_v18 = vrot.slane %v6599_v15, %v10495_v33  ;;  %v6614_v22 = vrot.slane %v6600_v16, %v10495_v33  ;;  %v9332_v47 = vpop.eup %9331 }
0x1e73   : > { %v7074_v53 = vmul.f32 %v9332_v47, %v11136_v60 }
0x1e74   : > { %v6631_v21 = vcombine.low %v6607_v18, %v6623_v17  ;;  %v6632_v24 = vcombine.high %v6607_v18, %v6623_v17  ;;  %v6647_v25 = vcombine.low %v6614_v22, %v6630_v51  ;;  %v7534_v51 = vld [vmem:[#allocation22 + $0x30] sm:$0xff]  ;;  %v7535_v18 = vld [vmem:[#allocation22 + $0x38] sm:$0xff] }
0x1e76   : > { %v6639_v26 = vrot.slane %v6631_v21, %v10501_v37  ;;  %v6646_v19 = vrot.slane %v6632_v24, %v10501_v37  ;;  %v6654_v20 = vrot.slane %v6647_v25, %v10501_v37  ;;  %v9334_v50 = vpop.eup %9333 }
0x1e77   : > { %v7075_v54 = vmul.f32 %v9334_v50, %v9326_v3 }
0x1e78   : > { %v6657_v23 = vcombine.low %v6639_v26, %v6646_v19  ;;  %v8327_v27 = vcombine.high %v6639_v26, %v6646_v19  ;;  %v6680_v28 = vcombine.high %v6654_v20, %v9918_v1  ;;  %v6679_v31 = vrot.slane %v6654_v20, %v10495_v33 }
0x1e79   : > { %v9015_v26 = vpack.c.bf16 %v7535_v18, %v7534_v51  ;;  %v8349_v51 = vld [vmem:[#allocation25 + $0x1] ss:$0 sm:$0xff] }
0x1e7a   : > { %v6664_v29 = vrot.slane %v6657_v23, %v10495_v33  ;;  %v6672_v30 = vrot.slane %v8327_v27, %v10495_v33  ;;  %v6687_v13 = vrot.slane %v6680_v28, %v10495_v33 }
0x1e7c   : > { %v6688_v32 = vcombine.low %v6664_v29, %v6672_v30  ;;  %v6689_v34 = vcombine.high %v6664_v29, %v6672_v30  ;;  %v6704_v35 = vcombine.low %v6679_v31, %v6687_v13  ;;  %v6705_v36 = vcombine.high %v6679_v31, %v6687_v13 }
0x1e7e   : > { %v6712_v41 = vrot.slane %v6704_v35, %v10501_v37  ;;  %v6696_v42 = vrot.slane %v6688_v32, %v10501_v37  ;;  %v6719_v43 = vrot.slane %v6705_v36, %v10501_v37  ;;  %v6703_v44 = vrot.slane %v6689_v34, %v10501_v37 }
0x1e80   : > { %v6720_v38 = vcombine.low %v6696_v42, %v6712_v41  ;;  %v6721_v46 = vcombine.high %v6696_v42, %v6712_v41  ;;  %v6722_v8 = vcombine.low %v6703_v44, %v6719_v43  ;;  %v6723_v52 = vcombine.high %v6703_v44, %v6719_v43 }
0x1e82   : > { %8855 = vmatpush3.msk.msra.mxu0 %vm3758_vm6, %v6720_v38  ;;  %8860 = vmatpush3.msk.msra.mxu1 %vm3758_vm6, %v6721_v46 }
0x1e83   : > { %8857 = vmatmul.mubr.msk.f32.vlgmr.msra.gmra.mrb[40].mxu0 %vm3710_vm5, %v7072_v48  ;;  %8862 = vmatmul.mubr.msk.f32.vlgmr.msra.gmra.mrb[46].mxu1 %vm3710_vm5, %v7073_v49 }
0x1e84   : > { %8864 = vmatprep.subr.mxu0 %v9918_v1  ;;  %8869 = vmatprep.subr.mxu1 %v9918_v1 }
0x1e85   : > { %8865 = vmatpush3.msk.msra.mxu0 %vm3758_vm6, %v6722_v8  ;;  %8870 = vmatpush3.msk.msra.mxu1 %vm3758_vm6, %v6723_v52 }
0x1e86   : > { %8866 = vmatprep.mubr.msk.f32.mxu0 %vm9917_vm0, %v9918_v1  ;;  %8871 = vmatprep.mubr.msk.f32.mxu1 %vm9917_vm0, %v9918_v1 }
0x1e87   : > { %8867 = vmatmul.mubr.msk.f32.vlgmr.msra.gmra.mrb[42].mxu0 %vm3710_vm5, %v7074_v53  ;;  %8872 = vmatmul.mubr.msk.f32.vlgmr.msra.gmra.mrb[48].mxu1 %vm3710_vm5, %v7075_v54 }
0x1e88   : > { %9011 = vmatprep.subr.bf16.mxu0 %v9916_v0  ;;  %8882 = vmatprep.mubr.msk.f32.mxu0 %vm9917_vm0, %v9918_v1 }
0x1e89   : > { %9017 = vmatprep.subr.bf16.mxu1 %v9916_v0  ;;  %8893 = vmatprep.mubr.msk.f32.mxu1 %vm9917_vm0, %v9918_v1 }
0x1e8a   : > { %9013 = vmatpush3.bf16.msra.mxu0 %v9012_v58 }
0x1e8b   : > { %9014 = vmatprep.subr.bf16.mxu0 %v9916_v0 }
0x1e8e   : > { %9016 = vmatpush3.bf16.msra.mxu0 %v9015_v26  ;;  %v8365_v26 = vld [vmem:[%s11411_s3 + $0x78] sm:$0xff] }
0x1e8f   : > { %9023 = vmatprep.subr.bf16.mxu0 %v9916_v0 }
0x1f56   : > { %v7148_v59 = vpop.f32.mrb[40].mxu0  ;;  %v7224_v45 = vpop.f32.mrb[46].mxu1 }
0x1f57   : > { %v8858_v63 = vpop.f32.mrb[41].mxu0  ;;  %v8863_v2 = vpop.f32.mrb[47].mxu1 }
0x1f58   : > { %v8351_v63 = vld [vmem:[%s11410_s6 + $0x20] sm:$0xff]  ;;  %v8352_v2 = vld [vmem:[%s11410_s6 + $0x28] sm:$0xff] }
0x1f5a   : > { %v7300_v60 = vpop.f32.mrb[42].mxu0  ;;  %v7376_v61 = vpop.f32.mrb[48].mxu1 }
0x1f5b   : > { %v7380_v3 = vcombine.low %v7148_v59, %v7300_v60  ;;  %v7381_v4 = vcombine.high %v7148_v59, %v7300_v60  ;;  %v7396_v5 = vcombine.low %v7224_v45, %v7376_v61  ;;  %v7397_v6 = vcombine.high %v7224_v45, %v7376_v61  ;;  %v8868_v14 = vpop.f32.mrb[43].mxu0  ;;  %v8873_v7 = vpop.f32.mrb[49].mxu1  ;;  %v8354_v61 = vld [vmem:[%s11410_s6 + $0x38] sm:$0xff] }
0x1f5c   : > { %v9018_v60 = vpack.c.bf16 %v8352_v2, %v8351_v63  ;;  %v8361_v7 = vld [vmem:[%s11411_s3 + $0x58] sm:$0xff]  ;;  %v8374_v63 = vld [vmem:[%s11420_s27] ss:$0 sm:$0xff]  ;;  %s9773_s27 = scalar_lea.vmem %s9772_s17, 256 }
0x1f5d   : > { %v7388_v10 = vrot.slane %v7380_v3, %v10495_v33  ;;  %v7395_v11 = vrot.slane %v7381_v4, %v10495_v33  ;;  %v7404_v12 = vrot.slane %v7396_v5, %v10495_v33  ;;  %v7411_v9 = vrot.slane %v7397_v6, %v10495_v33  ;;  %v8358_v4 = vld [vmem:[%s11411_s3 + $0x40] sm:$0xff]  ;;  %v8359_v5 = vld [vmem:[%s11411_s3 + $0x48] sm:$0xff]  ;;  %v8360_v6 = vld [vmem:[%s11411_s3 + $0x50] sm:$0xff] }
0x1f5e   : > { %9019 = vmatpush3.bf16.msra.mxu1 %v9018_v60  ;;  %v9024_v14 = vpack.c.bf16 %v8359_v5, %v8358_v4 }
0x1f5f   : > { %v7412_v62 = vcombine.low %v7388_v10, %v7404_v12  ;;  %v7413_v15 = vcombine.high %v7388_v10, %v7404_v12  ;;  %v7428_v16 = vcombine.low %v7395_v11, %v7411_v9  ;;  %v7429_v17 = vcombine.high %v7395_v11, %v7411_v9  ;;  %9020 = vmatprep.subr.bf16.mxu1 %v9916_v0  ;;  %v8362_v11 = vld [vmem:[%s11411_s3 + $0x60] sm:$0xff]  ;;  %v8363_v12 = vld [vmem:[%s11411_s3 + $0x68] sm:$0xff] }
0x1f60   : > { %v9027_v10 = vpack.c.bf16 %v8361_v7, %v8360_v6  ;;  %v9030_v9 = vpack.c.bf16 %v8363_v12, %v8362_v11 }
0x1f61   : > { %v7420_v22 = vrot.slane %v7412_v62, %v10501_v37  ;;  %v7427_v21 = vrot.slane %v7413_v15, %v10501_v37  ;;  %v7436_v24 = vrot.slane %v7428_v16, %v10501_v37  ;;  %v7443_v25 = vrot.slane %v7429_v17, %v10501_v37 }
0x1f63   : > { %v7448_v19 = vcombine.low %v7420_v22, %v7427_v21  ;;  %v8344_v20 = vcombine.high %v7420_v22, %v7427_v21  ;;  %v7464_v23 = vcombine.low %v7436_v24, %v7443_v25  ;;  %v8345_v27 = vcombine.high %v7436_v24, %v7443_v25  ;;  %v8350_v22 = vld [vmem:[%s11412_s25 + $0x1] ss:$0 sm:$0xff]  ;;  %v8364_v25 = vld [vmem:[%s11411_s3 + $0x70] sm:$0xff] }
0x1f65   : > { %v7455_v28 = vrot.slane %v7448_v19, %v10495_v33  ;;  %v7463_v29 = vrot.slane %v8344_v20, %v10495_v33  ;;  %v7471_v30 = vrot.slane %v7464_v23, %v10495_v33  ;;  %v7479_v31 = vrot.slane %v8345_v27, %v10495_v33  ;;  %v8356_v20 = vld [vmem:[%s11413_s10 + $0x1] ss:$0 sm:$0xff] }
0x1f66   : > { %v9033_v19 = vpack.c.bf16 %v8365_v26, %v8364_v25 }
0x1f67   : > { %v7481_v13 = vcombine.high %v7455_v28, %v7463_v29  ;;  %v7497_v32 = vcombine.high %v7471_v30, %v7479_v31  ;;  %v7480_v34 = vcombine.low %v7455_v28, %v7463_v29  ;;  %v7496_v35 = vcombine.low %v7471_v30, %v7479_v31  ;;  %v8367_v29 = vld [vmem:[%s11414_s19 + $0x1] ss:$0 sm:$0xff] }
0x1f69   : > { %v7495_v36 = vrot.slane %v7481_v13, %v10501_v37  ;;  %v7511_v39 = vrot.slane %v7497_v32, %v10501_v37  ;;  %v7488_v40 = vrot.slane %v7480_v34, %v10501_v37  ;;  %v7504_v41 = vrot.slane %v7496_v35, %v10501_v37  ;;  %v8346_v37 = vld [vmem:[#allocation23 + $0x1] ss:$0 sm:$0xff] }
0x1f6b   : > { %v7514_v42 = vcombine.low %v7495_v36, %v7511_v39  ;;  %v7513_v43 = vcombine.high %v7488_v40, %v7504_v41  ;;  %v7515_v44 = vcombine.high %v7495_v36, %v7511_v39  ;;  %v7512_v38 = vcombine.low %v7488_v40, %v7504_v41 }
0x1f6d   : > { %7521 = vrot.lane.b32.xlu0 %v7514_v42, %s11407_s12  ;;  %7517 = vrot.lane.b32.xlu1 %v7513_v43, %s11408_s11  ;;  %s7902_s12 = sshll.u32 %s1196_s28, 4  ;;  %s11242_s11 = scalar_lea.hbm %s11421_s4, %s8376_s23  ;;  %s11244_s12 = int_to_ptr.vmem [resolvable:$true] %s7902_s12 }
0x1f6e   : > { %s9767_s24 = scalar_lea.vmem %s11244_s12, 128  ;;  %p9774_p7 = scmp.lt.s32.totalorder %s11244_s12, %s9772_s17 }
0x1f6f   : > { %p9768_p10 = scmp.ne.s32.totalorder %s11244_s12, %s9767_s24  ;;  %p9775_p1 = scmp.lt.s32.totalorder %s9773_s27, %s9767_s24 }
0x1f71   : > { %7525 = vrot.lane.b32.xlu1 %v7515_v44, %s11409_s8  ;;  %s7889_s8 = scalar_lea.sflag [#allocation4], %s10413_s13  ;;  %p9769_p13 = pnand %p9768_p10, %p11422_p12 }
0x1f72   : > { %p9776_p3 = por %p9775_p1, %p9774_p7 }
0x1f73   : > { %p9770_p5 = pneg %p9769_p13 }
0x1f75   : > { %p9777_p6 = pnand %p9776_p3, %p9770_p5 }
0x1fdf   : > { %v7518_v33 = vpop.permute.xlu1 %7517  ;;  %v7522_v46 = vpop.permute.xlu0 %7521 }
0x1fe0   : > { %v7528_v47 = vsel %vm1820_vm2, %v7512_v38, %v7518_v33  ;;  %v8371_v33 = vld [vmem:[%s11415_s20 + $0x1] ss:$0 sm:$0xff] }
0x1fe1   : > { %v7529_v49 = vsel %vm2614_vm3, %v7528_v47, %v7522_v46  ;;  %v8372_v47 = vld [vmem:[%s10072_s21 + $0x1] ss:$0 sm:$0xff] }
0x1fe3   : > { %v7526_v48 = vpop.permute.xlu1 %7525 }
0x1fe4   : > { %v7530_v50 = vsel %vm2616_vm4, %v7529_v49, %v7526_v48 }
0x1fe5   : > { %8883 = vmatmul.mubr.msk.f32.vlgmr.msra.gmra.mrb[44].mxu0 %vm1222_vm1, %v7530_v50 }
0x1fe6   : > { %8912 = vmatprep.mubr.msk.f32.mxu0 %vm9917_vm0, %v9918_v1  ;;  %9025 = vmatpush3.bf16.msra.mxu0 %v9024_v14 }
0x1fe7   : > { %9026 = vmatprep.subr.bf16.mxu0 %v9916_v0 }
0x1fea   : > { %9028 = vmatpush3.bf16.msra.mxu0 %v9027_v10 }
0x1feb   : > { %9029 = vmatprep.subr.bf16.mxu0 %v9916_v0 }
0x1fee   : > { %9031 = vmatpush3.bf16.msra.mxu0 %v9030_v9 }
0x1fef   : > { %9032 = vmatprep.subr.bf16.mxu0 %v9916_v0 }
0x1ff2   : > { %9034 = vmatpush3.bf16.msra.mxu0 %v9033_v19 }
0x20b8   : > { %v7613_v8 = vpop.f32.mrb[44].mxu0 }
0x20b9   : > { %v7614_v52 = vadd.f32 %v8346_v37, %v7613_v8  ;;  %v8884_v53 = vpop.f32.mrb[45].mxu0 }
0x20bb   : > { %v7617_v54 = vadd.f32 %v7614_v52, %v11058_v56  ;;  %v8353_v56 = vld [vmem:[%s11410_s6 + $0x30] sm:$0xff] }
0x20bc   : > { %v9021_v3 = vpack.c.bf16 %v8354_v61, %v8353_v56 }
0x20bd   : > { %v7622_v55 = vsel %vm1222_vm1, %v7617_v54, 0.0 }
0x20be   : > { %7623 = vadd.xlane.f32.xlu0 %v7622_v55  ;;  %9022 = vmatpush3.bf16.msra.mxu1 %v9021_v3 }
0x214b   : > { %v7624_v57 = vpop.xlane.xlu0 %7623 }
0x214c   : > { %v7625_v58 = vmul.f32 0.03125, %v7624_v57 }
0x214e   : > { %v7626_v59 = vsub.f32 %v7617_v54, %v7625_v58 }
0x2150   : > { %v7627_v45 = vmul.f32 %v7626_v59, %v7626_v59 }
0x2152   : > { %v7628_v1 = vsel %vm1222_vm1, %v7627_v45, 0.0  ;;  %v8373_v45 = vld [vmem:[%s10077_s9] ss:$0 sm:$0xff] }
0x2153   : > { %7629 = vadd.xlane.f32.xlu1 %v7628_v1 }
0x21e0   : > { %v7630_v62 = vpop.xlane.xlu1 %7629 }
0x21e1   : > { %v7631_v15 = vmul.f32 0.03125, %v7630_v62 }
0x21e3   : > { %v7632_v16 = vadd.f32 1e-05, %v7631_v15 }
0x21e5   : > { %9335 = vrsqrt.f32 %v7632_v16 }
0x21ef   : > { %v9336_v17 = vpop.eup %9335 }
0x21f0   : > { %v7634_v18 = vmul.f32 %v9336_v17, %v7626_v59 }
0x21f2   : > { %v7641_v21 = vmul.f32 %v8349_v51, %v7634_v18 }
0x21f4   : > { %v7648_v24 = vadd.f32 %v8350_v22, %v7641_v21 }
0x21f6   : > { %8894 = vmatmul.mubr.msk.f32.vlgmr.msra.gmra.mrb[50].mxu1 %vm1222_vm1, %v7648_v24 }
0x22c9   : > { %v7731_v0 = vpop.f32.mrb[50].mxu1 }
0x22ca   : > { %v7732_v23 = vadd.f32 %v8356_v20, %v7731_v0  ;;  %v8895_v27 = vpop.f32.mrb[51].mxu1 }
0x22cc   : > { %v7735_v28 = vmax.f32 %v7732_v23, 0.0 }
0x22ce   : > { %8913 = vmatmul.mubr.msk.f32.vlgmr.msra.gmra.mrb[46].mxu0 %vm4425_vm7, %v7735_v28 }
0x23a1   : > { %v7822_v30 = vpop.f32.mrb[46].mxu0 }
0x23a2   : > { %v7823_v31 = vadd.f32 %v8367_v29, %v7822_v30  ;;  %v8914_v13 = vpop.f32.mrb[47].mxu0 }
0x23a4   : > { %v7826_v32 = vadd.f32 %v7823_v31, %v7648_v24 }
0x23a6   : > { %v7831_v34 = vsel %vm1222_vm1, %v7826_v32, 0.0 }
0x23a7   : > { %7832 = vadd.xlane.f32.xlu0 %v7831_v34 }
0x2434   : > { %v7833_v35 = vpop.xlane.xlu0 %7832 }
0x2435   : > { %v7834_v36 = vmul.f32 0.03125, %v7833_v35 }
0x2437   : > { %v7835_v39 = vsub.f32 %v7826_v32, %v7834_v36 }
0x2439   : > { %v7836_v40 = vmul.f32 %v7835_v39, %v7835_v39 }
0x243b   : > { %v7837_v41 = vsel %vm1222_vm1, %v7836_v40, 0.0 }
0x243c   : > { %7838 = vadd.xlane.f32.xlu0 %v7837_v41 }
0x24c9   : > { %v7839_v42 = vpop.xlane.xlu0 %7838 }
0x24ca   : > { %v7840_v43 = vmul.f32 0.03125, %v7839_v42 }
0x24cc   : > { %v7841_v44 = vadd.f32 1e-05, %v7840_v43 }
0x24ce   : > { %9337 = vrsqrt.f32 %v7841_v44 }
0x24d8   : > { %v9338_v38 = vpop.eup %9337 }
0x24d9   : > { %v7843_v46 = vmul.f32 %v9338_v38, %v7835_v39 }
0x24db   : > { %v7850_v48 = vmul.f32 %v8371_v33, %v7843_v46 }
0x24dd   : > { %v7857_v49 = vadd.f32 %v8372_v47, %v7850_v48 }
0x24df   : > { %v7860_v50 = vsel %vm1222_vm1, %v7857_v49, 0.0 }
0x24e0   : > { %7861 = vadd.xlane.f32.xlu1 %v7860_v50 }
0x256d   : > { %v7862_v37 = vpop.xlane.xlu1 %7861 }
0x256e   : > { %v7863_v8 = vmul.f32 0.03125, %v7862_v37 }
0x2570   : > { %v7864_v52 = vsub.f32 %v7857_v49, %v7863_v8 }
0x2572   : > { %v7865_v53 = vmul.f32 %v7864_v52, %v7864_v52 }
0x2574   : > { %v7866_v54 = vsel %vm1222_vm1, %v7865_v53, 0.0 }
0x2575   : > { %7867 = vadd.xlane.f32.xlu0 %v7866_v54 }
0x2602   : > { %v7868_v55 = vpop.xlane.xlu0 %7867 }
0x2603   : > { %v7869_v57 = vmul.f32 0.03125, %v7868_v55 }
0x2605   : > { %v7870_v58 = vadd.f32 1e-05, %v7869_v57 }
0x2607   : > { %9339 = vrsqrt.f32 %v7870_v58 }
0x2611   : > { %v9340_v59 = vpop.eup %9339 }
0x2612   : > { %v7872_v1 = vmul.f32 %v9340_v59, %v7864_v52 }
0x2614   : > { %v7879_v2 = vmul.f32 %v8373_v45, %v7872_v1 }
0x2616   : > { %v7886_v60 = vadd.f32 %v8374_v63, %v7879_v2 }
0x2618   : > { %7887 = vst.msk [vmem:[%s1196_s28] sm:$0xff] %vm1222_vm1, %v7886_v60 }
0x2619   : > { %9780 = shalt.err (!%p9777_p6)
}
0x261a   : > { %s9781_s13 = scalar_lea.hbm %s11242_s11, 128  ;;  %s9785_s23 = scalar_lea.hbm %s11421_s4, 256 }
0x261b   : > { %p9782_p11 = scmp.ne.s32.totalorder %s11242_s11, %s9781_s13  ;;  %p9786_p0 = scmp.lt.u32.totalorder %s11242_s11, %s11421_s4 }
0x261c   : > { %p9787_p8 = scmp.lt.u32.totalorder %s9785_s23, %s9781_s13  ;;  %p9789_p10 = scmp.lt.u32.totalorder %s9781_s13, %s11242_s11 }
0x261d   : > { %p9783_p4 = pnand %p9782_p11, %p11422_p12 }
0x261e   : > { %p9788_p2 = por %p9787_p8, %p9786_p0 }
0x261f   : > { %p9784_p9 = pneg %p9783_p4 }
0x2620   : > { %p9790_p13 = por %p9789_p10, %p9788_p2 }
0x2622   : > { %p9791_p5 = pnand %p9790_p13, %p9784_p9 }
0x2624   : > { %9794 = shalt.err (!%p9791_p5)
}
0x2625   : > { %9091 = dma.vmem_to_hbm [thread:$0]  (%p11422_p12), %s11244_s12, 128, %s11242_s11, %s7889_s8  }
0x2626 PF: > { %s7914_s28 = sand.u32 1, %s9853_s15   ;;  %p11423_p7 = scmp.ne.s32.totalorder %s11382_s1, 0 }
0x2627   : > { %p11424_p1 = scmp.ge.s32.totalorder %s9865_s0, 2  ;;  %s7915_s24 = scalar_lea.sflag [#allocation4], %s7914_s28 }
0x2629   : > { %p9141_p3 = pnand %p11424_p1, %p11423_p7 }
0x262b   : > { %9848 = dma.done.wait (!%p9141_p3), %s7915_s24, 128  }
0x262c   : > { %9850 = vsyncadd (!%p9141_p3), %s7915_s24, 4294967168  ;;  %p83_p6 = scmp.ge.s32.totalorder %s10326_s7, 4   ;;  %s11425_s15 = smov %s9857_s16 }
0x262d   : > { %s11426_s16 = smov %s9861_s18  ;;  %s11427_s18 = smov %s10338_s22 }
0x262e   : > { %s11428_s0 = smov %s10326_s7  ;;  %85 = sbr.rel (!%p83_p6) target bundleno = 79 (0x4f), region = 310 }
0x2635   :  { %7920 = vsyncpa [#allocation3], 1 }
0x2636   :  { %7922 = vsyncpa [#allocation3 + $0x1], 1 }
0x2637   :  { %7923 = vsyncpa [#allocation6], 1 }
0x2638   :  { %7925 = vsyncpa [#allocation6 + $0x1], 1 }
0x2639   :  { %7926 = vsyncpa [#allocation9], 1 }
0x263a   :  { %7927 = vsyncpa [#allocation12], 1 }
0x263b   :  { %7928 = vsyncpa [#allocation15], 1 }
0x263c   :  { %7929 = vsyncpa [#allocation18], 1 }
0x263d   :  { %7930 = vsyncpa [#allocation21], 1 }
0x263e   :  { %7931 = vsyncpa [#allocation24], 1 }
0x263f   :  { %7932 = vsyncpa [#allocation4], 1 }
0x2640   :  { %7934 = vsyncpa [#allocation4 + $0x1], 1 }

</bundles_post_ra>
